<compile_context>
chip_gen: v5e
topology: v5e:2x2
jax: 0.10.0
libtpu: 0.0.40
codegen_flags: <defaults>
</compile_context>

<pallas_src>
import functools

import jax
import jax.numpy as jnp
from jax.experimental import pallas as pl
from jax.experimental.pallas import tpu as pltpu


def _round_up(x, m):
    return (x + m - 1) // m * m


def _detection_head_kernel(x_ref, w3_ref, b3_ref, wh_ref, bh_ref,
                           out_ref, acc_ref, *, wpad, num_classes, m_out):
    # x_ref  : (1, M_IN, CIN_TILE)      bf16  flattened, zero-padded input rows
    # w3_ref : (3, 3, CIN_TILE, Chid)   bf16  3x3 conv weights (HWIO), Cin-slice
    # b3_ref : (1, Chid)                f32
    # wh_ref : (Chid, NOUT_PAD)         bf16  fused [cls | reg | zero-pad] head weight
    # bh_ref : (1, NOUT_PAD)            f32   fused head bias (zero-padded)
    # out_ref: (1, M_OUT, NOUT_PAD)     f32   lane-dense output slab
    # acc_ref: (M_OUT, Chid)            f32   VMEM accumulator (persists across k)
    k = pl.program_id(1)

    @pl.when(k == 0)
    def _init():
        acc_ref[...] = jnp.zeros_like(acc_ref)

    # 3x3 conv (padding=1) as 9 shifted matmuls over the flattened row-major
    # padded spatial axis; shifts are static Python ints -> plain 2-D slices.
    for dy in range(3):
        for dx in range(3):
            s = dy * wpad + dx
            patch = x_ref[0, s:s + m_out, :]                      # (M_OUT, CIN_TILE) bf16
            acc_ref[...] += jnp.dot(patch, w3_ref[dy, dx],
                                    preferred_element_type=jnp.float32)

    # Bias + ReLU + fused 1x1 heads only on the last Cin-reduction step.
    @pl.when(k == pl.num_programs(1) - 1)
    def _finalize():
        h = jnp.maximum(acc_ref[...] + b3_ref[...], 0.0)          # (M_OUT, Chid) f32
        y = jnp.dot(h.astype(wh_ref.dtype), wh_ref[...],
                    preferred_element_type=jnp.float32) + bh_ref[...]
        # ReLU only on the bbox-regression columns; cls logits stay raw.
        col = jax.lax.broadcasted_iota(jnp.int32, y.shape, 1)
        y = jnp.where(col >= num_classes, jnp.maximum(y, 0.0), y)
        out_ref[...] = y.reshape(1, m_out, -1).astype(out_ref.dtype)


def detection_head_forward(x_nhwc, w3, b3, wc, bc, wr, br, *, cin_tile=256):
    """x_nhwc: (N, H, W, Cin) f32. Returns (cls_logits, bbox_preds) in NHWC."""
    N, H, W, Cin = x_nhwc.shape
    Chid = w3.shape[3]
    NC = wc.shape[1]
    NR = wr.shape[1]

    Wp = W + 2                                   # padded row width for the 3x3 conv
    M_OUT = _round_up(H * Wp, 8)                 # conv-output rows per image (incl. junk cols)
    M_IN = _round_up(M_OUT + 2 * Wp + 2, 8)      # padded-input rows (covers max tap shift)
    NOUT = NC + NR
    NOUT_PAD = _round_up(NOUT, 128)              # lane-dense fused head width

    cin_tile = min(cin_tile, Cin)
    assert Cin % cin_tile == 0, "Cin must be divisible by cin_tile"
    k_steps = Cin // cin_tile

    # ---- plain-JAX glue: padding, flattening, bf16 weight/activation layout ----
    xp = jnp.pad(x_nhwc, ((0, 0), (1, 1), (1, 1), (0, 0)))        # (N, H+2, Wp, Cin)
    xflat = xp.reshape(N, (H + 2) * Wp, Cin)
    xflat = jnp.pad(xflat, ((0, 0), (0, M_IN - (H + 2) * Wp), (0, 0)))
    xflat = xflat.astype(jnp.bfloat16)

    w3_bf = w3.astype(jnp.bfloat16)
    b3_2d = b3.reshape(1, Chid).astype(jnp.float32)
    whead = jnp.concatenate([wc, wr], axis=1)                     # (Chid, NC+NR)
    whead = jnp.pad(whead, ((0, 0), (0, NOUT_PAD - NOUT))).astype(jnp.bfloat16)
    bhead = jnp.concatenate([bc, br], axis=0)
    bhead = jnp.pad(bhead, (0, NOUT_PAD - NOUT)).reshape(1, NOUT_PAD).astype(jnp.float32)

    kernel = functools.partial(_detection_head_kernel,
                               wpad=Wp, num_classes=NC, m_out=M_OUT)

    grid_spec = pltpu.PrefetchScalarGridSpec(
        num_scalar_prefetch=0,
        grid=(N, k_steps),                       # batch (parallel), Cin reduction (last)
        in_specs=[
            pl.BlockSpec((1, M_IN, cin_tile), lambda b, k: (b, 0, k)),
            pl.BlockSpec((3, 3, cin_tile, Chid), lambda b, k: (0, 0, k, 0)),
            pl.BlockSpec((1, Chid), lambda b, k: (0, 0)),
            pl.BlockSpec((Chid, NOUT_PAD), lambda b, k: (0, 0)),
            pl.BlockSpec((1, NOUT_PAD), lambda b, k: (0, 0)),
        ],
        out_specs=pl.BlockSpec((1, M_OUT, NOUT_PAD), lambda b, k: (b, 0, 0)),
        scratch_shapes=[pltpu.VMEM((M_OUT, Chid), jnp.float32)],
    )

    slab = pl.pallas_call(
        kernel,
        out_shape=jax.ShapeDtypeStruct((N, M_OUT, NOUT_PAD), jnp.float32),
        grid_spec=grid_spec,
        compiler_params=pltpu.CompilerParams(
            dimension_semantics=("parallel", "arbitrary"),
            vmem_limit_bytes=48 * 1024 * 1024,
        ),
    )(xflat, w3_bf, b3_2d, whead, bhead)

    # ---- un-pad the lane-dense output slab (plain JAX) ----
    slab = slab[:, :H * Wp, :].reshape(N, H, Wp, NOUT_PAD)
    cls_logits = slab[:, :, :W, :NC]
    bbox_preds = slab[:, :, :W, NC:NC + NR]
    return cls_logits, bbox_preds


def reference_forward(x_nhwc, w3, b3, wc, bc, wr, br):
    """Pure-JAX reference mirroring the kernel's bf16 operand quantization."""
    q = lambda a: a.astype(jnp.bfloat16).astype(jnp.float32)
    xq, w3q, wcq, wrq = q(x_nhwc), q(w3), q(wc), q(wr)
    dn = jax.lax.conv_dimension_numbers(xq.shape, w3q.shape, ("NHWC", "HWIO", "NHWC"))
    h = jax.lax.conv_general_dilated(xq, w3q, window_strides=(1, 1),
                                     padding="SAME", dimension_numbers=dn)
    h = q(jnp.maximum(h + b3, 0.0))
    cls = jnp.einsum("nhwc,cd->nhwd", h, wcq) + bc
    reg = jnp.maximum(jnp.einsum("nhwc,cd->nhwd", h, wrq) + br, 0.0)
    return cls, reg


if __name__ == "__main__":
    # Small shapes consistent with the module (scaled-down num_features / num_classes).
    N, H, W = 2, 8, 8
    Cin = 256        # stands in for num_features=2048
    Chid = 512       # trunk width of the detection head
    NC = 32          # stands in for num_classes

    key = jax.random.PRNGKey(0)
    kx, k3, kb3, kc, kbc, kr, kbr = jax.random.split(key, 7)

    x = jax.random.normal(kx, (N, H, W, Cin), dtype=jnp.float32)
    w3 = jax.random.normal(k3, (3, 3, Cin, Chid), dtype=jnp.float32) * (1.0 / (3 * 3 * Cin) ** 0.5)
    b3 = jax.random.normal(kb3, (Chid,), dtype=jnp.float32) * 0.01
    wc = jax.random.normal(kc, (Chid, NC), dtype=jnp.float32) * (1.0 / Chid ** 0.5)
    bc = jax.random.normal(kbc, (NC,), dtype=jnp.float32) * 0.01
    wr = jax.random.normal(kr, (Chid, 4), dtype=jnp.float32) * (1.0 / Chid ** 0.5)
    br = jax.random.normal(kbr, (4,), dtype=jnp.float32) * 0.01

    cls_logits, bbox_preds = detection_head_forward(x, w3, b3, wc, bc, wr, br, cin_tile=128)
    jax.block_until_ready((cls_logits, bbox_preds))

    cls_ref, reg_ref = reference_forward(x, w3, b3, wc, bc, wr, br)
    assert cls_logits.shape == (N, H, W, NC) and bbox_preds.shape == (N, H, W, 4)
    assert jnp.allclose(cls_logits, cls_ref, atol=1e-2, rtol=1e-2)
    assert jnp.allclose(bbox_preds, reg_ref, atol=1e-2, rtol=1e-2)

    print("KERNEL_OK")
</pallas_src>

<mosaic_0001>
module attributes {stable_mosaic.version = 11 : i64} {
  func.func @_detection_head_kernel(%arg0: i32, %arg1: i32, %arg2: memref<1x104x128xbf16, #tpu.memory_space<vmem>>, %arg3: memref<3x3x128x512xbf16, #tpu.memory_space<vmem>>, %arg4: memref<1x512xf32, #tpu.memory_space<vmem>>, %arg5: memref<512x128xbf16, #tpu.memory_space<vmem>>, %arg6: memref<1x128xf32, #tpu.memory_space<vmem>>, %arg7: memref<1x80x128xf32, #tpu.memory_space<vmem>>, %arg8: memref<80x512xf32, #tpu.memory_space<vmem>>) attributes {dimension_semantics = [#tpu.dimension_semantics<parallel>, #tpu.dimension_semantics<arbitrary>], iteration_bounds = array<i64: 2, 2>, scalar_prefetch = 0 : i64, scratch_operands = 1 : i64, tpu.core_type = #tpu.core_type<tc>, window_params = [{transform_indices = @transform_0, window_bounds = array<i64: 1, 104, 128>}, {transform_indices = @transform_1, window_bounds = array<i64: 3, 3, 128, 512>}, {pipeline_mode = #tpu.pipeline_mode<synchronous>, transform_indices = @transform_2, window_bounds = array<i64: 1, 512>}, {pipeline_mode = #tpu.pipeline_mode<synchronous>, transform_indices = @transform_3, window_bounds = array<i64: 512, 128>}, {pipeline_mode = #tpu.pipeline_mode<synchronous>, transform_indices = @transform_4, window_bounds = array<i64: 1, 128>}, {transform_indices = @transform_5, window_bounds = array<i64: 1, 80, 128>}]} {
    %c0_i32 = arith.constant 0 : i32
    %0 = arith.cmpi eq, %arg1, %c0_i32 : i32
    %1 = arith.extui %0 : i1 to i32
    %c0_i32_0 = arith.constant 0 : i32
    %2 = arith.cmpi ne, %1, %c0_i32_0 : i32
    scf.if %2 {
      %cst_100 = arith.constant 0.000000e+00 : f32
      %78 = vector.broadcast %cst_100 : f32 to vector<80x512xf32>
      %c0_101 = arith.constant 0 : index
      %c0_102 = arith.constant 0 : index
      %79 = vector.load %arg8[%c0_101, %c0_102] : memref<80x512xf32, #tpu.memory_space<vmem>>, vector<80x512xf32>
      tpu.vector_store %arg8[%c0_101, %c0_102], %78 {strides = array<i32>} : memref<80x512xf32, #tpu.memory_space<vmem>>, vector<80x512xf32>,
    } else {
    }
    %c0 = arith.constant 0 : index
    %c0_1 = arith.constant 0 : index
    %c0_2 = arith.constant 0 : index
    %3 = vector.load %arg2[%c0, %c0_1, %c0_2] : memref<1x104x128xbf16, #tpu.memory_space<vmem>>, vector<1x80x128xbf16>
    %4 = vector.shape_cast %3 : vector<1x80x128xbf16> to vector<80x128xbf16>
    %c0_3 = arith.constant 0 : index
    %c0_4 = arith.constant 0 : index
    %5 = vector.load %arg8[%c0_3, %c0_4] : memref<80x512xf32, #tpu.memory_space<vmem>>, vector<80x512xf32>
    %c0_5 = arith.constant 0 : index
    %c0_6 = arith.constant 0 : index
    %c0_7 = arith.constant 0 : index
    %c0_8 = arith.constant 0 : index
    %6 = vector.load %arg3[%c0_5, %c0_6, %c0_7, %c0_8] : memref<3x3x128x512xbf16, #tpu.memory_space<vmem>>, vector<1x1x128x512xbf16>
    %7 = vector.shape_cast %6 : vector<1x1x128x512xbf16> to vector<128x512xbf16>
    %cst = arith.constant dense<0.000000e+00> : vector<80x512xf32>
    %8 = tpu.matmul %4, %7, %cst {dimension_numbers = #tpu.dot_dimension_numbers<[1], [0], [0], [1], [0, 0, 1, 1], [], []>} : vector<80x128xbf16>, vector<128x512xbf16>, vector<80x512xf32> -> vector<80x512xf32>
    %9 = arith.addf %5, %8 : vector<80x512xf32>
    %c0_9 = arith.constant 0 : index
    %c0_10 = arith.constant 0 : index
    %10 = vector.load %arg8[%c0_9, %c0_10] : memref<80x512xf32, #tpu.memory_space<vmem>>, vector<80x512xf32>
    tpu.vector_store %arg8[%c0_9, %c0_10], %9 {strides = array<i32>} : memref<80x512xf32, #tpu.memory_space<vmem>>, vector<80x512xf32>,
    %c0_11 = arith.constant 0 : index
    %c1 = arith.constant 1 : index
    %c0_12 = arith.constant 0 : index
    %11 = vector.load %arg2[%c0_11, %c1, %c0_12] : memref<1x104x128xbf16, #tpu.memory_space<vmem>>, vector<1x80x128xbf16>
    %12 = vector.shape_cast %11 : vector<1x80x128xbf16> to vector<80x128xbf16>
    %c0_13 = arith.constant 0 : index
    %c0_14 = arith.constant 0 : index
    %13 = vector.load %arg8[%c0_13, %c0_14] : memref<80x512xf32, #tpu.memory_space<vmem>>, vector<80x512xf32>
    %c0_15 = arith.constant 0 : index
    %c1_16 = arith.constant 1 : index
    %c0_17 = arith.constant 0 : index
    %c0_18 = arith.constant 0 : index
    %14 = vector.load %arg3[%c0_15, %c1_16, %c0_17, %c0_18] : memref<3x3x128x512xbf16, #tpu.memory_space<vmem>>, vector<1x1x128x512xbf16>
    %15 = vector.shape_cast %14 : vector<1x1x128x512xbf16> to vector<128x512xbf16>
    %cst_19 = arith.constant dense<0.000000e+00> : vector<80x512xf32>
    %16 = tpu.matmul %12, %15, %cst_19 {dimension_numbers = #tpu.dot_dimension_numbers<[1], [0], [0], [1], [0, 0, 1, 1], [], []>} : vector<80x128xbf16>, vector<128x512xbf16>, vector<80x512xf32> -> vector<80x512xf32>
    %17 = arith.addf %13, %16 : vector<80x512xf32>
    %c0_20 = arith.constant 0 : index
    %c0_21 = arith.constant 0 : index
    %18 = vector.load %arg8[%c0_20, %c0_21] : memref<80x512xf32, #tpu.memory_space<vmem>>, vector<80x512xf32>
    tpu.vector_store %arg8[%c0_20, %c0_21], %17 {strides = array<i32>} : memref<80x512xf32, #tpu.memory_space<vmem>>, vector<80x512xf32>,
    %c0_22 = arith.constant 0 : index
    %c2 = arith.constant 2 : index
    %c0_23 = arith.constant 0 : index
    %19 = vector.load %arg2[%c0_22, %c2, %c0_23] : memref<1x104x128xbf16, #tpu.memory_space<vmem>>, vector<1x80x128xbf16>
    %20 = vector.shape_cast %19 : vector<1x80x128xbf16> to vector<80x128xbf16>
    %c0_24 = arith.constant 0 : index
    %c0_25 = arith.constant 0 : index
    %21 = vector.load %arg8[%c0_24, %c0_25] : memref<80x512xf32, #tpu.memory_space<vmem>>, vector<80x512xf32>
    %c0_26 = arith.constant 0 : index
    %c2_27 = arith.constant 2 : index
    %c0_28 = arith.constant 0 : index
    %c0_29 = arith.constant 0 : index
    %22 = vector.load %arg3[%c0_26, %c2_27, %c0_28, %c0_29] : memref<3x3x128x512xbf16, #tpu.memory_space<vmem>>, vector<1x1x128x512xbf16>
    %23 = vector.shape_cast %22 : vector<1x1x128x512xbf16> to vector<128x512xbf16>
    %cst_30 = arith.constant dense<0.000000e+00> : vector<80x512xf32>
    %24 = tpu.matmul %20, %23, %cst_30 {dimension_numbers = #tpu.dot_dimension_numbers<[1], [0], [0], [1], [0, 0, 1, 1], [], []>} : vector<80x128xbf16>, vector<128x512xbf16>, vector<80x512xf32> -> vector<80x512xf32>
    %25 = arith.addf %21, %24 : vector<80x512xf32>
    %c0_31 = arith.constant 0 : index
    %c0_32 = arith.constant 0 : index
    %26 = vector.load %arg8[%c0_31, %c0_32] : memref<80x512xf32, #tpu.memory_space<vmem>>, vector<80x512xf32>
    tpu.vector_store %arg8[%c0_31, %c0_32], %25 {strides = array<i32>} : memref<80x512xf32, #tpu.memory_space<vmem>>, vector<80x512xf32>,
    %c0_33 = arith.constant 0 : index
    %c10 = arith.constant 10 : index
    %c0_34 = arith.constant 0 : index
    %27 = vector.load %arg2[%c0_33, %c10, %c0_34] : memref<1x104x128xbf16, #tpu.memory_space<vmem>>, vector<1x80x128xbf16>
    %28 = vector.shape_cast %27 : vector<1x80x128xbf16> to vector<80x128xbf16>
    %c0_35 = arith.constant 0 : index
    %c0_36 = arith.constant 0 : index
    %29 = vector.load %arg8[%c0_35, %c0_36] : memref<80x512xf32, #tpu.memory_space<vmem>>, vector<80x512xf32>
    %c1_37 = arith.constant 1 : index
    %c0_38 = arith.constant 0 : index
    %c0_39 = arith.constant 0 : index
    %c0_40 = arith.constant 0 : index
    %30 = vector.load %arg3[%c1_37, %c0_38, %c0_39, %c0_40] : memref<3x3x128x512xbf16, #tpu.memory_space<vmem>>, vector<1x1x128x512xbf16>
    %31 = vector.shape_cast %30 : vector<1x1x128x512xbf16> to vector<128x512xbf16>
    %cst_41 = arith.constant dense<0.000000e+00> : vector<80x512xf32>
    %32 = tpu.matmul %28, %31, %cst_41 {dimension_numbers = #tpu.dot_dimension_numbers<[1], [0], [0], [1], [0, 0, 1, 1], [], []>} : vector<80x128xbf16>, vector<128x512xbf16>, vector<80x512xf32> -> vector<80x512xf32>
    %33 = arith.addf %29, %32 : vector<80x512xf32>
    %c0_42 = arith.constant 0 : index
    %c0_43 = arith.constant 0 : index
    %34 = vector.load %arg8[%c0_42, %c0_43] : memref<80x512xf32, #tpu.memory_space<vmem>>, vector<80x512xf32>
    tpu.vector_store %arg8[%c0_42, %c0_43], %33 {strides = array<i32>} : memref<80x512xf32, #tpu.memory_space<vmem>>, vector<80x512xf32>,
    %c0_44 = arith.constant 0 : index
    %c11 = arith.constant 11 : index
    %c0_45 = arith.constant 0 : index
    %35 = vector.load %arg2[%c0_44, %c11, %c0_45] : memref<1x104x128xbf16, #tpu.memory_space<vmem>>, vector<1x80x128xbf16>
    %36 = vector.shape_cast %35 : vector<1x80x128xbf16> to vector<80x128xbf16>
    %c0_46 = arith.constant 0 : index
    %c0_47 = arith.constant 0 : index
    %37 = vector.load %arg8[%c0_46, %c0_47] : memref<80x512xf32, #tpu.memory_space<vmem>>, vector<80x512xf32>
    %c1_48 = arith.constant 1 : index
    %c1_49 = arith.constant 1 : index
    %c0_50 = arith.constant 0 : index
    %c0_51 = arith.constant 0 : index
    %38 = vector.load %arg3[%c1_48, %c1_49, %c0_50, %c0_51] : memref<3x3x128x512xbf16, #tpu.memory_space<vmem>>, vector<1x1x128x512xbf16>
    %39 = vector.shape_cast %38 : vector<1x1x128x512xbf16> to vector<128x512xbf16>
    %cst_52 = arith.constant dense<0.000000e+00> : vector<80x512xf32>
    %40 = tpu.matmul %36, %39, %cst_52 {dimension_numbers = #tpu.dot_dimension_numbers<[1], [0], [0], [1], [0, 0, 1, 1], [], []>} : vector<80x128xbf16>, vector<128x512xbf16>, vector<80x512xf32> -> vector<80x512xf32>
    %41 = arith.addf %37, %40 : vector<80x512xf32>
    %c0_53 = arith.constant 0 : index
    %c0_54 = arith.constant 0 : index
    %42 = vector.load %arg8[%c0_53, %c0_54] : memref<80x512xf32, #tpu.memory_space<vmem>>, vector<80x512xf32>
    tpu.vector_store %arg8[%c0_53, %c0_54], %41 {strides = array<i32>} : memref<80x512xf32, #tpu.memory_space<vmem>>, vector<80x512xf32>,
    %c0_55 = arith.constant 0 : index
    %c12 = arith.constant 12 : index
    %c0_56 = arith.constant 0 : index
    %43 = vector.load %arg2[%c0_55, %c12, %c0_56] : memref<1x104x128xbf16, #tpu.memory_space<vmem>>, vector<1x80x128xbf16>
    %44 = vector.shape_cast %43 : vector<1x80x128xbf16> to vector<80x128xbf16>
    %c0_57 = arith.constant 0 : index
    %c0_58 = arith.constant 0 : index
    %45 = vector.load %arg8[%c0_57, %c0_58] : memref<80x512xf32, #tpu.memory_space<vmem>>, vector<80x512xf32>
    %c1_59 = arith.constant 1 : index
    %c2_60 = arith.constant 2 : index
    %c0_61 = arith.constant 0 : index
    %c0_62 = arith.constant 0 : index
    %46 = vector.load %arg3[%c1_59, %c2_60, %c0_61, %c0_62] : memref<3x3x128x512xbf16, #tpu.memory_space<vmem>>, vector<1x1x128x512xbf16>
    %47 = vector.shape_cast %46 : vector<1x1x128x512xbf16> to vector<128x512xbf16>
    %cst_63 = arith.constant dense<0.000000e+00> : vector<80x512xf32>
    %48 = tpu.matmul %44, %47, %cst_63 {dimension_numbers = #tpu.dot_dimension_numbers<[1], [0], [0], [1], [0, 0, 1, 1], [], []>} : vector<80x128xbf16>, vector<128x512xbf16>, vector<80x512xf32> -> vector<80x512xf32>
    %49 = arith.addf %45, %48 : vector<80x512xf32>
    %c0_64 = arith.constant 0 : index
    %c0_65 = arith.constant 0 : index
    %50 = vector.load %arg8[%c0_64, %c0_65] : memref<80x512xf32, #tpu.memory_space<vmem>>, vector<80x512xf32>
    tpu.vector_store %arg8[%c0_64, %c0_65], %49 {strides = array<i32>} : memref<80x512xf32, #tpu.memory_space<vmem>>, vector<80x512xf32>,
    %c0_66 = arith.constant 0 : index
    %c20 = arith.constant 20 : index
    %c0_67 = arith.constant 0 : index
    %51 = vector.load %arg2[%c0_66, %c20, %c0_67] : memref<1x104x128xbf16, #tpu.memory_space<vmem>>, vector<1x80x128xbf16>
    %52 = vector.shape_cast %51 : vector<1x80x128xbf16> to vector<80x128xbf16>
    %c0_68 = arith.constant 0 : index
    %c0_69 = arith.constant 0 : index
    %53 = vector.load %arg8[%c0_68, %c0_69] : memref<80x512xf32, #tpu.memory_space<vmem>>, vector<80x512xf32>
    %c2_70 = arith.constant 2 : index
    %c0_71 = arith.constant 0 : index
    %c0_72 = arith.constant 0 : index
    %c0_73 = arith.constant 0 : index
    %54 = vector.load %arg3[%c2_70, %c0_71, %c0_72, %c0_73] : memref<3x3x128x512xbf16, #tpu.memory_space<vmem>>, vector<1x1x128x512xbf16>
    %55 = vector.shape_cast %54 : vector<1x1x128x512xbf16> to vector<128x512xbf16>
    %cst_74 = arith.constant dense<0.000000e+00> : vector<80x512xf32>
    %56 = tpu.matmul %52, %55, %cst_74 {dimension_numbers = #tpu.dot_dimension_numbers<[1], [0], [0], [1], [0, 0, 1, 1], [], []>} : vector<80x128xbf16>, vector<128x512xbf16>, vector<80x512xf32> -> vector<80x512xf32>
    %57 = arith.addf %53, %56 : vector<80x512xf32>
    %c0_75 = arith.constant 0 : index
    %c0_76 = arith.constant 0 : index
    %58 = vector.load %arg8[%c0_75, %c0_76] : memref<80x512xf32, #tpu.memory_space<vmem>>, vector<80x512xf32>
    tpu.vector_store %arg8[%c0_75, %c0_76], %57 {strides = array<i32>} : memref<80x512xf32, #tpu.memory_space<vmem>>, vector<80x512xf32>,
    %c0_77 = arith.constant 0 : index
    %c21 = arith.constant 21 : index
    %c0_78 = arith.constant 0 : index
    %59 = vector.load %arg2[%c0_77, %c21, %c0_78] : memref<1x104x128xbf16, #tpu.memory_space<vmem>>, vector<1x80x128xbf16>
    %60 = vector.shape_cast %59 : vector<1x80x128xbf16> to vector<80x128xbf16>
    %c0_79 = arith.constant 0 : index
    %c0_80 = arith.constant 0 : index
    %61 = vector.load %arg8[%c0_79, %c0_80] : memref<80x512xf32, #tpu.memory_space<vmem>>, vector<80x512xf32>
    %c2_81 = arith.constant 2 : index
    %c1_82 = arith.constant 1 : index
    %c0_83 = arith.constant 0 : index
    %c0_84 = arith.constant 0 : index
    %62 = vector.load %arg3[%c2_81, %c1_82, %c0_83, %c0_84] : memref<3x3x128x512xbf16, #tpu.memory_space<vmem>>, vector<1x1x128x512xbf16>
    %63 = vector.shape_cast %62 : vector<1x1x128x512xbf16> to vector<128x512xbf16>
    %cst_85 = arith.constant dense<0.000000e+00> : vector<80x512xf32>
    %64 = tpu.matmul %60, %63, %cst_85 {dimension_numbers = #tpu.dot_dimension_numbers<[1], [0], [0], [1], [0, 0, 1, 1], [], []>} : vector<80x128xbf16>, vector<128x512xbf16>, vector<80x512xf32> -> vector<80x512xf32>
    %65 = arith.addf %61, %64 : vector<80x512xf32>
    %c0_86 = arith.constant 0 : index
    %c0_87 = arith.constant 0 : index
    %66 = vector.load %arg8[%c0_86, %c0_87] : memref<80x512xf32, #tpu.memory_space<vmem>>, vector<80x512xf32>
    tpu.vector_store %arg8[%c0_86, %c0_87], %65 {strides = array<i32>} : memref<80x512xf32, #tpu.memory_space<vmem>>, vector<80x512xf32>,
    %c0_88 = arith.constant 0 : index
    %c22 = arith.constant 22 : index
    %c0_89 = arith.constant 0 : index
    %67 = vector.load %arg2[%c0_88, %c22, %c0_89] : memref<1x104x128xbf16, #tpu.memory_space<vmem>>, vector<1x80x128xbf16>
    %68 = vector.shape_cast %67 : vector<1x80x128xbf16> to vector<80x128xbf16>
    %c0_90 = arith.constant 0 : index
    %c0_91 = arith.constant 0 : index
    %69 = vector.load %arg8[%c0_90, %c0_91] : memref<80x512xf32, #tpu.memory_space<vmem>>, vector<80x512xf32>
    %c2_92 = arith.constant 2 : index
    %c2_93 = arith.constant 2 : index
    %c0_94 = arith.constant 0 : index
    %c0_95 = arith.constant 0 : index
    %70 = vector.load %arg3[%c2_92, %c2_93, %c0_94, %c0_95] : memref<3x3x128x512xbf16, #tpu.memory_space<vmem>>, vector<1x1x128x512xbf16>
    %71 = vector.shape_cast %70 : vector<1x1x128x512xbf16> to vector<128x512xbf16>
    %cst_96 = arith.constant dense<0.000000e+00> : vector<80x512xf32>
    %72 = tpu.matmul %68, %71, %cst_96 {dimension_numbers = #tpu.dot_dimension_numbers<[1], [0], [0], [1], [0, 0, 1, 1], [], []>} : vector<80x128xbf16>, vector<128x512xbf16>, vector<80x512xf32> -> vector<80x512xf32>
    %73 = arith.addf %69, %72 : vector<80x512xf32>
    %c0_97 = arith.constant 0 : index
    %c0_98 = arith.constant 0 : index
    %74 = vector.load %arg8[%c0_97, %c0_98] : memref<80x512xf32, #tpu.memory_space<vmem>>, vector<80x512xf32>
    tpu.vector_store %arg8[%c0_97, %c0_98], %73 {strides = array<i32>} : memref<80x512xf32, #tpu.memory_space<vmem>>, vector<80x512xf32>,
    %c1_i32 = arith.constant 1 : i32
    %75 = arith.cmpi eq, %arg1, %c1_i32 : i32
    %76 = arith.extui %75 : i1 to i32
    %c0_i32_99 = arith.constant 0 : i32
    %77 = arith.cmpi ne, %76, %c0_i32_99 : i32
    scf.if %77 {
      %c0_100 = arith.constant 0 : index
      %c0_101 = arith.constant 0 : index
      %78 = vector.load %arg8[%c0_100, %c0_101] : memref<80x512xf32, #tpu.memory_space<vmem>>, vector<80x512xf32>
      %c0_102 = arith.constant 0 : index
      %c0_103 = arith.constant 0 : index
      %79 = vector.load %arg4[%c0_102, %c0_103] : memref<1x512xf32, #tpu.memory_space<vmem>>, vector<1x512xf32>
      %80 = vector.broadcast %79 : vector<1x512xf32> to vector<80x512xf32>
      %81 = arith.addf %78, %80 : vector<80x512xf32>
      %cst_104 = arith.constant 0.000000e+00 : f32
      %82 = vector.broadcast %cst_104 : f32 to vector<80x512xf32>
      %83 = arith.maximumf %81, %82 : vector<80x512xf32>
      %84 = arith.truncf %83 : vector<80x512xf32> to vector<80x512xbf16>
      %c0_105 = arith.constant 0 : index
      %c0_106 = arith.constant 0 : index
      %85 = vector.load %arg5[%c0_105, %c0_106] : memref<512x128xbf16, #tpu.memory_space<vmem>>, vector<512x128xbf16>
      %cst_107 = arith.constant dense<0.000000e+00> : vector<80x128xf32>
      %86 = tpu.matmul %84, %85, %cst_107 {dimension_numbers = #tpu.dot_dimension_numbers<[1], [0], [0], [1], [0, 0, 1, 1], [], []>} : vector<80x512xbf16>, vector<512x128xbf16>, vector<80x128xf32> -> vector<80x128xf32>
      %c0_108 = arith.constant 0 : index
      %c0_109 = arith.constant 0 : index
      %87 = vector.load %arg6[%c0_108, %c0_109] : memref<1x128xf32, #tpu.memory_space<vmem>>, vector<1x128xf32>
      %88 = vector.broadcast %87 : vector<1x128xf32> to vector<80x128xf32>
      %89 = arith.addf %86, %88 : vector<80x128xf32>
      %90 = tpu.iota {dimensions = array<i32: 1>} : vector<80x128xi32>
      %c32_i32 = arith.constant 32 : i32
      %91 = vector.broadcast %c32_i32 : i32 to vector<80x128xi32>
      %92 = arith.cmpi sge, %90, %91 : vector<80x128xi32>
      %cst_110 = arith.constant 0.000000e+00 : f32
      %93 = vector.broadcast %cst_110 : f32 to vector<80x128xf32>
      %94 = arith.maximumf %89, %93 : vector<80x128xf32>
      %95 = arith.select %92, %94, %89 : vector<80x128xi1>, vector<80x128xf32>
      %96 = vector.shape_cast %95 : vector<80x128xf32> to vector<1x80x128xf32>
      %c0_111 = arith.constant 0 : index
      %c0_112 = arith.constant 0 : index
      %c0_113 = arith.constant 0 : index
      %97 = vector.load %arg7[%c0_111, %c0_112, %c0_113] : memref<1x80x128xf32, #tpu.memory_space<vmem>>, vector<1x80x128xf32>
      tpu.vector_store %arg7[%c0_111, %c0_112, %c0_113], %96 {strides = array<i32>} : memref<1x80x128xf32, #tpu.memory_space<vmem>>, vector<1x80x128xf32>,
    } else {
    }
    return
  }
  func.func @transform_0(%arg0: i32, %arg1: i32) -> (i32, i32, i32) {
    %c0_i32 = arith.constant 0 : i32
    %c0_i32_0 = arith.constant 0 : i32
    return %arg0, %c0_i32, %arg1 : i32, i32, i32
  }
  func.func @transform_1(%arg0: i32, %arg1: i32) -> (i32, i32, i32, i32) {
    %c0_i32 = arith.constant 0 : i32
    %c0_i32_0 = arith.constant 0 : i32
    %c0_i32_1 = arith.constant 0 : i32
    %c0_i32_2 = arith.constant 0 : i32
    return %c0_i32, %c0_i32_0, %arg1, %c0_i32_1 : i32, i32, i32, i32
  }
  func.func @transform_2(%arg0: i32, %arg1: i32) -> (i32, i32) {
    %c0_i32 = arith.constant 0 : i32
    %c0_i32_0 = arith.constant 0 : i32
    %c0_i32_1 = arith.constant 0 : i32
    return %c0_i32, %c0_i32_0 : i32, i32
  }
  func.func @transform_3(%arg0: i32, %arg1: i32) -> (i32, i32) {
    %c0_i32 = arith.constant 0 : i32
    %c0_i32_0 = arith.constant 0 : i32
    %c0_i32_1 = arith.constant 0 : i32
    return %c0_i32, %c0_i32_0 : i32, i32
  }
  func.func @transform_4(%arg0: i32, %arg1: i32) -> (i32, i32) {
    %c0_i32 = arith.constant 0 : i32
    %c0_i32_0 = arith.constant 0 : i32
    %c0_i32_1 = arith.constant 0 : i32
    return %c0_i32, %c0_i32_0 : i32, i32
  }
  func.func @transform_5(%arg0: i32, %arg1: i32) -> (i32, i32, i32) {
    %c0_i32 = arith.constant 0 : i32
    %c0_i32_0 = arith.constant 0 : i32
    %c0_i32_1 = arith.constant 0 : i32
    return %arg0, %c0_i32, %c0_i32_0 : i32, i32, i32
  }
}

</mosaic_0001>

<bundles_post_ra>
// kernel: tpu_custom_call.1
= control target key start
LH: loop header
LB: loop body
LE: loop exit
PB: predicated region body
PF: predicated region fallthrough
CT: control target
= control target key end

     0   :  { %s10545_s0 = inlined_call_operand.hbm [shape: bf16[2,104,256], index: 0, kind: input, shape index: {}]   ;;  %s10546_s1 = inlined_call_operand.hbm [shape: bf16[3,3,256,512], index: 1, kind: input, shape index: {}]   ;;  %s10547_s2 = inlined_call_operand.hbm [shape: f32[1,512], index: 2, kind: input, shape index: {}]   ;;  %s10548_s3 = inlined_call_operand.hbm [shape: bf16[512,128], index: 3, kind: input, shape index: {}]   ;;  %s10549_s4 = inlined_call_operand.hbm [shape: f32[1,128], index: 4, kind: input, shape index: {}]   ;;  %s10550_s5 = inlined_call_operand.hbm [shape: f32[2,80,128], index: 5, kind: output, shape index: {}]  }
   0x1   :  { %10564 = sst [smem:[#allocation34_spill]] %s10548_s3 }
   0x2   :  { %10565 = sst [smem:[#allocation35_spill]] %s10550_s5 }
   0x3   :  { %10 = vsyncpa [#allocation4], 0 }
   0x4   :  { %12 = vsyncpa [#allocation4 + $0x1], 0 }
   0x5   :  { %13 = vsyncpa [#allocation7], 0 }
   0x6   :  { %15 = vsyncpa [#allocation7 + $0x1], 0 }
   0x7   :  { %16 = vsyncpa [#allocation10], 0 }
   0x8   :  { %17 = vsyncpa [#allocation5], 0 }
   0x9   :  { %19 = vsyncpa [#allocation5 + $0x1], 0  ;;  %s8408_s18 = smov 0   ;;  %s8410_s19 = smov 0  }
   0xa   :  { %s8412_s20 = smov 0   ;;  %s8414_s21 = smov 0  }
   0xb   :  { %s8416_s22 = smov 0   ;;  %s8418_s23 = smov 0  }
   0xc   :  { %s8420_s24 = smov 0   ;;  %s8422_s25 = smov 0  }
   0xd   :  { %s8424_s26 = smov 0   ;;  %s8426_s27 = smov 0  }
   0xe   :  { %s8428_s28 = smov 0   ;;  %s8430_s29 = smov 0  }
   0xf   :  { %s8432_s30 = smov 0   ;;  %s8434_s6 = smov 0  }
  0x10 LB: > { %10566 = sst [smem:[#allocation21_spill]] %s8308_s18  ;;  %s8477_s7 = sadd.s32 4294967295, %s8360_s6   ;;  %s8360_s6 = sphi %s8434_s6, %s25_s6   ;;  %s8356_s30 = sphi %s8432_s30, %s10621_s30   ;;  %s8352_s29 = sphi %s8430_s29, %s10620_s29   ;;  %s8348_s28 = sphi %s8428_s28, %s10619_s28   ;;  %s8344_s27 = sphi %s8426_s27, %s10618_s27   ;;  %s8340_s26 = sphi %s8424_s26, %s10617_s26   ;;  %s8336_s25 = sphi %s8422_s25, %s10616_s25   ;;  %s8332_s24 = sphi %s8420_s24, %s10615_s24   ;;  %s8328_s23 = sphi %s8418_s23, %s10614_s23   ;;  %s8324_s22 = sphi %s8416_s22, %s10613_s22   ;;  %s8320_s21 = sphi %s8414_s21, %s10612_s21   ;;  %s8316_s20 = sphi %s8412_s20, %s10607_s20   ;;  %s8312_s19 = sphi %s8410_s19, %s10606_s19   ;;  %s8308_s18 = sphi %s8408_s18, %s10605_s18  }
  0x11   : > { %10567 = sst [smem:[#allocation22_spill]] %s8312_s19  ;;  %s34_s9 = sadd.s32 1, %s8352_s29 }
  0x12   : > { %10568 = sst [smem:[#allocation23_spill]] %s8316_s20  ;;  %s37_s10 = sadd.s32 1, %s8356_s30 }
  0x13   : > { %10569 = sst [smem:[#allocation24_spill]] %s8344_s27  ;;  %p35_p0 = scmp.ge.s32.totalorder %s34_s9, 2 }
  0x14   : > { %10570 = sst [smem:[#allocation25_spill]] %s8348_s28  ;;  %s46_s11 = sadd.s32 1, %s8340_s26 }
  0x15   : > { %p53_p1 = scmp.ne.s32.totalorder %s8340_s26, %s8336_s25  ;;  %p54_p2 = scmp.eq.s32.totalorder %s8360_s6, 0 }
  0x16   : > { %s10623_s9 = smov (%p35_p0, %s34_s9), 0  ;;  %s10625_s10 = smov (!%p35_p0, %s37_s10), %s8356_s30 }
  0x17   : > { %10571 = sst [smem:[#allocation26_spill]] %s10623_s9  ;;  %s42_s12 = ssub.s32 %s8352_s29, %s10623_s9 }
  0x18   : > { %p8493_p3 = por %p54_p2, %p53_p1  ;;  %p39_p4 = scmp.ge.s32.totalorder %s10625_s10, 2 }
  0x19   : > { %p59_p5 = scmp.ne.s32.totalorder %s8336_s25, %s8332_s24  ;;  %p10554_p6 = scmp.eq.s32.totalorder %s8477_s7, 0 }
  0x1a   : > { %p70_p7 = scmp.eq.s32.totalorder %s42_s12, 0  ;;  %s10627_s10 = smov (%p39_p4, %s10625_s10), 0 }
  0x1b   : > { %10573 = sst [smem:[#allocation27_spill]] %s10627_s10  ;;  %p8503_p8 = por %p10554_p6, %p59_p5 }
  0x1c   : > { %s72_s15 = sadd.s32 1, %s8328_s23  ;;  %s41_s16 = ssub.s32 %s8356_s30, %s10627_s10 }
  0x1d   : > { %p79_p9 = scmp.ne.s32.totalorder %s8328_s23, %s8324_s22  ;;  %s43_s17 = sor.u32 %s42_s12, %s41_s16 }
  0x1e   : > { %p85_p10 = scmp.ne.s32.totalorder %s8324_s22, %s8320_s21  ;;  %p44_p11 = scmp.eq.s32.totalorder %s43_s17, 0 }
  0x1f   : > { %p8516_p12 = por %p79_p9, %p54_p2  ;;  %p159_p0 = scmp.eq.s32.totalorder %s41_s16, 0 }
  0x20   : > { %s8521_s8 = scalar_select %p70_p7, %s8328_s23, %s72_s15  }
  0x21   : > { %s8524_s9 = scalar_select %p44_p11, %s8340_s26, %s46_s11  }
  0x22   : > { %10576 = sst [smem:[#allocation28_spill]] %s8521_s8  ;;  %p8528_p13 = por %p85_p10, %p10554_p6 }
  0x23   : > { %10577 = sst [smem:[#allocation29_spill]] %s8524_s9  ;;  %s161_s10 = sadd.s32 1, %s8316_s20 }
  0x24   : > { %s10578_s5 = scalar_select %p8528_p13, 1, 0 }
  0x25   : > { %p171_p1 = scmp.ne.s32.totalorder %s8316_s20, %s8312_s19  ;;  %p172_p4 = scmp.eq.s32.totalorder %s8477_s7, 3 }
  0x26   : > { %10579 = sst [smem:[#allocation30_spill]] %s10578_s5  ;;  %p177_p2 = scmp.ne.s32.totalorder %s8312_s19, %s8308_s18 }
  0x27   : > { %s8536_s21 = scalar_select %p159_p0, %s8316_s20, %s161_s10  }
  0x28   : > { %s10581_s12 = sadd.s32 4294967294, %s8360_s6   ;;  %p5799_p9 = scmp.ge.s32.totalorder %s8360_s6, 1 }
  0x29   : > { %10580 = sst [smem:[#allocation31_spill]] %s8536_s21  ;;  %p178_p5 = scmp.eq.s32.totalorder %s10581_s12, 3 }
  0x2a   : > { %p8544_p7 = por %p172_p4, %p171_p1  ;;  %p185_p11 = scmp.lt.s32.totalorder %s8360_s6, 5 }
  0x2b   : > { %p8549_p10 = por %p178_p5, %p177_p2  ;;  %s10587_s3 = sld [smem:[#allocation34_spill]] }
  0x2c   : > { %s10582_s15 = scalar_select %p8544_p7, 1, 0 }
  0x2d   : > { %s10584_s11 = scalar_select %p8549_p10, 1, 0 }
  0x2e   : > { %10583 = sst [smem:[#allocation32_spill]] %s10582_s15  ;;  %p8553_p6 = pnand %p5799_p9, %p185_p11 }
  0x2f   : > { %10585 = sst [smem:[#allocation33_spill]] %s10584_s11  ;;  %s8362_s12 = smov [#allocation9]  }
  0x30   : > { %p7934_p0 = pneg %p8553_p6  ;;  %s210_s8 = sshll.u32 %s8362_s12, 4  ;;  %s211_s8 = int_to_ptr.vmem [resolvable:$true] %s210_s8 }
  0x31   : > { %s208_s9 = sshll.u32 %s10587_s3, 4  ;;  %p10588_p1 = scmp.eq.s32.totalorder %s8477_s7, 0  ;;  %s209_s9 = int_to_ptr.hbm [resolvable:$true] %s208_s9 }
  0x32   : > { %s8363_s20 = smov 64   ;;  %s8364_s11 = smov 4  }
  0x33   : > { %p8564_p4 = pnand %p7934_p0, %p10588_p1  ;;  %s197_s3 = sshll.u32 %s10547_s2, 4  ;;  %s198_s3 = int_to_ptr.hbm [resolvable:$true] %s197_s3 }
  0x34   : > { %s8365_s18 = smov [#allocation8]   ;;  %s223_s27 = sshll.u32 %s10549_s4, 4  ;;  %s224_s27 = int_to_ptr.hbm [resolvable:$true] %s223_s27 }
  0x35   : > { %7940 = dma.hbm_to_vmem [thread:$0]  (!%p8564_p4), %s209_s9, 4096, %s211_s8, [#allocation10], %s8363_s20, %s8363_s20, %s8364_s11  }
  0x36   : > { %s199_s12 = sshll.u32 %s8365_s18, 4  ;;  %s8366_s19 = smov [#allocation11]   ;;  %s200_s12 = int_to_ptr.vmem [resolvable:$true] %s199_s12 }
  0x37   : > { %7937 = dma.hbm_to_vmem [thread:$0]  (!%p8564_p4), %s198_s3, 64, %s200_s12, [#allocation7]  }
  0x38   : > { %s225_s5 = sshll.u32 %s8366_s19, 4  ;;  %p5803_p2 = scmp.ge.s32.totalorder %s8360_s6, 4  ;;  %s226_s5 = int_to_ptr.vmem [resolvable:$true] %s225_s5 }
  0x39   : > { %7943 = dma.hbm_to_vmem [thread:$0]  (!%p8564_p4), %s224_s27, 16, %s226_s5, [#allocation10]  }
  0x3a   : > { %232 = sbr.rel (%p5803_p2) target bundleno = 80 (0x50), region = 28  ;;  %s236_s18 = sand.u32 (!%p5803_p2), 1, %s8340_s26  }
  0x3b   : > { %s7903_s20 = smul.u32 (!%p5803_p2), 26, %s8356_s30  ;;  %s237_s5 = scalar_lea.sflag (!%p5803_p2), [#allocation4], %s236_s18 }
  0x3c   : > { %s7902_s28 = smul.u32 (!%p5803_p2), 52, %s236_s18  ;;  %s8367_s27 = smov (!%p5803_p2), 128  }
  0x3d   : > { %s244_s8 = sadd.s32 (!%p5803_p2), %s8352_s29, %s7903_s20  ;;  %s8368_s17 = smov (!%p5803_p2), 64  }
  0x3e   : > { %s5804_s9 = sshll.u32 (!%p5803_p2), %s244_s8, 2  ;;  %s240_s19 = scalar_lea.vmem (!%p5803_p2), [#allocation3], %s7902_s28 }
  0x3f   : > { %s246_s11 = scalar_lea.hbm %s10545_s0, %s5804_s9  ;;  %s249_s10 = sshll.u32 %s240_s19, 4  ;;  %s250_s10 = int_to_ptr.vmem [resolvable:$true] %s249_s10 }
  0x40   : > { %s247_s21 = sshll.u32 %s246_s11, 4  ;;  %s8369_s12 = smov 4   ;;  %s248_s21 = int_to_ptr.hbm [resolvable:$true] %s247_s21 }
  0x41   : > { %7915 = dma.hbm_to_vmem [thread:$0]  (%p8493_p3), %s248_s21, 832, %s250_s10, %s237_s5, %s8367_s27, %s8368_s17, %s8369_s12  }
  0x42   : > { %s261_s20 = sand.u32 1, %s8328_s23   ;;  %s259_s8 = sand.u32 1, %s8360_s6  }
  0x43   : > { %s7904_s28 = smul.u32 2304, %s261_s20  ;;  %s7536_s9 = sshll.u32 %s8352_s29, 8 }
  0x44   : > { %s269_s18 = scalar_lea.hbm %s10546_s1, %s7536_s9  ;;  %s8370_s5 = smov 8192  }
  0x45   : > { %s7916_s11 = scalar_select %p8516_p12, [#allocation0], [#allocation15] }
  0x46   : > { %s282_s13 = sshll.u32 %s269_s18, 4  ;;  %s263_s10 = scalar_lea.vmem [#allocation6], %s7904_s28  ;;  %s283_s13 = int_to_ptr.hbm [resolvable:$true] %s282_s13 }
  0x47   : > { %s274_s19 = sld [smem:[%s7916_s11]]   ;;  %s284_s21 = sshll.u32 %s263_s10, 4  ;;  %s285_s21 = int_to_ptr.vmem [resolvable:$true] %s284_s21 }
  0x48   : > { %7917 = sst [smem:[#allocation14]] (%p8516_p12), %s8370_s5  ;;  %s8371_s27 = smov 4096  }
  0x49   : > { %7918 = sst [smem:[#allocation14 + $0x1]] (%p8516_p12), %s8371_s27  ;;  %s8372_s17 = smov 16  }
  0x4a   : > { %7919 = sst [smem:[#allocation14 + $0x2]] (%p8516_p12), %s8372_s17  ;;  %s8373_s12 = smov 256  }
  0x4b   : > { %7920 = sst [smem:[#allocation14 + $0x3]] (%p8516_p12), %s8373_s12  ;;  %s260_s9 = scalar_lea.sflag [#allocation7], %s259_s8 }
  0x4c   : > { %7921 = sst [smem:[#allocation14 + $0x4]] (%p8516_p12), %s8373_s12  ;;  %s8374_s15 = smov [#allocation13]  }
  0x4d   : > { %s5808_s20 = sshll.u32 %s274_s19, 26  ;;  %7922 = sst [smem:[#allocation14 + $0x5]] (%p8516_p12), %s8372_s17 }
  0x4e   : > { %s5809_s28 = sadd.s32 134217728, %s5808_s20 }
  0x4f   : > { %7923 = dma.general (%p8516_p12), %s283_s13, 36864, %s285_s21, %s260_s9, %s8374_s15, [#allocation14], %s5809_s28, 0  }
  0x50 PF: > { %309 = sbr.rel (%p8553_p6) target bundleno = 1304 (0x518), region = 40  ;;  %s311_s3 = sand.u32 (!%p8553_p6), 1, %s8336_s25  }
  0x51   : > { %s7905_s18 = smul.u32 (!%p8553_p6), 52, %s311_s3  ;;  %s312_s11 = scalar_lea.sflag (!%p8553_p6), [#allocation4], %s311_s3 }
  0x53   : > { %s8614_s10 = scalar_lea.vmem (!%p8553_p6), [#allocation3], %s7905_s18 }
  0x55   : > { %8287 = dma.done.wait (%p8503_p8), %s312_s11, 832  }
  0x56   : > { %8289 = vsyncadd (%p8503_p8), %s312_s11, 4294966464  ;;  %s321_s8 = sand.u32 1, %s8477_s7   ;;  %s323_s13 = sand.u32 1, %s8324_s22  }
  0x57   : > { %s7906_s19 = smul.u32 2304, %s323_s13  ;;  %s322_s16 = scalar_lea.sflag [#allocation7], %s321_s8 }
  0x59   : > { %s8622_s21 = scalar_lea.vmem [#allocation6], %s7906_s19 }
  0x5a   : > { %8291 = dma.done.wait (%p8528_p13), %s322_s16, 36864  }
  0x5b   : > { %8293 = vsyncadd (%p8528_p13), %s322_s16, 4294930432  ;;  %p10591_p3 = scmp.eq.s32.totalorder %s8477_s7, 0 }
  0x5d   : > { %8295 = dma.done.wait (%p10591_p3), [#allocation7], 64   ;;  %p10592_p6 = pmov %p10591_p3 }
  0x5e   : > { %p10593_p8 = pmov %p10591_p3 }
  0x5f   : > { %8297 = vsyncadd (%p10592_p6), [#allocation7], 4294967232 }
  0x60   : > { %8299 = dma.done.wait (%p10593_p8), [#allocation10], 4112   ;;  %p10594_p12 = pmov %p10591_p3 }
  0x61   : > { %s10595_s14 = sld [smem:[#allocation22_spill]] }
  0x62   : > { %8301 = vsyncadd (%p10594_p12), [#allocation10], 4294963184  ;;  %s10596_s12 = sld [smem:[#allocation24_spill]] }
  0x67   : > { %s370_s5 = sand.u32 1, %s10595_s14  }
  0x68   : > { %s7907_s27 = smul.u32 80, %s370_s5  ;;  %p5814_p13 = scmp.ne.s32.totalorder %s10596_s12, 0 }
  0x6a   : > { %s8639_s17 = scalar_lea.vmem [#allocation12], %s7907_s27  ;;  %377 = sbr.rel (%p5814_p13) target bundleno = 152 (0x98), region = 64 }
  0x6f   : > { %v8375_v0 = vmov 0.0  }
  0x70   : > { %378 = vst [vmem:[#allocation2 + $0xb0] sm:$0xff] %v8375_v0 }
  0x71   : > { %379 = vst [vmem:[#allocation2 + $0xd0] sm:$0xff] %v8375_v0 }
  0x72   : > { %380 = vst [vmem:[#allocation2 + $0x10] sm:$0xff] %v8375_v0 }
  0x73   : > { %381 = vst [vmem:[#allocation2 + $0x48] sm:$0xff] %v8375_v0 }
  0x74   : > { %382 = vst [vmem:[#allocation2 + $0x120] sm:$0xff] %v8375_v0 }
  0x75   : > { %383 = vst [vmem:[#allocation2 + $0x38] sm:$0xff] %v8375_v0 }
  0x76   : > { %384 = vst [vmem:[#allocation2 + $0xf8] sm:$0xff] %v8375_v0 }
  0x77   : > { %385 = vst [vmem:[#allocation2 + $0x100] sm:$0xff] %v8375_v0 }
  0x78   : > { %386 = vst [vmem:[#allocation2 + $0x80] sm:$0xff] %v8375_v0 }
  0x79   : > { %387 = vst [vmem:[#allocation2 + $0x108] sm:$0xff] %v8375_v0 }
  0x7a   : > { %388 = vst [vmem:[#allocation2 + $0x138] sm:$0xff] %v8375_v0 }
  0x7b   : > { %389 = vst [vmem:[#allocation2 + $0xf0] sm:$0xff] %v8375_v0 }
  0x7c   : > { %390 = vst [vmem:[#allocation2 + $0x18] sm:$0xff] %v8375_v0 }
  0x7d   : > { %391 = vst [vmem:[#allocation2 + $0xc8] sm:$0xff] %v8375_v0 }
  0x7e   : > { %392 = vst [vmem:[#allocation2 + $0x70] sm:$0xff] %v8375_v0 }
  0x7f   : > { %393 = vst [vmem:[#allocation2 + $0x20] sm:$0xff] %v8375_v0 }
  0x80   : > { %394 = vst [vmem:[#allocation2 + $0x128] sm:$0xff] %v8375_v0 }
  0x81   : > { %395 = vst [vmem:[#allocation2 + $0x110] sm:$0xff] %v8375_v0 }
  0x82   : > { %396 = vst [vmem:[#allocation2 + $0x8] sm:$0xff] %v8375_v0 }
  0x83   : > { %397 = vst [vmem:[#allocation2 + $0x98] sm:$0xff] %v8375_v0 }
  0x84   : > { %398 = vst [vmem:[#allocation2 + $0xa8] sm:$0xff] %v8375_v0 }
  0x85   : > { %399 = vst [vmem:[#allocation2 + $0x90] sm:$0xff] %v8375_v0 }
  0x86   : > { %400 = vst [vmem:[#allocation2 + $0xe0] sm:$0xff] %v8375_v0 }
  0x87   : > { %401 = vst [vmem:[#allocation2 + $0x88] sm:$0xff] %v8375_v0 }
  0x88   : > { %402 = vst [vmem:[#allocation2 + $0xc0] sm:$0xff] %v8375_v0 }
  0x89   : > { %403 = vst [vmem:[#allocation2 + $0x118] sm:$0xff] %v8375_v0 }
  0x8a   : > { %404 = vst [vmem:[#allocation2 + $0xd8] sm:$0xff] %v8375_v0 }
  0x8b   : > { %405 = vst [vmem:[#allocation2 + $0xa0] sm:$0xff] %v8375_v0 }
  0x8c   : > { %406 = vst [vmem:[#allocation2 + $0x68] sm:$0xff] %v8375_v0 }
  0x8d   : > { %407 = vst [vmem:[#allocation2 + $0x130] sm:$0xff] %v8375_v0 }
  0x8e   : > { %408 = vst [vmem:[#allocation2 + $0x50] sm:$0xff] %v8375_v0 }
  0x8f   : > { %409 = vst [vmem:[#allocation2 + $0xe8] sm:$0xff] %v8375_v0 }
  0x90   : > { %410 = vst [vmem:[#allocation2 + $0x58] sm:$0xff] %v8375_v0 }
  0x91   : > { %411 = vst [vmem:[#allocation2 + $0x78] sm:$0xff] %v8375_v0 }
  0x92   : > { %412 = vst [vmem:[#allocation2 + $0x30] sm:$0xff] %v8375_v0 }
  0x93   : > { %413 = vst [vmem:[#allocation2 + $0x40] sm:$0xff] %v8375_v0 }
  0x94   : > { %414 = vst [vmem:[#allocation2 + $0x28] sm:$0xff] %v8375_v0 }
  0x95   : > { %415 = vst [vmem:[#allocation2] sm:$0xff] %v8375_v0 }
  0x96   : > { %416 = vst [vmem:[#allocation2 + $0xb8] sm:$0xff] %v8375_v0 }
  0x97   : > { %417 = vst [vmem:[#allocation2 + $0x60] sm:$0xff] %v8375_v0 }
  0x98 PF: > { %v5949_v1 = vld [vmem:[%s8622_s21 + $0xe0] sm:$0xf]  ;;  %v7572_v2 = vld [vmem:[%s8622_s21 + $0xec] sm:$0xf0]  ;;  %v7570_v3 = vld [vmem:[%s8622_s21 + $0xe4] sm:$0xf] }
  0x99   : > { %v5950_v4 = vor.u32 %v7572_v2, %v5949_v1  ;;  %v5951_v5 = vld [vmem:[%s8622_s21 + $0xf0] sm:$0xf0]  ;;  %v5957_v6 = vld [vmem:[%s8622_s21 + $0xe8] sm:$0xf]  ;;  %v7573_v7 = vld [vmem:[%s8622_s21 + $0xf4] sm:$0xf0] }
  0x9a   : > { %v5954_v8 = vor.u32 %v7570_v3, %v5951_v5  ;;  %v5958_v9 = vor.u32 %v7573_v7, %v5957_v6  ;;  %v7571_v10 = vld [vmem:[%s8622_s21 + $0xec] sm:$0xf]  ;;  %v5959_v11 = vld [vmem:[%s8622_s21 + $0xf8] sm:$0xf0]  ;;  %v5933_v12 = vld [vmem:[%s8622_s21 + $0xc0] sm:$0xf] }
  0x9b   : > { %690 = vmatpush.bf16.msra.mxu0 %v5950_v4  ;;  %v5962_v13 = vor.u32 %v7571_v10, %v5959_v11  ;;  %v7568_v14 = vld [vmem:[%s8622_s21 + $0xcc] sm:$0xf0]  ;;  %v7566_v15 = vld [vmem:[%s8622_s21 + $0xc4] sm:$0xf]  ;;  %v5935_v16 = vld [vmem:[%s8622_s21 + $0xd0] sm:$0xf0] }
  0x9c   : > { %724 = vmatpush.bf16.msra.mxu1 %v5954_v8  ;;  %758 = vmatpush.bf16.msra.mxu2 %v5958_v9  ;;  %v5934_v17 = vor.u32 %v7568_v14, %v5933_v12  ;;  %v5938_v18 = vor.u32 %v7566_v15, %v5935_v16  ;;  %v5941_v19 = vld [vmem:[%s8622_s21 + $0xc8] sm:$0xf]  ;;  %v7569_v20 = vld [vmem:[%s8622_s21 + $0xd4] sm:$0xf0]  ;;  %v7567_v21 = vld [vmem:[%s8622_s21 + $0xcc] sm:$0xf] }
  0x9d   : > { %792 = vmatpush.bf16.msra.mxu3 %v5962_v13  ;;  %v5942_v22 = vor.u32 %v7569_v20, %v5941_v19  ;;  %v5943_v23 = vld [vmem:[%s8622_s21 + $0xd8] sm:$0xf0]  ;;  %v5917_v24 = vld [vmem:[%s8622_s21 + $0xa0] sm:$0xf]  ;;  %v7564_v25 = vld [vmem:[%s8622_s21 + $0xac] sm:$0xf0] }
  0x9e   : > { %v5946_v26 = vor.u32 %v7567_v21, %v5943_v23  ;;  %v7562_v27 = vld [vmem:[%s8622_s21 + $0xa4] sm:$0xf]  ;;  %v5919_v28 = vld [vmem:[%s8622_s21 + $0xb0] sm:$0xf0]  ;;  %v5925_v29 = vld [vmem:[%s8622_s21 + $0xa8] sm:$0xf]  ;;  %v5918_v30 = vor.u32 %v7564_v25, %v5917_v24 }
  0x9f   : > { %691 = vmatpush.bf16.msra.mxu0 %v5934_v17  ;;  %v7565_v31 = vld [vmem:[%s8622_s21 + $0xb4] sm:$0xf0]  ;;  %v7563_v32 = vld [vmem:[%s8622_s21 + $0xac] sm:$0xf]  ;;  %v5927_v33 = vld [vmem:[%s8622_s21 + $0xb8] sm:$0xf0]  ;;  %v5922_v34 = vor.u32 %v7562_v27, %v5919_v28 }
  0xa0   : > { %725 = vmatpush.bf16.msra.mxu1 %v5938_v18  ;;  %759 = vmatpush.bf16.msra.mxu2 %v5942_v22  ;;  %v5926_v35 = vor.u32 %v7565_v31, %v5925_v29  ;;  %v5901_v36 = vld [vmem:[%s8622_s21 + $0x80] sm:$0xf]  ;;  %v7560_v37 = vld [vmem:[%s8622_s21 + $0x8c] sm:$0xf0]  ;;  %v7558_v38 = vld [vmem:[%s8622_s21 + $0x84] sm:$0xf]  ;;  %v5930_v39 = vor.u32 %v7563_v32, %v5927_v33 }
  0xa1   : > { %793 = vmatpush.bf16.msra.mxu3 %v5946_v26  ;;  %v5903_v40 = vld [vmem:[%s8622_s21 + $0x90] sm:$0xf0]  ;;  %v5909_v41 = vld [vmem:[%s8622_s21 + $0x88] sm:$0xf]  ;;  %v7561_v42 = vld [vmem:[%s8622_s21 + $0x94] sm:$0xf0]  ;;  %v5902_v45 = vor.u32 %v7560_v37, %v5901_v36 }
  0xa2   : > { %v7559_v43 = vld [vmem:[%s8622_s21 + $0x8c] sm:$0xf]  ;;  %v5911_v44 = vld [vmem:[%s8622_s21 + $0x98] sm:$0xf0]  ;;  %v5906_v46 = vor.u32 %v7558_v38, %v5903_v40  ;;  %v5910_v47 = vor.u32 %v7561_v42, %v5909_v41  ;;  %v5885_v48 = vld [vmem:[%s8622_s21 + $0x60] sm:$0xf] }
  0xa3   : > { %692 = vmatpush.bf16.msra.mxu0 %v5918_v30  ;;  %v7556_v49 = vld [vmem:[%s8622_s21 + $0x6c] sm:$0xf0]  ;;  %v7554_v50 = vld [vmem:[%s8622_s21 + $0x64] sm:$0xf]  ;;  %v5914_v51 = vor.u32 %v7559_v43, %v5911_v44  ;;  %v5887_v52 = vld [vmem:[%s8622_s21 + $0x70] sm:$0xf0] }
  0xa4   : > { %726 = vmatpush.bf16.msra.mxu1 %v5922_v34  ;;  %760 = vmatpush.bf16.msra.mxu2 %v5926_v35  ;;  %v5893_v53 = vld [vmem:[%s8622_s21 + $0x68] sm:$0xf]  ;;  %v7557_v54 = vld [vmem:[%s8622_s21 + $0x74] sm:$0xf0]  ;;  %v7555_v55 = vld [vmem:[%s8622_s21 + $0x6c] sm:$0xf]  ;;  %v5886_v57 = vor.u32 %v7556_v49, %v5885_v48  ;;  %v5890_v58 = vor.u32 %v7554_v50, %v5887_v52 }
  0xa5   : > { %794 = vmatpush.bf16.msra.mxu3 %v5930_v39  ;;  %v5895_v56 = vld [vmem:[%s8622_s21 + $0x78] sm:$0xf0]  ;;  %v5894_v59 = vor.u32 %v7557_v54, %v5893_v53  ;;  %v5869_v60 = vld [vmem:[%s8622_s21 + $0x40] sm:$0xf]  ;;  %v7552_v61 = vld [vmem:[%s8622_s21 + $0x4c] sm:$0xf0] }
  0xa6   : > { %v7550_v62 = vld [vmem:[%s8622_s21 + $0x44] sm:$0xf]  ;;  %v5898_v63 = vor.u32 %v7555_v55, %v5895_v56  ;;  %v5871_v0 = vld [vmem:[%s8622_s21 + $0x50] sm:$0xf0]  ;;  %v5877_v1 = vld [vmem:[%s8622_s21 + $0x48] sm:$0xf]  ;;  %v5870_v5 = vor.u32 %v7552_v61, %v5869_v60 }
  0xa7   : > { %693 = vmatpush.bf16.msra.mxu0 %v5902_v45  ;;  %v7553_v2 = vld [vmem:[%s8622_s21 + $0x54] sm:$0xf0]  ;;  %v7551_v3 = vld [vmem:[%s8622_s21 + $0x4c] sm:$0xf]  ;;  %v5879_v4 = vld [vmem:[%s8622_s21 + $0x58] sm:$0xf0]  ;;  %v5874_v6 = vor.u32 %v7550_v62, %v5871_v0 }
  0xa8   : > { %727 = vmatpush.bf16.msra.mxu1 %v5906_v46  ;;  %761 = vmatpush.bf16.msra.mxu2 %v5910_v47  ;;  %v5878_v7 = vor.u32 %v7553_v2, %v5877_v1  ;;  %v5853_v8 = vld [vmem:[%s8622_s21 + $0x20] sm:$0xf]  ;;  %v7548_v9 = vld [vmem:[%s8622_s21 + $0x2c] sm:$0xf0]  ;;  %v7546_v10 = vld [vmem:[%s8622_s21 + $0x24] sm:$0xf]  ;;  %v5882_v11 = vor.u32 %v7551_v3, %v5879_v4 }
  0xa9   : > { %795 = vmatpush.bf16.msra.mxu3 %v5914_v51  ;;  %v5855_v12 = vld [vmem:[%s8622_s21 + $0x30] sm:$0xf0]  ;;  %v5861_v13 = vld [vmem:[%s8622_s21 + $0x28] sm:$0xf]  ;;  %v7549_v14 = vld [vmem:[%s8622_s21 + $0x34] sm:$0xf0]  ;;  %v5854_v17 = vor.u32 %v7548_v9, %v5853_v8 }
  0xaa   : > { %v7547_v15 = vld [vmem:[%s8622_s21 + $0x2c] sm:$0xf]  ;;  %v5863_v16 = vld [vmem:[%s8622_s21 + $0x38] sm:$0xf0]  ;;  %v5837_v18 = vld [vmem:[%s8622_s21] sm:$0xf]  ;;  %v5858_v19 = vor.u32 %v7546_v10, %v5855_v12  ;;  %v5862_v20 = vor.u32 %v7549_v14, %v5861_v13 }
  0xab   : > { %694 = vmatpush.bf16.msra.mxu0 %v5886_v57  ;;  %v7544_v21 = vld [vmem:[%s8622_s21 + $0xc] sm:$0xf0]  ;;  %v7542_v22 = vld [vmem:[%s8622_s21 + $0x4] sm:$0xf]  ;;  %v5839_v23 = vld [vmem:[%s8622_s21 + $0x10] sm:$0xf0]  ;;  %v5866_v24 = vor.u32 %v7547_v15, %v5863_v16 }
  0xac   : > { %728 = vmatpush.bf16.msra.mxu1 %v5890_v58  ;;  %762 = vmatpush.bf16.msra.mxu2 %v5894_v59  ;;  %v5845_v25 = vld [vmem:[%s8622_s21 + $0x8] sm:$0xf]  ;;  %v7545_v26 = vld [vmem:[%s8622_s21 + $0x14] sm:$0xf0]  ;;  %v7543_v27 = vld [vmem:[%s8622_s21 + $0xc] sm:$0xf]  ;;  %v5838_v31 = vor.u32 %v7544_v21, %v5837_v18  ;;  %v5842_v34 = vor.u32 %v7542_v22, %v5839_v23 }
  0xad   : > { %796 = vmatpush.bf16.msra.mxu3 %v5898_v63  ;;  %v5847_v28 = vld [vmem:[%s8622_s21 + $0x18] sm:$0xf0]  ;;  %v6137_v29 = vld [vmem:[%s8622_s21 + $0x1e8] sm:$0xf]  ;;  %v7610_v30 = vld [vmem:[%s8622_s21 + $0x1f4] sm:$0xf0]  ;;  %v5846_v35 = vor.u32 %v7545_v26, %v5845_v25 }
  0xae   : > { %v7608_v32 = vld [vmem:[%s8622_s21 + $0x1ec] sm:$0xf]  ;;  %v6139_v33 = vld [vmem:[%s8622_s21 + $0x1f8] sm:$0xf0]  ;;  %v5850_v37 = vor.u32 %v7543_v27, %v5847_v28  ;;  %v6138_v38 = vor.u32 %v7610_v30, %v6137_v29  ;;  %v6129_v39 = vld [vmem:[%s8622_s21 + $0x1e0] sm:$0xf] }
  0xaf   : > { %695 = vmatpush.bf16.msra.mxu0 %v5870_v5  ;;  %v7537_v36 = vld [vmem:[%s8614_s10] sm:$0xff]  ;;  %v7607_v41 = vld [vmem:[%s8622_s21 + $0x1e4] sm:$0xf]  ;;  %v6142_v42 = vor.u32 %v7608_v32, %v6139_v33  ;;  %v6131_v43 = vld [vmem:[%s8622_s21 + $0x1f0] sm:$0xf0]  ;;  %vm1556_vm1 = vcmask 1046528  }
  0xb0   : > { %729 = vmatpush.bf16.msra.mxu1 %v5874_v6  ;;  %763 = vmatpush.bf16.msra.mxu2 %v5878_v7  ;;  %v7609_v40 = vld [vmem:[%s8622_s21 + $0x1ec] sm:$0xf0]  ;;  %v6121_v44 = vld [vmem:[%s8622_s21 + $0x1c8] sm:$0xf]  ;;  %v7606_v45 = vld [vmem:[%s8622_s21 + $0x1d4] sm:$0xf0]  ;;  %v6134_v49 = vor.u32 %v7607_v41, %v6131_v43 }
  0xb1   : > { %797 = vmatpush.bf16.msra.mxu3 %v5882_v11  ;;  %v7604_v46 = vld [vmem:[%s8622_s21 + $0x1cc] sm:$0xf]  ;;  %v6123_v47 = vld [vmem:[%s8622_s21 + $0x1d8] sm:$0xf0]  ;;  %v6130_v48 = vor.u32 %v7609_v40, %v6129_v39  ;;  %v6122_v50 = vor.u32 %v7606_v45, %v6121_v44  ;;  %v6113_v51 = vld [vmem:[%s8622_s21 + $0x1c0] sm:$0xf] }
  0xb2   : > { %v7605_v52 = vld [vmem:[%s8622_s21 + $0x1cc] sm:$0xf0]  ;;  %v7603_v53 = vld [vmem:[%s8622_s21 + $0x1c4] sm:$0xf]  ;;  %v6126_v54 = vor.u32 %v7604_v46, %v6123_v47  ;;  %v6115_v55 = vld [vmem:[%s8622_s21 + $0x1d0] sm:$0xf0] }
  0xb3   : > { %696 = vmatpush.bf16.msra.mxu0 %v5854_v17  ;;  %v6105_v56 = vld [vmem:[%s8622_s21 + $0x1a8] sm:$0xf]  ;;  %v7602_v57 = vld [vmem:[%s8622_s21 + $0x1b4] sm:$0xf0]  ;;  %v7600_v58 = vld [vmem:[%s8622_s21 + $0x1ac] sm:$0xf]  ;;  %v6114_v60 = vor.u32 %v7605_v52, %v6113_v51  ;;  %v6118_v61 = vor.u32 %v7603_v53, %v6115_v55 }
  0xb4   : > { %730 = vmatpush.bf16.msra.mxu1 %v5858_v19  ;;  %764 = vmatpush.bf16.msra.mxu2 %v5862_v20  ;;  %v6107_v59 = vld [vmem:[%s8622_s21 + $0x1b8] sm:$0xf0]  ;;  %v6106_v62 = vor.u32 %v7602_v57, %v6105_v56  ;;  %v6097_v63 = vld [vmem:[%s8622_s21 + $0x1a0] sm:$0xf]  ;;  %v7601_v0 = vld [vmem:[%s8622_s21 + $0x1ac] sm:$0xf0] }
  0xb5   : > { %798 = vmatpush.bf16.msra.mxu3 %v5866_v24  ;;  %v7599_v1 = vld [vmem:[%s8622_s21 + $0x1a4] sm:$0xf]  ;;  %v6110_v2 = vor.u32 %v7600_v58, %v6107_v59  ;;  %v6099_v3 = vld [vmem:[%s8622_s21 + $0x1b0] sm:$0xf0]  ;;  %v6089_v4 = vld [vmem:[%s8622_s21 + $0x188] sm:$0xf]  ;;  %v6098_v8 = vor.u32 %v7601_v0, %v6097_v63 }
  0xb6   : > { %v7598_v5 = vld [vmem:[%s8622_s21 + $0x194] sm:$0xf0]  ;;  %v7596_v6 = vld [vmem:[%s8622_s21 + $0x18c] sm:$0xf]  ;;  %v6091_v7 = vld [vmem:[%s8622_s21 + $0x198] sm:$0xf0]  ;;  %v6102_v9 = vor.u32 %v7599_v1, %v6099_v3 }
  0xb7   : > { %697 = vmatpush.bf16.msra.mxu0 %v5838_v31  ;;  %v6090_v10 = vor.u32 %v7598_v5, %v6089_v4  ;;  %v6081_v11 = vld [vmem:[%s8622_s21 + $0x180] sm:$0xf]  ;;  %v7597_v12 = vld [vmem:[%s8622_s21 + $0x18c] sm:$0xf0]  ;;  %v7595_v13 = vld [vmem:[%s8622_s21 + $0x184] sm:$0xf]  ;;  %v6094_v14 = vor.u32 %v7596_v6, %v6091_v7 }
  0xb8   : > { %731 = vmatpush.bf16.msra.mxu1 %v5842_v34  ;;  %765 = vmatpush.bf16.msra.mxu2 %v5846_v35  ;;  %v6083_v15 = vld [vmem:[%s8622_s21 + $0x190] sm:$0xf0]  ;;  %v6073_v16 = vld [vmem:[%s8622_s21 + $0x168] sm:$0xf]  ;;  %v7594_v17 = vld [vmem:[%s8622_s21 + $0x174] sm:$0xf0]  ;;  %v6082_v20 = vor.u32 %v7597_v12, %v6081_v11 }
  0xb9   : > { %799 = vmatpush.bf16.msra.mxu3 %v5850_v37  ;;  %v7592_v18 = vld [vmem:[%s8622_s21 + $0x16c] sm:$0xf]  ;;  %v6075_v19 = vld [vmem:[%s8622_s21 + $0x178] sm:$0xf0]  ;;  %v6086_v21 = vor.u32 %v7595_v13, %v6083_v15  ;;  %v6074_v22 = vor.u32 %v7594_v17, %v6073_v16  ;;  %v6065_v23 = vld [vmem:[%s8622_s21 + $0x160] sm:$0xf] }
  0xba   : > { %698 = vmatmul.bf16.vlgmr.msra.gmra.mxu0 %v7537_v36  ;;  %v7593_v24 = vld [vmem:[%s8622_s21 + $0x16c] sm:$0xf0]  ;;  %v7538_v25 = vld [vmem:[%s8614_s10 + $0x8] sm:$0xff]  ;;  %v6078_v26 = vor.u32 %v7592_v18, %v6075_v19  ;;  %v6057_v31 = vld [vmem:[%s8622_s21 + $0x148] sm:$0xf]  ;;  %vm3112_vm3 = vcmask 1045504  }
  0xbb   : > { %732 = vmatmul.bf16.vlgmr.msra.gmra.mxu1 %v7537_v36  ;;  %766 = vmatmul.bf16.vlgmr.msra.gmra.mxu2 %v7537_v36  ;;  %v7591_v27 = vld [vmem:[%s8622_s21 + $0x164] sm:$0xf]  ;;  %v6067_v28 = vld [vmem:[%s8622_s21 + $0x170] sm:$0xf0]  ;;  %v6066_v29 = vor.u32 %v7593_v24, %v6065_v23  ;;  %v7590_v32 = vld [vmem:[%s8622_s21 + $0x154] sm:$0xf0] }
  0xbc   : > { %1296 = vmatpush.bf16.msrb.mxu2 %v6138_v38  ;;  %800 = vmatmul.bf16.vlgmr.msra.gmra.mxu3 %v7537_v36  ;;  %v6070_v30 = vor.u32 %v7591_v27, %v6067_v28  ;;  %v7588_v33 = vld [vmem:[%s8622_s21 + $0x14c] sm:$0xf]  ;;  %v6058_v34 = vor.u32 %v7590_v32, %v6057_v31  ;;  %v6059_v35 = vld [vmem:[%s8622_s21 + $0x158] sm:$0xf0]  ;;  %v6049_v36 = vld [vmem:[%s8622_s21 + $0x140] sm:$0xf] }
  0xbd   : > { %1330 = vmatpush.bf16.msrb.mxu3 %v6142_v42  ;;  %1228 = vmatpush.bf16.msrb.mxu0 %v6130_v48  ;;  %v7589_v37 = vld [vmem:[%s8622_s21 + $0x14c] sm:$0xf0]  ;;  %v6062_v38 = vor.u32 %v7588_v33, %v6059_v35  ;;  %v7587_v40 = vld [vmem:[%s8622_s21 + $0x144] sm:$0xf]  ;;  %v6051_v41 = vld [vmem:[%s8622_s21 + $0x150] sm:$0xf0] }
  0xbe   : > { %1262 = vmatpush.bf16.msrb.mxu1 %v6134_v49  ;;  %v6050_v39 = vor.u32 %v7589_v37, %v6049_v36  ;;  %v6041_v42 = vld [vmem:[%s8622_s21 + $0x128] sm:$0xf]  ;;  %v6054_v43 = vor.u32 %v7587_v40, %v6051_v41  ;;  %v7586_v44 = vld [vmem:[%s8622_s21 + $0x134] sm:$0xf0]  ;;  %v7584_v45 = vld [vmem:[%s8622_s21 + $0x12c] sm:$0xf] }
  0xbf   : > { %v6043_v46 = vld [vmem:[%s8622_s21 + $0x138] sm:$0xf0]  ;;  %v6042_v47 = vor.u32 %v7586_v44, %v6041_v42  ;;  %v7585_v51 = vld [vmem:[%s8622_s21 + $0x12c] sm:$0xf0]  ;;  %v7583_v52 = vld [vmem:[%s8622_s21 + $0x124] sm:$0xf] }
  0xc0   : > { %1297 = vmatpush.bf16.msrb.mxu2 %v6122_v50  ;;  %v6046_v48 = vor.u32 %v7584_v45, %v6043_v46  ;;  %v7539_v49 = vld [vmem:[%s8614_s10 + $0x10] sm:$0xff]  ;;  %v7582_v56 = vld [vmem:[%s8622_s21 + $0x114] sm:$0xf0]  ;;  %v7581_v63 = vld [vmem:[%s8622_s21 + $0x10c] sm:$0xf0]  ;;  %vm4668_vm5 = vcmask 1044480  }
  0xc1   : > { %1331 = vmatpush.bf16.msrb.mxu3 %v6126_v54  ;;  %1229 = vmatpush.bf16.msrb.mxu0 %v6114_v60  ;;  %v6033_v50 = vld [vmem:[%s8622_s21 + $0x120] sm:$0xf]  ;;  %v6035_v54 = vld [vmem:[%s8622_s21 + $0x130] sm:$0xf0]  ;;  %v6025_v55 = vld [vmem:[%s8622_s21 + $0x108] sm:$0xf] }
  0xc2   : > { %1263 = vmatpush.bf16.msrb.mxu1 %v6118_v61  ;;  %v6034_v53 = vor.u32 %v7585_v51, %v6033_v50  ;;  %v6038_v57 = vor.u32 %v7583_v52, %v6035_v54  ;;  %v6026_v58 = vor.u32 %v7582_v56, %v6025_v55  ;;  %v7580_v59 = vld [vmem:[%s8622_s21 + $0x10c] sm:$0xf]  ;;  %v6027_v60 = vld [vmem:[%s8622_s21 + $0x118] sm:$0xf0]  ;;  %v6017_v61 = vld [vmem:[%s8622_s21 + $0x100] sm:$0xf] }
  0xc3   : > { %v7579_v0 = vld [vmem:[%s8622_s21 + $0x104] sm:$0xf]  ;;  %v6019_v1 = vld [vmem:[%s8622_s21 + $0x110] sm:$0xf0]  ;;  %v6317_v5 = vld [vmem:[%s8622_s21 + $0x2e8] sm:$0xf] }
  0xc4   : > { %1298 = vmatpush.bf16.msrb.mxu2 %v6106_v62  ;;  %v6030_v62 = vor.u32 %v7580_v59, %v6027_v60  ;;  %v6022_v3 = vor.u32 %v7579_v0, %v6019_v1  ;;  %v7540_v4 = vld [vmem:[%s8614_s10 + $0x18] sm:$0xff]  ;;  %v7647_v6 = vld [vmem:[%s8622_s21 + $0x2f4] sm:$0xf0]  ;;  %v7645_v7 = vld [vmem:[%s8622_s21 + $0x2ec] sm:$0xf]  ;;  %s10597_s7 = sld [smem:[#allocation24_spill]] }
  0xc5   : > { %1332 = vmatpush.bf16.msrb.mxu3 %v6110_v2  ;;  %1230 = vmatpush.bf16.msrb.mxu0 %v6098_v8  ;;  %v6018_v2 = vor.u32 %v7581_v63, %v6017_v61  ;;  %v6318_v8 = vor.u32 %v7647_v6, %v6317_v5  ;;  %v7646_v11 = vld [vmem:[%s8622_s21 + $0x2ec] sm:$0xf0]  ;;  %v6311_v15 = vld [vmem:[%s8622_s21 + $0x2f0] sm:$0xf0]  ;;  %v6301_v16 = vld [vmem:[%s8622_s21 + $0x2c8] sm:$0xf] }
  0xc6   : > { %1264 = vmatpush.bf16.msrb.mxu1 %v6102_v9  ;;  %v6319_v9 = vld [vmem:[%s8622_s21 + $0x2f8] sm:$0xf0]  ;;  %v7643_v18 = vld [vmem:[%s8622_s21 + $0x2d4] sm:$0xf0]  ;;  %v7641_v19 = vld [vmem:[%s8622_s21 + $0x2cc] sm:$0xf] }
  0xc7   : > { %v6322_v12 = vor.u32 %v7645_v7, %v6319_v9  ;;  %v7574_v23 = vld [vmem:[%s8614_s10] sm:$0xff]  ;;  %v7640_v32 = vld [vmem:[%s8622_s21 + $0x2c4] sm:$0xf]  ;;  %v6285_v35 = vld [vmem:[%s8622_s21 + $0x2a8] sm:$0xf] }
  0xc8   : > { %1299 = vmatpush.bf16.msrb.mxu2 %v6090_v10  ;;  %v6309_v10 = vld [vmem:[%s8622_s21 + $0x2e0] sm:$0xf]  ;;  %v7541_v24 = vld [vmem:[%s8614_s10 + $0x20] sm:$0xff]  ;;  %v1020_v27 = vshrl.u32 %v7574_v23, 16  ;;  %v7636_v44 = vld [vmem:[%s8622_s21 + $0x2a4] sm:$0xf] }
  0xc9   : > { %1333 = vmatpush.bf16.msrb.mxu3 %v6094_v14  ;;  %1231 = vmatpush.bf16.msrb.mxu0 %v6082_v20  ;;  %v6310_v13 = vor.u32 %v7646_v11, %v6309_v10  ;;  %v7644_v14 = vld [vmem:[%s8622_s21 + $0x2e4] sm:$0xf]  ;;  %v6303_v20 = vld [vmem:[%s8622_s21 + $0x2d8] sm:$0xf0]  ;;  %v7642_v31 = vld [vmem:[%s8622_s21 + $0x2cc] sm:$0xf0] }
  0xca   : > { %1265 = vmatpush.bf16.msrb.mxu1 %v6086_v21  ;;  %703 = vmatmul.bf16.gmra.mxu0 %v7538_v25  ;;  %v6314_v17 = vor.u32 %v7644_v14, %v6311_v15  ;;  %v6302_v21 = vor.u32 %v7643_v18, %v6301_v16  ;;  %v7639_v36 = vld [vmem:[%s8622_s21 + $0x2b4] sm:$0xf0]  ;;  %v6287_v40 = vld [vmem:[%s8622_s21 + $0x2b8] sm:$0xf0]  ;;  %v6277_v41 = vld [vmem:[%s8622_s21 + $0x2a0] sm:$0xf] }
  0xcb   : > { %737 = vmatmul.bf16.gmra.mxu1 %v7538_v25  ;;  %771 = vmatmul.bf16.gmra.mxu2 %v7538_v25  ;;  %v6279_v45 = vld [vmem:[%s8622_s21 + $0x2b0] sm:$0xf0]  ;;  %v7633_v50 = vld [vmem:[%s8622_s21 + $0x28c] sm:$0xf]  ;;  %v6271_v52 = vld [vmem:[%s8622_s21 + $0x298] sm:$0xf0] }
  0xcc   : > { %1300 = vmatpush.bf16.msrb.mxu2 %v6074_v22  ;;  %805 = vmatmul.bf16.gmra.mxu3 %v7538_v25  ;;  %v6306_v22 = vor.u32 %v7641_v19, %v6303_v20  ;;  %v8789_v25 = vld [vmem:[%s8614_s10 + $0x8] sm:$0xff]  ;;  %vm1018_vm0 = vsmask.f32 7424  ;;  %v7634_v59 = vld [vmem:[%s8622_s21 + $0x28c] sm:$0xf0]  ;;  %p7403_p5 = scmp.ne.s32.totalorder %s10597_s7, 1 }
  0xcd   : > { %1334 = vmatpush.bf16.msrb.mxu3 %v6078_v26  ;;  %1232 = vmatpush.bf16.msrb.mxu0 %v6066_v29  ;;  %v1022_v26 = vshll.u32 %v7574_v23, 16  ;;  %v1027_v29 = vshll.u32 %v8789_v25, 16  ;;  %v7632_v60 = vld [vmem:[%s8622_s21 + $0x284] sm:$0xf]  ;;  %v6253_v63 = vld [vmem:[%s8622_s21 + $0x268] sm:$0xf] }
  0xce   : > { %1266 = vmatpush.bf16.msrb.mxu1 %v6070_v30  ;;  %v6293_v30 = vld [vmem:[%s8622_s21 + $0x2c0] sm:$0xf]  ;;  %v7631_v0 = vld [vmem:[%s8622_s21 + $0x274] sm:$0xf0]  ;;  %v1031_v5 = vshrl.u32 %v8789_v25, 16  ;;  %v7577_v16 = vld [vmem:[%s8614_s10 + $0x18] sm:$0xff] }
  0xcf   : > { %v1024_v28 = vrot.slane %v1022_v26, 1  ;;  %v6294_v33 = vor.u32 %v7642_v31, %v6293_v30  ;;  %v1029_v55 = vrot.slane %v1027_v29, 1  ;;  %v6245_v11 = vld [vmem:[%s8622_s21 + $0x260] sm:$0xf]  ;;  %v6247_v15 = vld [vmem:[%s8622_s21 + $0x270] sm:$0xf0] }
  0xd0   : > { %1301 = vmatpush.bf16.msrb.mxu2 %v6058_v34  ;;  %v6295_v34 = vld [vmem:[%s8622_s21 + $0x2d0] sm:$0xf0]  ;;  %v6237_v18 = vld [vmem:[%s8622_s21 + $0x248] sm:$0xf]  ;;  %v7627_v19 = vld [vmem:[%s8622_s21 + $0x254] sm:$0xf0] }
  0xd1   : > { %1335 = vmatpush.bf16.msrb.mxu3 %v6062_v38  ;;  %1233 = vmatpush.bf16.msrb.mxu0 %v6050_v39  ;;  %v6298_v37 = vor.u32 %v7640_v32, %v6295_v34  ;;  %v6286_v38 = vor.u32 %v7639_v36, %v6285_v35  ;;  %v7637_v39 = vld [vmem:[%s8622_s21 + $0x2ac] sm:$0xf]  ;;  %v1025_v54 = vor.u32 %v1024_v28, %v1020_v27  ;;  %v1043_v25 = vshll.u32 %v7577_v16, 16  ;;  %v6229_v26 = vld [vmem:[%s8622_s21 + $0x240] sm:$0xf] }
  0xd2   : > { %1267 = vmatpush.bf16.msrb.mxu1 %v6054_v43  ;;  %v6290_v42 = vor.u32 %v7637_v39, %v6287_v40  ;;  %v7638_v43 = vld [vmem:[%s8622_s21 + $0x2ac] sm:$0xf0]  ;;  %v7625_v20 = vld [vmem:[%s8622_s21 + $0x24c] sm:$0xf]  ;;  %v7624_v28 = vld [vmem:[%s8622_s21 + $0x244] sm:$0xf] }
  0xd3   : > { %v6278_v46 = vor.u32 %v7638_v43, %v6277_v41  ;;  %v1030_v56 = vsel %vm1018_vm0, %v1025_v54, %v1029_v55  ;;  %v7626_v27 = vld [vmem:[%s8622_s21 + $0x24c] sm:$0xf0]  ;;  %v6231_v30 = vld [vmem:[%s8622_s21 + $0x250] sm:$0xf0]  ;;  %v1045_v32 = vrot.slane %v1043_v25, 1 }
  0xd4   : > { %1302 = vmatpush.bf16.msrb.mxu2 %v6042_v47  ;;  %v6282_v47 = vor.u32 %v7636_v44, %v6279_v45  ;;  %v6230_v29 = vor.u32 %v7626_v27, %v6229_v26  ;;  %v6221_v35 = vld [vmem:[%s8622_s21 + $0x228] sm:$0xf]  ;;  %v7623_v36 = vld [vmem:[%s8622_s21 + $0x234] sm:$0xf0]  ;;  %v6223_v39 = vld [vmem:[%s8622_s21 + $0x238] sm:$0xf0] }
  0xd5   : > { %1336 = vmatpush.bf16.msrb.mxu3 %v6046_v48  ;;  %1234 = vmatpush.bf16.msrb.mxu0 %v6034_v53  ;;  %v6269_v48 = vld [vmem:[%s8622_s21 + $0x288] sm:$0xf]  ;;  %v6274_v53 = vor.u32 %v7633_v50, %v6271_v52  ;;  %v8839_v41 = vld [vmem:[%s8614_s10 + $0x20] sm:$0xff]  ;;  %v7620_v44 = vld [vmem:[%s8622_s21 + $0x224] sm:$0xf] }
  0xd6   : > { %1268 = vmatpush.bf16.msrb.mxu1 %v6038_v57  ;;  %v7576_v57 = vld [vmem:[%s8614_s10 + $0x10] sm:$0xff]  ;;  %v7622_v43 = vld [vmem:[%s8622_s21 + $0x22c] sm:$0xf0]  ;;  %vm2565_vm2 = vsmask.f32 6400 }
  0xd7   : > { %v1035_v6 = vshll.u32 %v7576_v57, 16  ;;  %v6205_v50 = vld [vmem:[%s8622_s21 + $0x208] sm:$0xf]  ;;  %v7617_v52 = vld [vmem:[%s8622_s21 + $0x20c] sm:$0xf] }
  0xd8   : > { %1303 = vmatpush.bf16.msrb.mxu2 %v6026_v58  ;;  %v6261_v58 = vld [vmem:[%s8622_s21 + $0x280] sm:$0xf]  ;;  %v6207_v54 = vld [vmem:[%s8622_s21 + $0x218] sm:$0xf0]  ;;  %vm4121_vm4 = vsmask.f32 5376 }
  0xd9   : > { %1337 = vmatpush.bf16.msrb.mxu3 %v6030_v62  ;;  %1235 = vmatpush.bf16.msrb.mxu0 %v6018_v2  ;;  %v6262_v61 = vor.u32 %v7634_v59, %v6261_v58  ;;  %v6263_v62 = vld [vmem:[%s8622_s21 + $0x290] sm:$0xf0]  ;;  %v6254_v2 = vor.u32 %v7631_v0, %v6253_v63  ;;  %v1037_v9 = vrot.slane %v1035_v6, 1  ;;  %v6197_v59 = vld [vmem:[%s8622_s21 + $0x200] sm:$0xf] }
  0xda   : > { %708 = vmatmul.bf16.gmra.mxu0 %v7539_v49  ;;  %1269 = vmatpush.bf16.msrb.mxu1 %v6022_v3  ;;  %v6266_v1 = vor.u32 %v7632_v60, %v6263_v62  ;;  %v7629_v3 = vld [vmem:[%s8622_s21 + $0x26c] sm:$0xf]  ;;  %v916_v58 = vld [vmem:[%s8614_s10 + $0x28] sm:$0x1]  ;;  %v7618_v60 = vld [vmem:[%s8622_s21 + $0x20c] sm:$0xf0] }
  0xdb   : > { %742 = vmatmul.bf16.gmra.mxu1 %v7539_v49  ;;  %776 = vmatmul.bf16.gmra.mxu2 %v7539_v49  ;;  %v1011_v0 = vunpack.c.l.b16 %v916_v58  ;;  %v6497_v6 = vld [vmem:[%s8622_s21 + $0x3e8] sm:$0xf]  ;;  %v7675_v58 = vld [vmem:[%s8622_s21 + $0x3ac] sm:$0xf0] }
  0xdc   : > { %810 = vmatmul.bf16.gmra.mxu3 %v7539_v49  ;;  %1801 = vmatpush.bf16.msra.mxu2 %v6318_v8  ;;  %v7635_v49 = vld [vmem:[%s8622_s21 + $0x294] sm:$0xf0]  ;;  %v1033_v8 = vor.u32 %v1031_v5, %v1029_v55 }
  0xdd   : > { %1835 = vmatpush.bf16.msra.mxu3 %v6322_v12  ;;  %1733 = vmatpush.bf16.msra.mxu0 %v6310_v13  ;;  %v6270_v51 = vor.u32 %v7635_v49, %v6269_v48  ;;  %v7630_v12 = vld [vmem:[%s8622_s21 + $0x26c] sm:$0xf0]  ;;  %v7628_v13 = vld [vmem:[%s8622_s21 + $0x264] sm:$0xf]  ;;  %v1047_v48 = vshrl.u32 %v7577_v16, 16  ;;  %v1051_v49 = vshll.u32 %v8839_v41, 16  ;;  %v1017_v5 = vpack.c.b16 %v1011_v0, %v1011_v0 }
  0xde   : > { %1767 = vmatpush.bf16.msra.mxu1 %v6314_v17  ;;  %v1038_v10 = vsel %vm1018_vm0, %v1033_v8, %v1037_v9  ;;  %v6246_v14 = vor.u32 %v7630_v12, %v6245_v11  ;;  %v6250_v17 = vor.u32 %v7628_v13, %v6247_v15  ;;  %v7682_v8 = vld [vmem:[%s8622_s21 + $0x3ec] sm:$0xf]  ;;  %v1055_v15 = vshrl.u32 %v8839_v41, 16  ;;  %v7677_v41 = vld [vmem:[%s8622_s21 + $0x3c4] sm:$0xf] }
  0xdf   : > { %v1049_v55 = vor.u32 %v1047_v48, %v1045_v32  ;;  %v1059_v16 = vshll.u32 %v1017_v5, 16  ;;  %v8903_v48 = vld [vmem:[%s8614_s10 + $0x8] sm:$0xff] }
  0xe0   : > { %1802 = vmatpush.bf16.msra.mxu2 %v6302_v21  ;;  %v6238_v21 = vor.u32 %v7627_v19, %v6237_v18  ;;  %v6489_v18 = vld [vmem:[%s8622_s21 + $0x3e0] sm:$0xf]  ;;  %v7683_v19 = vld [vmem:[%s8622_s21 + $0x3ec] sm:$0xf0]  ;;  %v6459_v0 = vld [vmem:[%s8622_s21 + $0x3b0] sm:$0xf0] }
  0xe1   : > { %1836 = vmatpush.bf16.msra.mxu3 %v6306_v22  ;;  %1734 = vmatpush.bf16.msra.mxu0 %v6294_v33  ;;  %v6239_v22 = vld [vmem:[%s8622_s21 + $0x258] sm:$0xf0]  ;;  %v6234_v33 = vor.u32 %v7624_v28, %v6231_v30  ;;  %v1061_v26 = vrot.slane %v1059_v16, 1 }
  0xe2   : > { %1768 = vmatpush.bf16.msra.mxu1 %v6298_v37  ;;  %v6242_v23 = vor.u32 %v7625_v20, %v6239_v22  ;;  %v7621_v37 = vld [vmem:[%s8622_s21 + $0x22c] sm:$0xf]  ;;  %v7681_v20 = vld [vmem:[%s8622_s21 + $0x3e4] sm:$0xf]  ;;  %v6491_v22 = vld [vmem:[%s8622_s21 + $0x3f0] sm:$0xf0] }
  0xe3   : > { %v6226_v40 = vor.u32 %v7621_v37, %v6223_v39  ;;  %v6494_v27 = vor.u32 %v7681_v20, %v6491_v22  ;;  %v6483_v30 = vld [vmem:[%s8622_s21 + $0x3d8] sm:$0xf0]  ;;  %v6177_v37 = vld [vmem:[%s8614_s10] sm:$0xe]  ;;  %v6473_v39 = vld [vmem:[%s8622_s21 + $0x3c0] sm:$0xf] }
  0xe4   : > { %1803 = vmatpush.bf16.msra.mxu2 %v6286_v38  ;;  %v6222_v38 = vor.u32 %v7623_v36, %v6221_v35 }
  0xe5   : > { %1837 = vmatpush.bf16.msra.mxu3 %v6290_v42  ;;  %1735 = vmatpush.bf16.msra.mxu0 %v6278_v46  ;;  %v6213_v42 = vld [vmem:[%s8622_s21 + $0x220] sm:$0xf]  ;;  %v6215_v46 = vld [vmem:[%s8622_s21 + $0x230] sm:$0xf0] }
  0xe6   : > { %1769 = vmatpush.bf16.msra.mxu1 %v6282_v47  ;;  %v6214_v45 = vor.u32 %v7622_v43, %v6213_v42  ;;  %v6218_v47 = vor.u32 %v7620_v44, %v6215_v46  ;;  %v6475_v43 = vld [vmem:[%s8622_s21 + $0x3d0] sm:$0xf0] }
  0xe8   : > { %1804 = vmatpush.bf16.msra.mxu2 %v6270_v51  ;;  %v7619_v51 = vld [vmem:[%s8622_s21 + $0x214] sm:$0xf0] }
  0xe9   : > { %1838 = vmatpush.bf16.msra.mxu3 %v6274_v53  ;;  %1736 = vmatpush.bf16.msra.mxu0 %v6262_v61  ;;  %v6206_v53 = vor.u32 %v7619_v51, %v6205_v50  ;;  %v7616_v61 = vld [vmem:[%s8622_s21 + $0x204] sm:$0xf]  ;;  %v6465_v51 = vld [vmem:[%s8622_s21 + $0x3a8] sm:$0xf] }
  0xea   : > { %713 = vmatmul.bf16.gmra.mxu0 %v7540_v4  ;;  %1770 = vmatpush.bf16.msra.mxu1 %v6266_v1  ;;  %v6198_v1 = vor.u32 %v7618_v60, %v6197_v59  ;;  %v7673_v59 = vld [vmem:[%s8622_s21 + $0x3a4] sm:$0xf] }
  0xeb   : > { %747 = vmatmul.bf16.gmra.mxu1 %v7540_v4  ;;  %781 = vmatmul.bf16.gmra.mxu2 %v7540_v4 }
  0xec   : > { %815 = vmatmul.bf16.gmra.mxu3 %v7540_v4  ;;  %v6255_v4 = vld [vmem:[%s8622_s21 + $0x278] sm:$0xf0]  ;;  %1805 = vmatpush.bf16.msra.mxu2 %v6254_v2  ;;  %v6199_v2 = vld [vmem:[%s8622_s21 + $0x210] sm:$0xf0] }
  0xed   : > { %v6258_v7 = vor.u32 %v7629_v3, %v6255_v4  ;;  %1737 = vmatpush.bf16.msra.mxu0 %v6246_v14  ;;  %v6202_v4 = vor.u32 %v7616_v61, %v6199_v2  ;;  %v1558_v61 = vrot.slane %v8903_v48, 1  ;;  %v6425_v48 = vld [vmem:[%s8622_s21 + $0x360] sm:$0xf] }
  0xee   : > { %1771 = vmatpush.bf16.msra.mxu1 %v6250_v17 }
  0xef   : > { %1839 = vmatpush.bf16.msra.mxu3 %v6258_v7  ;;  %v7684_v7 = vld [vmem:[%s8622_s21 + $0x3f4] sm:$0xf0] }
  0xf0   : > { %1806 = vmatpush.bf16.msra.mxu2 %v6238_v21  ;;  %v6490_v21 = vor.u32 %v7683_v19, %v6489_v18 }
  0xf1   : > { %1738 = vmatpush.bf16.msra.mxu0 %v6230_v29  ;;  %v7678_v29 = vld [vmem:[%s8622_s21 + $0x3cc] sm:$0xf] }
  0xf2   : > { %1772 = vmatpush.bf16.msra.mxu1 %v6234_v33 }
  0xf3   : > { %1840 = vmatpush.bf16.msra.mxu3 %v6242_v23  ;;  %v6481_v23 = vld [vmem:[%s8622_s21 + $0x3c8] sm:$0xf] }
  0xf4   : > { %1807 = vmatpush.bf16.msra.mxu2 %v6222_v38  ;;  %v7611_v38 = vld [vmem:[%s8614_s10] sm:$0xf0] }
  0xf5   : > { %1739 = vmatpush.bf16.msra.mxu0 %v6214_v45  ;;  %v6478_v45 = vor.u32 %v7677_v41, %v6475_v43 }
  0xf6   : > { %1773 = vmatpush.bf16.msra.mxu1 %v6218_v47 }
  0xf7   : > { %1841 = vmatpush.bf16.msra.mxu3 %v6226_v40  ;;  %v7679_v40 = vld [vmem:[%s8622_s21 + $0x3cc] sm:$0xf0] }
  0xf8   : > { %1808 = vmatpush.bf16.msra.mxu2 %v6206_v53  ;;  %v6474_v42 = vor.u32 %v7679_v40, %v6473_v39  ;;  %v7674_v53 = vld [vmem:[%s8622_s21 + $0x3ac] sm:$0xf] }
  0xf9   : > { %1740 = vmatpush.bf16.msra.mxu0 %v6198_v1  ;;  %v6462_v1 = vor.u32 %v7673_v59, %v6459_v0  ;;  %v6419_v59 = vld [vmem:[%s8622_s21 + $0x358] sm:$0xf0] }
  0xfa   : > { %718 = vmatmul.bf16.gmra.mxu0 %v7541_v24  ;;  %1774 = vmatpush.bf16.msra.mxu1 %v6202_v4 }
  0xfb   : > { %752 = vmatmul.bf16.gmra.mxu1 %v7541_v24  ;;  %786 = vmatmul.bf16.gmra.mxu2 %v7541_v24 }
  0xfc   : > { %820 = vmatmul.bf16.gmra.mxu3 %v7541_v24  ;;  %v1039_v24 = vshrl.u32 %v7576_v57, 16  ;;  %v6210_v57 = vor.u32 %v7617_v52, %v6207_v54  ;;  %v7676_v52 = vld [vmem:[%s8622_s21 + $0x3b4] sm:$0xf0] }
  0xfd   : > { %v6466_v54 = vor.u32 %v7676_v52, %v6465_v51  ;;  %v7665_v51 = vld [vmem:[%s8622_s21 + $0x364] sm:$0xf] }
  0xfe   : > { %v1041_v31 = vor.u32 %v1039_v24, %v1037_v9  ;;  %1842 = vmatpush.bf16.msra.mxu3 %v6210_v57  ;;  %v6498_v9 = vor.u32 %v7684_v7, %v6497_v6  ;;  %v7680_v24 = vld [vmem:[%s8622_s21 + $0x3d4] sm:$0xf0]  ;;  %v6457_v57 = vld [vmem:[%s8622_s21 + $0x3a0] sm:$0xf] }
  0xff   : > { %v6482_v28 = vor.u32 %v7680_v24, %v6481_v23  ;;  %v6441_v23 = vld [vmem:[%s8622_s21 + $0x380] sm:$0xf]  ;;  %v7671_v24 = vld [vmem:[%s8622_s21 + $0x38c] sm:$0xf0] }
 0x100   : > { %v1046_v34 = vsel %vm1018_vm0, %v1041_v31, %v1045_v32  ;;  %v6486_v31 = vor.u32 %v7678_v29, %v6483_v30  ;;  %v6433_v29 = vld [vmem:[%s8622_s21 + $0x368] sm:$0xf]  ;;  %v7668_v30 = vld [vmem:[%s8622_s21 + $0x374] sm:$0xf0] }
 0x10a   : > { %1236 = vmatmul.bf16.vlgmr.msrb.gmra.mxu0 %v1030_v56 }
 0x10b   : > { %1270 = vmatmul.bf16.vlgmr.msrb.gmra.mxu1 %v1030_v56  ;;  %1304 = vmatmul.bf16.vlgmr.msrb.gmra.mxu2 %v1030_v56 }
 0x10c   : > { %1338 = vmatmul.bf16.vlgmr.msrb.gmra.mxu3 %v1030_v56  ;;  %v1053_v56 = vrot.slane %v1051_v49, 1  ;;  %2305 = vmatpush.bf16.msrb.mxu2 %v6498_v9  ;;  %v6178_v49 = vor.u32 %v7611_v38, %v6177_v37  ;;  %v7672_v9 = vld [vmem:[%s8622_s21 + $0x394] sm:$0xf0]  ;;  %v6434_v37 = vor.u32 %v7668_v30, %v6433_v29  ;;  %v6435_v38 = vld [vmem:[%s8622_s21 + $0x378] sm:$0xf0] }
 0x10d   : > { %2237 = vmatpush.bf16.msrb.mxu0 %v6490_v21  ;;  %2271 = vmatpush.bf16.msrb.mxu1 %v6494_v27  ;;  %v8936_v21 = vld [vmem:[%s8614_s10 + $0x10] sm:$0xff]  ;;  %v6443_v27 = vld [vmem:[%s8622_s21 + $0x390] sm:$0xf0]  ;;  %v7660_v29 = vld [vmem:[%s8622_s21 + $0x334] sm:$0xf0] }
 0x10e   : > { %v1054_v63 = vsel %vm1018_vm0, %v1049_v55, %v1053_v56  ;;  %v1057_v25 = vor.u32 %v1055_v15, %v1053_v56  ;;  %v6467_v55 = vld [vmem:[%s8622_s21 + $0x3b8] sm:$0xf0]  ;;  %v1557_v60 = vrot.slane %v6178_v49, 1  ;;  %v7667_v49 = vld [vmem:[%s8622_s21 + $0x36c] sm:$0xf0] }
 0x10f   : > { %v6470_v56 = vor.u32 %v7674_v53, %v6467_v55  ;;  %v6451_v15 = vld [vmem:[%s8622_s21 + $0x398] sm:$0xf0]  ;;  %v6426_v52 = vor.u32 %v7667_v49, %v6425_v48  ;;  %v6427_v53 = vld [vmem:[%s8622_s21 + $0x370] sm:$0xf0]  ;;  %v6417_v55 = vld [vmem:[%s8622_s21 + $0x348] sm:$0xf] }
 0x110   : > { %2306 = vmatpush.bf16.msrb.mxu2 %v6482_v28  ;;  %v1062_v35 = vsel %vm1018_vm0, %v1057_v25, %v1061_v26  ;;  %v1559_v6 = vsel %vm1556_vm1, %v1557_v60, %v1558_v61  ;;  %v7669_v25 = vld [vmem:[%s8622_s21 + $0x384] sm:$0xf]  ;;  %v6442_v26 = vor.u32 %v7671_v24, %v6441_v23  ;;  %v7658_v30 = vld [vmem:[%s8622_s21 + $0x32c] sm:$0xf]  ;;  %v6395_v49 = vld [vmem:[%s8622_s21 + $0x330] sm:$0xf0] }
 0x111   : > { %2238 = vmatpush.bf16.msrb.mxu0 %v6474_v42  ;;  %2272 = vmatpush.bf16.msrb.mxu1 %v6478_v45  ;;  %v6446_v28 = vor.u32 %v7669_v25, %v6443_v27 }
 0x114   : > { %2307 = vmatpush.bf16.msrb.mxu2 %v6466_v54  ;;  %v6430_v54 = vor.u32 %v7665_v51, %v6427_v53 }
 0x115   : > { %2273 = vmatpush.bf16.msrb.mxu1 %v6462_v1  ;;  %v8973_v1 = vld [vmem:[%s8614_s10 + $0x18] sm:$0xff] }
 0x119   : > { %2274 = vmatpush.bf16.msrb.mxu1 %v6446_v28  ;;  %v6401_v28 = vld [vmem:[%s8622_s21 + $0x328] sm:$0xf] }
 0x11a   : > { %1241 = vmatmul.bf16.gmra.mxu0 %v1038_v10 }
 0x11b   : > { %1275 = vmatmul.bf16.gmra.mxu1 %v1038_v10  ;;  %1309 = vmatmul.bf16.gmra.mxu2 %v1038_v10 }
 0x11c   : > { %1343 = vmatmul.bf16.gmra.mxu3 %v1038_v10  ;;  %v6499_v10 = vld [vmem:[%s8622_s21 + $0x3f8] sm:$0xf0] }
 0x11d   : > { %v6502_v12 = vor.u32 %v7682_v8, %v6499_v10  ;;  %v6449_v8 = vld [vmem:[%s8622_s21 + $0x388] sm:$0xf]  ;;  %v7670_v10 = vld [vmem:[%s8622_s21 + $0x38c] sm:$0xf]  ;;  %2275 = vmatpush.bf16.msrb.mxu1 %v6430_v54 }
 0x11e   : > { %v6454_v16 = vor.u32 %v7670_v10, %v6451_v15  ;;  %v7661_v10 = vld [vmem:[%s8622_s21 + $0x344] sm:$0xf]  ;;  %v6411_v15 = vld [vmem:[%s8622_s21 + $0x350] sm:$0xf0] }
 0x11f   : > { %2339 = vmatpush.bf16.msrb.mxu3 %v6502_v12  ;;  %v6450_v12 = vor.u32 %v7672_v9, %v6449_v8  ;;  %v6409_v8 = vld [vmem:[%s8622_s21 + $0x340] sm:$0xf]  ;;  %v7663_v9 = vld [vmem:[%s8622_s21 + $0x34c] sm:$0xf0] }
 0x121   : > { %2308 = vmatpush.bf16.msrb.mxu2 %v6450_v12  ;;  %v6410_v12 = vor.u32 %v7663_v9, %v6409_v8  ;;  %v428_v8 = vld [vmem:[#allocation2 + $0xb0] sm:$0xff] }
 0x123   : > { %2340 = vmatpush.bf16.msrb.mxu3 %v6486_v31  ;;  %v7666_v31 = vld [vmem:[%s8622_s21 + $0x36c] sm:$0xf] }
 0x124   : > { %v6438_v39 = vor.u32 %v7666_v31, %v6435_v38  ;;  %v6402_v31 = vor.u32 %v7660_v29, %v6401_v28  ;;  %v7655_v28 = vld [vmem:[%s8622_s21 + $0x30c] sm:$0xf0]  ;;  %v7653_v29 = vld [vmem:[%s8622_s21 + $0x304] sm:$0xf] }
 0x125   : > { %2309 = vmatpush.bf16.msrb.mxu2 %v6434_v37  ;;  %v6403_v37 = vld [vmem:[%s8622_s21 + $0x338] sm:$0xf0] }
 0x126   : > { %v6406_v38 = vor.u32 %v7658_v30, %v6403_v37 }
 0x127   : > { %2341 = vmatpush.bf16.msrb.mxu3 %v6470_v56  ;;  %v7664_v56 = vld [vmem:[%s8622_s21 + $0x354] sm:$0xf0] }
 0x12a   : > { %1246 = vmatmul.bf16.gmra.mxu0 %v1046_v34 }
 0x12b   : > { %1280 = vmatmul.bf16.gmra.mxu1 %v1046_v34  ;;  %1314 = vmatmul.bf16.gmra.mxu2 %v1046_v34 }
 0x12c   : > { %1348 = vmatmul.bf16.gmra.mxu3 %v1046_v34 }
 0x12d   : > { %2342 = vmatpush.bf16.msrb.mxu3 %v6454_v16  ;;  %v1562_v16 = vrot.slane %v8973_v1, 1  ;;  %v6387_v1 = vld [vmem:[%s8622_s21 + $0x318] sm:$0xf0] }
 0x131   : > { %2343 = vmatpush.bf16.msrb.mxu3 %v6438_v39  ;;  %v6393_v39 = vld [vmem:[%s8622_s21 + $0x320] sm:$0xf] }
 0x137   : > { %v8854_v62 = vpop.f32.mrf.mxu0 }
 0x138   : > { %v8858_v3 = vpop.f32.mrf.mxu1 }
 0x13a   : > { %1251 = vmatmul.bf16.gmra.mxu0 %v1054_v63 }
 0x13b   : > { %1285 = vmatmul.bf16.gmra.mxu1 %v1054_v63  ;;  %1319 = vmatmul.bf16.gmra.mxu2 %v1054_v63 }
 0x13c   : > { %1353 = vmatmul.bf16.gmra.mxu3 %v1054_v63  ;;  %v6458_v63 = vor.u32 %v7675_v58, %v6457_v57  ;;  %v7662_v57 = vld [vmem:[%s8622_s21 + $0x34c] sm:$0xf]  ;;  %v6418_v58 = vor.u32 %v7664_v56, %v6417_v55 }
 0x13d   : > { %v9006_v55 = vld [vmem:[%s8614_s10 + $0x20] sm:$0xff] }
 0x13e   : > { %v8864_v11 = vpop.f32.mrf.mxu2  ;;  %2239 = vmatpush.bf16.msrb.mxu0 %v6458_v63  ;;  %2310 = vmatpush.bf16.msrb.mxu2 %v6418_v58  ;;  %v7656_v58 = vld [vmem:[%s8622_s21 + $0x314] sm:$0xf0]  ;;  %v1564_v9 = vrot.slane %v9006_v55, 1  ;;  %v6357_v55 = vld [vmem:[%s8614_s10 + $0x4] sm:$0xe] }
 0x13f   : > { %v8866_v13 = vpop.f32.mrf.mxu3  ;;  %v8868_v14 = vpop.f32.mrf.mxu0 }
 0x140   : > { %v8871_v17 = vpop.f32.mrf.mxu1 }
 0x142   : > { %2240 = vmatpush.bf16.msrb.mxu0 %v6442_v26  ;;  %2311 = vmatpush.bf16.msrb.mxu2 %v6402_v31 }
 0x146   : > { %v8881_v32 = vpop.f32.mrf.mxu2  ;;  %2241 = vmatpush.bf16.msrb.mxu0 %v6426_v52 }
 0x147   : > { %v8883_v33 = vpop.f32.mrf.mxu3  ;;  %v8885_v34 = vpop.f32.mrf.mxu0 }
 0x148   : > { %v8888_v36 = vpop.f32.mrf.mxu1 }
 0x14a   : > { %1256 = vmatmul.bf16.gmra.mxu0 %v1062_v35 }
 0x14b   : > { %1290 = vmatmul.bf16.gmra.mxu1 %v1062_v35  ;;  %1324 = vmatmul.bf16.gmra.mxu2 %v1062_v35 }
 0x14c   : > { %1358 = vmatmul.bf16.gmra.mxu3 %v1062_v35  ;;  %v1560_v35 = vrot.slane %v8936_v21, 1  ;;  %v6414_v21 = vor.u32 %v7661_v10, %v6411_v15  ;;  %2242 = vmatpush.bf16.msrb.mxu0 %v6410_v12  ;;  %v429_v12 = vld [vmem:[#allocation2 + $0xd0] sm:$0xff]  ;;  %v826_v15 = vadd.f32 %v8854_v62, %v428_v8 }
 0x14d   : > { %v827_v30 = vadd.f32 %v8858_v3, %v429_v12  ;;  %v430_v3 = vld [vmem:[#allocation2 + $0x10] sm:$0xff] }
 0x14e   : > { %v8896_v44 = vpop.f32.mrf.mxu2  ;;  %v1561_v43 = vsel %vm1556_vm1, %v1558_v61, %v1560_v35  ;;  %v6422_v61 = vor.u32 %v7662_v57, %v6419_v59  ;;  %2276 = vmatpush.bf16.msrb.mxu1 %v6414_v21  ;;  %v1563_v26 = vsel %vm1556_vm1, %v1560_v35, %v1562_v16  ;;  %v7659_v35 = vld [vmem:[%s8622_s21 + $0x32c] sm:$0xf0]  ;;  %v6385_v57 = vld [vmem:[%s8622_s21 + $0x308] sm:$0xf]  ;;  %v7654_v59 = vld [vmem:[%s8622_s21 + $0x30c] sm:$0xf] }
 0x14f   : > { %v8898_v46 = vpop.f32.mrf.mxu3  ;;  %v8900_v47 = vpop.f32.mrf.mxu0  ;;  %v6394_v48 = vor.u32 %v7659_v35, %v6393_v39  ;;  %v6390_v10 = vor.u32 %v7654_v59, %v6387_v1  ;;  %v6379_v35 = vld [vmem:[%s8622_s21 + $0x310] sm:$0xf0]  ;;  %v7721_v1 = vld [vmem:[%s8622_s21 + $0x4f4] sm:$0xf0]  ;;  %v7719_v8 = vld [vmem:[%s8622_s21 + $0x4ec] sm:$0xf] }
 0x150   : > { %v8905_v50 = vpop.f32.mrf.mxu1  ;;  %2344 = vmatpush.bf16.msrb.mxu3 %v6422_v61  ;;  %v6386_v61 = vor.u32 %v7656_v58, %v6385_v57  ;;  %v431_v57 = vld [vmem:[#allocation2 + $0x48] sm:$0xff]  ;;  %v432_v58 = vld [vmem:[#allocation2 + $0x120] sm:$0xff] }
 0x151   : > { %2243 = vmatpush.bf16.msrb.mxu0 %v6394_v48  ;;  %v1454_v48 = vld [vmem:[%s8614_s10 + $0x28] sm:$0x1] }
 0x152   : > { %2312 = vmatpush.bf16.msrb.mxu2 %v6386_v61  ;;  %v1549_v59 = vunpack.c.l.b16 %v1454_v48  ;;  %v6677_v61 = vld [vmem:[%s8622_s21 + $0x4e8] sm:$0xf] }
 0x153   : > { %v6678_v12 = vor.u32 %v7721_v1, %v6677_v61  ;;  %v6671_v61 = vld [vmem:[%s8622_s21 + $0x4f0] sm:$0xf0]  ;;  %v6661_v1 = vld [vmem:[%s8622_s21 + $0x4c8] sm:$0xf] }
 0x154   : > { %2345 = vmatpush.bf16.msrb.mxu3 %v6406_v38  ;;  %v1565_v38 = vsel %vm1556_vm1, %v1562_v16, %v1564_v9  ;;  %v433_v16 = vld [vmem:[#allocation2 + $0x38] sm:$0xff] }
 0x156   : > { %v8916_v2 = vpop.f32.mrf.mxu2 }
 0x157   : > { %v8918_v4 = vpop.f32.mrf.mxu3  ;;  %v8920_v5 = vpop.f32.mrf.mxu0 }
 0x158   : > { %v8923_v7 = vpop.f32.mrf.mxu1  ;;  %2346 = vmatpush.bf16.msrb.mxu3 %v6390_v10  ;;  %v828_v10 = vadd.f32 %v8864_v11, %v430_v3  ;;  %v1555_v11 = vpack.c.b16 %v1549_v59, %v1549_v59  ;;  %v6669_v3 = vld [vmem:[%s8622_s21 + $0x4e0] sm:$0xf]  ;;  %v7717_v59 = vld [vmem:[%s8622_s21 + $0x4d4] sm:$0xf0] }
 0x15a   : > { %1741 = vmatmul.bf16.vlgmr.msra.gmra.mxu0 %v1559_v6 }
 0x15b   : > { %1775 = vmatmul.bf16.vlgmr.msra.gmra.mxu1 %v1559_v6  ;;  %1809 = vmatmul.bf16.vlgmr.msra.gmra.mxu2 %v1559_v6 }
 0x15c   : > { %1843 = vmatmul.bf16.vlgmr.msra.gmra.mxu3 %v1559_v6  ;;  %2852 = vmatpush.bf16.msra.mxu2 %v6678_v12 }
 0x15e   : > { %v8929_v18 = vpop.f32.mrf.mxu2 }
 0x15f   : > { %v8931_v19 = vpop.f32.mrf.mxu3  ;;  %v8933_v20 = vpop.f32.mrf.mxu0 }
 0x160   : > { %v8938_v22 = vpop.f32.mrf.mxu1 }
 0x166   : > { %v8949_v40 = vpop.f32.mrf.mxu2 }
 0x167   : > { %v8951_v41 = vpop.f32.mrf.mxu3  ;;  %v8953_v42 = vpop.f32.mrf.mxu0 }
 0x168   : > { %v8956_v45 = vpop.f32.mrf.mxu1 }
 0x16a   : > { %1746 = vmatmul.bf16.gmra.mxu0 %v1561_v43 }
 0x16b   : > { %1780 = vmatmul.bf16.gmra.mxu1 %v1561_v43  ;;  %1814 = vmatmul.bf16.gmra.mxu2 %v1561_v43 }
 0x16c   : > { %1848 = vmatmul.bf16.gmra.mxu3 %v1561_v43  ;;  %v7657_v43 = vld [vmem:[%s8622_s21 + $0x324] sm:$0xf] }
 0x16d   : > { %v6398_v52 = vor.u32 %v7657_v43, %v6395_v49  ;;  %v6382_v49 = vor.u32 %v7653_v29, %v6379_v35 }
 0x16e   : > { %v8966_v60 = vpop.f32.mrf.mxu2 }
 0x16f   : > { %v8968_v63 = vpop.f32.mrf.mxu3  ;;  %v8970_v0 = vpop.f32.mrf.mxu0  ;;  %2277 = vmatpush.bf16.msrb.mxu1 %v6398_v52 }
 0x170   : > { %v8975_v6 = vpop.f32.mrf.mxu1 }
 0x173   : > { %2278 = vmatpush.bf16.msrb.mxu1 %v6382_v49  ;;  %v435_v49 = vld [vmem:[#allocation2 + $0x100] sm:$0xff] }
 0x176   : > { %v8982_v23 = vpop.f32.mrf.mxu2 }
 0x177   : > { %v8984_v24 = vpop.f32.mrf.mxu3  ;;  %v8986_v25 = vpop.f32.mrf.mxu0 }
 0x178   : > { %v8989_v27 = vpop.f32.mrf.mxu1 }
 0x17a   : > { %1751 = vmatmul.bf16.gmra.mxu0 %v1563_v26 }
 0x17b   : > { %1785 = vmatmul.bf16.gmra.mxu1 %v1563_v26  ;;  %1819 = vmatmul.bf16.gmra.mxu2 %v1563_v26 }
 0x17c   : > { %1853 = vmatmul.bf16.gmra.mxu3 %v1563_v26  ;;  %v6377_v26 = vld [vmem:[%s8622_s21 + $0x300] sm:$0xf] }
 0x17d   : > { %v6378_v39 = vor.u32 %v7655_v28, %v6377_v26  ;;  %v829_v26 = vadd.f32 %v8866_v13, %v431_v57  ;;  %v830_v28 = vadd.f32 %v8868_v14, %v432_v58  ;;  %v7720_v57 = vld [vmem:[%s8622_s21 + $0x4ec] sm:$0xf0]  ;;  %v7718_v58 = vld [vmem:[%s8622_s21 + $0x4e4] sm:$0xf] }
 0x17e   : > { %v8999_v51 = vpop.f32.mrf.mxu2  ;;  %v6674_v12 = vor.u32 %v7718_v58, %v6671_v61  ;;  %v440_v61 = vld [vmem:[#allocation2 + $0x18] sm:$0xff] }
 0x17f   : > { %v9001_v53 = vpop.f32.mrf.mxu3  ;;  %v9003_v54 = vpop.f32.mrf.mxu0  ;;  %2244 = vmatpush.bf16.msrb.mxu0 %v6378_v39 }
 0x180   : > { %v9008_v56 = vpop.f32.mrf.mxu1  ;;  %2818 = vmatpush.bf16.msra.mxu1 %v6674_v12 }
 0x186   : > { %v9016_v21 = vpop.f32.mrf.mxu2 }
 0x187   : > { %v9022_v31 = vpop.f32.mrf.mxu3  ;;  %v1237_v37 = vpop.f32.mrf.mxu0 }
 0x188   : > { %v9028_v43 = vadd.f32 %v1237_v37, %v826_v15  ;;  %v1271_v62 = vpop.f32.mrf.mxu1  ;;  %v6679_v15 = vld [vmem:[%s8622_s21 + $0x4f8] sm:$0xf0]  ;;  %v831_v37 = vadd.f32 %v8871_v17, %v433_v16  ;;  %v6670_v16 = vor.u32 %v7720_v57, %v6669_v3 }
 0x189   : > { %v9031_v52 = vadd.f32 %v1271_v62, %v827_v30  ;;  %v6682_v30 = vor.u32 %v7719_v8, %v6679_v15  ;;  %v434_v62 = vld [vmem:[#allocation2 + $0xf8] sm:$0xff]  ;;  %v436_v8 = vld [vmem:[#allocation2 + $0x80] sm:$0xff]  ;;  %v6662_v15 = vor.u32 %v7717_v59, %v6661_v1  ;;  %v441_v1 = vld [vmem:[#allocation2 + $0xc8] sm:$0xff] }
 0x18a   : > { %1756 = vmatmul.bf16.gmra.mxu0 %v1565_v38  ;;  %v7648_v59 = vld [vmem:[%s8614_s10 + $0x4] sm:$0xf0] }
 0x18b   : > { %1790 = vmatmul.bf16.gmra.mxu1 %v1565_v38  ;;  %1824 = vmatmul.bf16.gmra.mxu2 %v1565_v38 }
 0x18c   : > { %1858 = vmatmul.bf16.gmra.mxu3 %v1565_v38  ;;  %2784 = vmatpush.bf16.msra.mxu0 %v6670_v16  ;;  %v439_v16 = vld [vmem:[#allocation2 + $0xf0] sm:$0xff] }
 0x18d   : > { %2886 = vmatpush.bf16.msra.mxu3 %v6682_v30  ;;  %v832_v30 = vadd.f32 %v8881_v32, %v434_v62  ;;  %2853 = vmatpush.bf16.msra.mxu2 %v6662_v15 }
 0x18e   : > { %v1305_v29 = vpop.f32.mrf.mxu2 }
 0x18f   : > { %v9041_v39 = vadd.f32 %v1305_v29, %v828_v10  ;;  %v1339_v38 = vpop.f32.mrf.mxu3  ;;  %v1239_v35 = vpop.f32.mrf.mxu0  ;;  %v1566_v10 = vrot.slane %v1555_v11, 1  ;;  %v437_v29 = vld [vmem:[#allocation2 + $0x108] sm:$0xff] }
 0x190   : > { %v9043_v13 = vadd.f32 %v1339_v38, %v829_v26  ;;  %v9045_v14 = vadd.f32 %v1239_v35, %v830_v28  ;;  %v1273_v48 = vpop.f32.mrf.mxu1  ;;  %v7715_v26 = vld [vmem:[%s8622_s21 + $0x4cc] sm:$0xf]  ;;  %v6663_v28 = vld [vmem:[%s8622_s21 + $0x4d8] sm:$0xf0]  ;;  %v834_v35 = vadd.f32 %v8885_v34, %v436_v8  ;;  %v835_v3 = vadd.f32 %v8888_v36, %v437_v29  ;;  %v438_v36 = vld [vmem:[#allocation2 + $0x138] sm:$0xff] }
 0x191   : > { %v9047_v17 = vadd.f32 %v1273_v48, %v831_v37  ;;  %v6666_v38 = vor.u32 %v7715_v26, %v6663_v28  ;;  %v833_v37 = vadd.f32 %v8883_v33, %v435_v49  ;;  %v1567_v32 = vsel %vm1556_vm1, %v1564_v9, %v1566_v10  ;;  %v6653_v9 = vld [vmem:[%s8622_s21 + $0x4c0] sm:$0xf]  ;;  %v7716_v8 = vld [vmem:[%s8622_s21 + $0x4cc] sm:$0xf0]  ;;  %v7714_v10 = vld [vmem:[%s8622_s21 + $0x4c4] sm:$0xf] }
 0x192   : > { %v836_v12 = vadd.f32 %v8896_v44, %v438_v36  ;;  %v6654_v15 = vor.u32 %v7716_v8, %v6653_v9  ;;  %v6655_v26 = vld [vmem:[%s8622_s21 + $0x4d0] sm:$0xf0]  ;;  %v837_v28 = vadd.f32 %v8898_v46, %v439_v16  ;;  %v838_v29 = vadd.f32 %v8900_v47, %v440_v61  ;;  %v6647_v61 = vld [vmem:[%s8622_s21 + $0x4b8] sm:$0xf0]  ;;  %v7712_v9 = vld [vmem:[%s8622_s21 + $0x4ac] sm:$0xf0] }
 0x193   : > { %2887 = vmatpush.bf16.msra.mxu3 %v6666_v38  ;;  %v442_v8 = vld [vmem:[#allocation2 + $0x70] sm:$0xff] }
 0x194   : > { %2785 = vmatpush.bf16.msra.mxu0 %v6654_v15  ;;  %v443_v15 = vld [vmem:[#allocation2 + $0x20] sm:$0xff] }
 0x196   : > { %v1307_v48 = vpop.f32.mrf.mxu2 }
 0x197   : > { %v9061_v11 = vadd.f32 %v1307_v48, %v832_v30  ;;  %v1341_v57 = vpop.f32.mrf.mxu3  ;;  %v1242_v58 = vpop.f32.mrf.mxu0  ;;  %v6658_v30 = vor.u32 %v7714_v10, %v6655_v26  ;;  %v7710_v10 = vld [vmem:[%s8622_s21 + $0x4a4] sm:$0xf] }
 0x198   : > { %v9066_v62 = vadd.f32 %v1341_v57, %v833_v37  ;;  %v9068_v33 = vadd.f32 %v1242_v58, %v834_v35  ;;  %v1276_v34 = vpop.f32.mrf.mxu1  ;;  %v839_v37 = vadd.f32 %v8905_v50, %v441_v1  ;;  %v6358_v57 = vor.u32 %v7648_v59, %v6357_v55  ;;  %v6645_v50 = vld [vmem:[%s8622_s21 + $0x4a8] sm:$0xf]  ;;  %v6637_v1 = vld [vmem:[%s8622_s21 + $0x4a0] sm:$0xf] }
 0x199   : > { %v9070_v49 = vadd.f32 %v1276_v34, %v835_v3  ;;  %v9085_v3 = vld [vmem:[%s8614_s10 + $0xc] sm:$0xff]  ;;  %2819 = vmatpush.bf16.msra.mxu1 %v6658_v30  ;;  %v7711_v34 = vld [vmem:[%s8622_s21 + $0x4ac] sm:$0xf]  ;;  %v6638_v59 = vor.u32 %v7712_v9, %v6637_v1 }
 0x19a   : > { %1761 = vmatmul.bf16.gmra.mxu0 %v1567_v32  ;;  %v6650_v55 = vor.u32 %v7711_v34, %v6647_v61  ;;  %v444_v26 = vld [vmem:[#allocation2 + $0x128] sm:$0xff]  ;;  %v445_v30 = vld [vmem:[#allocation2 + $0x110] sm:$0xff]  ;;  %v7709_v9 = vld [vmem:[%s8622_s21 + $0x494] sm:$0xf0] }
 0x19b   : > { %1795 = vmatmul.bf16.gmra.mxu1 %v1567_v32  ;;  %1829 = vmatmul.bf16.gmra.mxu2 %v1567_v32 }
 0x19c   : > { %1863 = vmatmul.bf16.gmra.mxu3 %v1567_v32  ;;  %v7713_v32 = vld [vmem:[%s8622_s21 + $0x4b4] sm:$0xf0]  ;;  %2786 = vmatpush.bf16.msra.mxu0 %v6638_v59  ;;  %v6631_v59 = vld [vmem:[%s8622_s21 + $0x498] sm:$0xf0] }
 0x19d   : > { %v6646_v16 = vor.u32 %v7713_v32, %v6645_v50  ;;  %2888 = vmatpush.bf16.msra.mxu3 %v6650_v55  ;;  %v446_v55 = vld [vmem:[#allocation2 + $0x8] sm:$0xff] }
 0x19e   : > { %v1310_v38 = vpop.f32.mrf.mxu2 }
 0x19f   : > { %v9082_v35 = vadd.f32 %v1310_v38, %v836_v12  ;;  %v1344_v48 = vpop.f32.mrf.mxu3  ;;  %v1244_v44 = vpop.f32.mrf.mxu0  ;;  %v6639_v12 = vld [vmem:[%s8622_s21 + $0x4b0] sm:$0xf0]  ;;  %2854 = vmatpush.bf16.msra.mxu2 %v6646_v16 }
 0x1a0   : > { %v9087_v46 = vadd.f32 %v1344_v48, %v837_v28  ;;  %v9089_v47 = vadd.f32 %v1244_v44, %v838_v29  ;;  %v1278_v58 = vpop.f32.mrf.mxu1  ;;  %v2061_v28 = vrot.slane %v6358_v57, 1  ;;  %v2062_v29 = vrot.slane %v9085_v3, 1  ;;  %v6607_v3 = vld [vmem:[%s8622_s21 + $0x470] sm:$0xf0] }
 0x1a1   : > { %v9094_v36 = vadd.f32 %v1278_v58, %v839_v37  ;;  %v6642_v38 = vor.u32 %v7710_v10, %v6639_v12  ;;  %v840_v37 = vadd.f32 %v8916_v2, %v442_v8  ;;  %v841_v48 = vadd.f32 %v8918_v4, %v443_v15  ;;  %v7707_v8 = vld [vmem:[%s8622_s21 + $0x48c] sm:$0xf]  ;;  %v447_v10 = vld [vmem:[#allocation2 + $0x98] sm:$0xff]  ;;  %v448_v12 = vld [vmem:[#allocation2 + $0xa8] sm:$0xff] }
 0x1a2   : > { %v842_v44 = vadd.f32 %v8920_v5, %v444_v26  ;;  %v843_v57 = vadd.f32 %v8923_v7, %v445_v30  ;;  %v2063_v16 = vsel %vm1556_vm1, %v2061_v28, %v2062_v29  ;;  %v6629_v5 = vld [vmem:[%s8622_s21 + $0x488] sm:$0xf]  ;;  %v6634_v15 = vor.u32 %v7707_v8, %v6631_v59 }
 0x1a3   : > { %2820 = vmatpush.bf16.msra.mxu1 %v6642_v38  ;;  %v6630_v7 = vor.u32 %v7709_v9, %v6629_v5  ;;  %v449_v26 = vld [vmem:[#allocation2 + $0x90] sm:$0xff]  ;;  %v844_v28 = vadd.f32 %v8929_v18, %v446_v55  ;;  %v845_v38 = vadd.f32 %v8931_v19, %v447_v10  ;;  %v846_v30 = vadd.f32 %v8933_v20, %v448_v12  ;;  %v7708_v20 = vld [vmem:[%s8622_s21 + $0x48c] sm:$0xf0]  ;;  %v7705_v55 = vld [vmem:[%s8622_s21 + $0x474] sm:$0xf0] }
 0x1a4   : > { %2889 = vmatpush.bf16.msra.mxu3 %v6634_v15  ;;  %v6613_v8 = vld [vmem:[%s8622_s21 + $0x468] sm:$0xf]  ;;  %v7703_v12 = vld [vmem:[%s8622_s21 + $0x46c] sm:$0xf]  ;;  %v6615_v15 = vld [vmem:[%s8622_s21 + $0x478] sm:$0xf0] }
 0x1a5   : > { %2855 = vmatpush.bf16.msra.mxu2 %v6630_v7  ;;  %v450_v7 = vld [vmem:[#allocation2 + $0xe0] sm:$0xff]  ;;  %v6614_v10 = vor.u32 %v7705_v55, %v6613_v8  ;;  %v6605_v55 = vld [vmem:[%s8622_s21 + $0x460] sm:$0xf] }
 0x1a6   : > { %v1312_v58 = vpop.f32.mrf.mxu2 }
 0x1a7   : > { %v9106_v50 = vadd.f32 %v1312_v58, %v840_v37  ;;  %v1346_v32 = vpop.f32.mrf.mxu3  ;;  %v1247_v34 = vpop.f32.mrf.mxu0 }
 0x1a8   : > { %v9111_v61 = vadd.f32 %v1346_v32, %v841_v48  ;;  %v9113_v2 = vadd.f32 %v1247_v34, %v842_v44  ;;  %v1281_v1 = vpop.f32.mrf.mxu1  ;;  %v847_v48 = vadd.f32 %v8938_v22, %v449_v26  ;;  %v9128_v32 = vld [vmem:[%s8614_s10 + $0x14] sm:$0xff]  ;;  %v6623_v22 = vld [vmem:[%s8622_s21 + $0x490] sm:$0xf0] }
 0x1a9   : > { %v9115_v4 = vadd.f32 %v1281_v1, %v843_v57  ;;  %v7706_v1 = vld [vmem:[%s8622_s21 + $0x484] sm:$0xf]  ;;  %2856 = vmatpush.bf16.msra.mxu2 %v6614_v10 }
 0x1aa   : > { %2245 = vmatmul.bf16.vlgmr.msrb.gmra.mxu0 %v2063_v16  ;;  %v6626_v59 = vor.u32 %v7706_v1, %v6623_v22  ;;  %v451_v26 = vld [vmem:[#allocation2 + $0x88] sm:$0xff] }
 0x1ab   : > { %2279 = vmatmul.bf16.vlgmr.msrb.gmra.mxu1 %v2063_v16  ;;  %2313 = vmatmul.bf16.vlgmr.msrb.gmra.mxu2 %v2063_v16 }
 0x1ac   : > { %2347 = vmatmul.bf16.vlgmr.msrb.gmra.mxu3 %v2063_v16  ;;  %v6621_v16 = vld [vmem:[%s8622_s21 + $0x480] sm:$0xf]  ;;  %2821 = vmatpush.bf16.msra.mxu1 %v6626_v59  ;;  %v454_v59 = vld [vmem:[#allocation2 + $0xd8] sm:$0xff] }
 0x1ad   : > { %v6622_v9 = vor.u32 %v7708_v20, %v6621_v16 }
 0x1ae   : > { %v1315_v37 = vpop.f32.mrf.mxu2 }
 0x1af   : > { %v9125_v44 = vadd.f32 %v1315_v37, %v844_v28  ;;  %v1349_v58 = vpop.f32.mrf.mxu3  ;;  %v1249_v57 = vpop.f32.mrf.mxu0  ;;  %v452_v28 = vld [vmem:[#allocation2 + $0xc0] sm:$0xff]  ;;  %2787 = vmatpush.bf16.msra.mxu0 %v6622_v9  ;;  %v453_v37 = vld [vmem:[#allocation2 + $0x118] sm:$0xff] }
 0x1b0   : > { %v9130_v18 = vadd.f32 %v1349_v58, %v845_v38  ;;  %v9132_v34 = vadd.f32 %v1249_v57, %v846_v30  ;;  %v1283_v19 = vpop.f32.mrf.mxu1  ;;  %v2064_v38 = vrot.slane %v9128_v32, 1  ;;  %v6618_v30 = vor.u32 %v7703_v12, %v6615_v15  ;;  %v455_v12 = vld [vmem:[#allocation2 + $0xa0] sm:$0xff]  ;;  %v457_v15 = vld [vmem:[#allocation2 + $0x130] sm:$0xff] }
 0x1b1   : > { %v9137_v5 = vadd.f32 %v1283_v19, %v847_v48  ;;  %v848_v48 = vadd.f32 %v8949_v40, %v450_v7  ;;  %v849_v58 = vadd.f32 %v8951_v41, %v451_v26  ;;  %v850_v57 = vadd.f32 %v8953_v42, %v452_v28  ;;  %v7702_v7 = vld [vmem:[%s8622_s21 + $0x464] sm:$0xf]  ;;  %v6597_v28 = vld [vmem:[%s8622_s21 + $0x448] sm:$0xf] }
 0x1b2   : > { %2890 = vmatpush.bf16.msra.mxu3 %v6618_v30  ;;  %v851_v16 = vadd.f32 %v8956_v45, %v453_v37  ;;  %v2065_v40 = vsel %vm1556_vm1, %v2062_v29, %v2064_v38  ;;  %v7704_v45 = vld [vmem:[%s8622_s21 + $0x46c] sm:$0xf0]  ;;  %v456_v29 = vld [vmem:[#allocation2 + $0x68] sm:$0xff]  ;;  %v6610_v26 = vor.u32 %v7702_v7, %v6607_v3  ;;  %v7701_v30 = vld [vmem:[%s8622_s21 + $0x454] sm:$0xf0] }
 0x1b3   : > { %v6606_v10 = vor.u32 %v7704_v45, %v6605_v55  ;;  %v7699_v37 = vld [vmem:[%s8622_s21 + $0x44c] sm:$0xf]  ;;  %v7700_v3 = vld [vmem:[%s8622_s21 + $0x44c] sm:$0xf0] }
 0x1b4   : > { %2822 = vmatpush.bf16.msra.mxu1 %v6610_v26  ;;  %v459_v26 = vld [vmem:[#allocation2 + $0xe8] sm:$0xff] }
 0x1b5   : > { %2788 = vmatpush.bf16.msra.mxu0 %v6606_v10  ;;  %v6589_v10 = vld [vmem:[%s8622_s21 + $0x440] sm:$0xf] }
 0x1b6   : > { %v1317_v19 = vpop.f32.mrf.mxu2 }
 0x1b7   : > { %v9149_v20 = vadd.f32 %v1317_v19, %v848_v48  ;;  %v1351_v1 = vpop.f32.mrf.mxu3  ;;  %v1252_v9 = vpop.f32.mrf.mxu0  ;;  %v852_v48 = vadd.f32 %v8966_v60, %v454_v59  ;;  %v853_v19 = vadd.f32 %v8968_v63, %v455_v12  ;;  %v9177_v60 = vld [vmem:[%s8614_s10 + $0x1c] sm:$0xff]  ;;  %v7698_v12 = vld [vmem:[%s8622_s21 + $0x444] sm:$0xf] }
 0x1b8   : > { %v9156_v22 = vadd.f32 %v1351_v1, %v849_v58  ;;  %v9158_v8 = vadd.f32 %v1252_v9, %v850_v57  ;;  %v1286_v41 = vpop.f32.mrf.mxu1  ;;  %v6598_v58 = vor.u32 %v7701_v30, %v6597_v28  ;;  %v6599_v57 = vld [vmem:[%s8622_s21 + $0x458] sm:$0xf0]  ;;  %v460_v28 = vld [vmem:[#allocation2 + $0x58] sm:$0xff]  ;;  %v2066_v30 = vrot.slane %v9177_v60, 1 }
 0x1b9   : > { %v9160_v42 = vadd.f32 %v1286_v41, %v851_v16  ;;  %v854_v16 = vadd.f32 %v8970_v0, %v456_v29  ;;  %v6602_v9 = vor.u32 %v7699_v37, %v6599_v57  ;;  %v6590_v29 = vor.u32 %v7700_v3, %v6589_v10  ;;  %v6581_v10 = vld [vmem:[%s8622_s21 + $0x428] sm:$0xf] }
 0x1ba   : > { %2250 = vmatmul.bf16.gmra.mxu0 %v2065_v40  ;;  %2857 = vmatpush.bf16.msra.mxu2 %v6598_v58  ;;  %v857_v57 = vadd.f32 %v8984_v24, %v459_v26  ;;  %v465_v26 = vld [vmem:[#allocation2] sm:$0xff] }
 0x1bb   : > { %2284 = vmatmul.bf16.gmra.mxu1 %v2065_v40  ;;  %2318 = vmatmul.bf16.gmra.mxu2 %v2065_v40 }
 0x1bc   : > { %2352 = vmatmul.bf16.gmra.mxu3 %v2065_v40  ;;  %v855_v40 = vadd.f32 %v8975_v6, %v457_v15  ;;  %v458_v6 = vld [vmem:[#allocation2 + $0x50] sm:$0xff]  ;;  %v6591_v15 = vld [vmem:[%s8622_s21 + $0x450] sm:$0xf0]  ;;  %2789 = vmatpush.bf16.msra.mxu0 %v6590_v29 }
 0x1bd   : > { %2891 = vmatpush.bf16.msra.mxu3 %v6602_v9  ;;  %v6594_v37 = vor.u32 %v7698_v12, %v6591_v15  ;;  %v856_v58 = vadd.f32 %v8982_v23, %v458_v6  ;;  %v6583_v6 = vld [vmem:[%s8622_s21 + $0x438] sm:$0xf0]  ;;  %v462_v29 = vld [vmem:[#allocation2 + $0x30] sm:$0xff]  ;;  %v464_v15 = vld [vmem:[#allocation2 + $0x28] sm:$0xff] }
 0x1be   : > { %v1320_v1 = vpop.f32.mrf.mxu2 }
 0x1bf   : > { %v9174_v41 = vadd.f32 %v1320_v1, %v852_v48  ;;  %v1354_v55 = vpop.f32.mrf.mxu3  ;;  %v1254_v45 = vpop.f32.mrf.mxu0  ;;  %v461_v48 = vld [vmem:[#allocation2 + $0x78] sm:$0xff]  ;;  %2823 = vmatpush.bf16.msra.mxu1 %v6594_v37 }
 0x1c0   : > { %v9179_v7 = vadd.f32 %v1354_v55, %v853_v19  ;;  %v9181_v59 = vadd.f32 %v1254_v45, %v854_v16  ;;  %v1288_v63 = vpop.f32.mrf.mxu1  ;;  %v858_v19 = vadd.f32 %v8986_v25, %v460_v28  ;;  %v859_v1 = vadd.f32 %v8989_v27, %v461_v48  ;;  %v7697_v25 = vld [vmem:[%s8622_s21 + $0x434] sm:$0xf0]  ;;  %v7695_v27 = vld [vmem:[%s8622_s21 + $0x42c] sm:$0xf]  ;;  %v6573_v28 = vld [vmem:[%s8622_s21 + $0x420] sm:$0xf] }
 0x1c1   : > { %v9183_v0 = vadd.f32 %v1288_v63, %v855_v40  ;;  %v2067_v45 = vsel %vm1556_vm1, %v2064_v38, %v2066_v30  ;;  %v6582_v12 = vor.u32 %v7697_v25, %v6581_v10  ;;  %v6586_v32 = vor.u32 %v7695_v27, %v6583_v6  ;;  %v463_v38 = vld [vmem:[#allocation2 + $0x40] sm:$0xff]  ;;  %v7696_v37 = vld [vmem:[%s8622_s21 + $0x42c] sm:$0xf0]  ;;  %v7694_v48 = vld [vmem:[%s8622_s21 + $0x424] sm:$0xf] }
 0x1c2   : > { %v6565_v6 = vld [vmem:[%s8622_s21 + $0x408] sm:$0xf] }
 0x1c3   : > { %2858 = vmatpush.bf16.msra.mxu2 %v6582_v12  ;;  %2892 = vmatpush.bf16.msra.mxu3 %v6586_v32  ;;  %v466_v32 = vld [vmem:[#allocation2 + $0xb8] sm:$0xff] }
 0x1c6   : > { %v1322_v16 = vpop.f32.mrf.mxu2 }
 0x1c7   : > { %v9194_v9 = vadd.f32 %v1322_v16, %v856_v58  ;;  %v1356_v40 = vpop.f32.mrf.mxu3  ;;  %v1257_v55 = vpop.f32.mrf.mxu0  ;;  %v860_v58 = vadd.f32 %v8999_v51, %v462_v29  ;;  %v861_v16 = vadd.f32 %v9001_v53, %v463_v38  ;;  %v9222_v51 = vld [vmem:[%s8614_s10 + $0x24] sm:$0xff]  ;;  %v7691_v29 = vld [vmem:[%s8622_s21 + $0x40c] sm:$0xf] }
 0x1c8   : > { %v9201_v23 = vadd.f32 %v1356_v40, %v857_v57  ;;  %v9203_v63 = vadd.f32 %v1257_v55, %v858_v19  ;;  %v1291_v24 = vpop.f32.mrf.mxu1  ;;  %v6574_v57 = vor.u32 %v7696_v37, %v6573_v28  ;;  %v6575_v19 = vld [vmem:[%s8622_s21 + $0x430] sm:$0xf0]  ;;  %v2068_v28 = vrot.slane %v9222_v51, 1 }
 0x1c9   : > { %v9208_v3 = vadd.f32 %v1291_v24, %v859_v1  ;;  %v862_v1 = vadd.f32 %v9003_v54, %v464_v15  ;;  %v6578_v55 = vor.u32 %v7694_v48, %v6575_v19  ;;  %v6567_v15 = vld [vmem:[%s8622_s21 + $0x418] sm:$0xf0]  ;;  %v864_v48 = vadd.f32 %v9016_v21, %v466_v32 }
 0x1ca   : > { %2255 = vmatmul.bf16.gmra.mxu0 %v2067_v45  ;;  %v6570_v37 = vor.u32 %v7691_v29, %v6567_v15  ;;  %v7758_v15 = vld [vmem:[%s8622_s21 + $0x5f4] sm:$0xf0] }
 0x1cb   : > { %2289 = vmatmul.bf16.gmra.mxu1 %v2067_v45  ;;  %2323 = vmatmul.bf16.gmra.mxu2 %v2067_v45 }
 0x1cc   : > { %2357 = vmatmul.bf16.gmra.mxu3 %v2067_v45  ;;  %v863_v45 = vadd.f32 %v9008_v56, %v465_v26  ;;  %2790 = vmatpush.bf16.msra.mxu0 %v6574_v57  ;;  %v7693_v56 = vld [vmem:[%s8622_s21 + $0x414] sm:$0xf0] }
 0x1cd   : > { %2824 = vmatpush.bf16.msra.mxu1 %v6578_v55  ;;  %v6566_v38 = vor.u32 %v7693_v56, %v6565_v6  ;;  %v467_v26 = vld [vmem:[#allocation2 + $0x60] sm:$0xff]  ;;  %2893 = vmatpush.bf16.msra.mxu3 %v6570_v37 }
 0x1ce   : > { %v1325_v40 = vpop.f32.mrf.mxu2  ;;  %v865_v57 = vadd.f32 %v9022_v31, %v467_v26  ;;  %v7756_v26 = vld [vmem:[%s8622_s21 + $0x5ec] sm:$0xf]  ;;  %v6859_v37 = vld [vmem:[%s8622_s21 + $0x5f8] sm:$0xf0] }
 0x1cf   : > { %v9219_v24 = vadd.f32 %v1325_v40, %v860_v58  ;;  %v1359_v10 = vpop.f32.mrf.mxu3  ;;  %v1259_v25 = vpop.f32.mrf.mxu0  ;;  %2859 = vmatpush.bf16.msra.mxu2 %v6566_v38  ;;  %v1959_v58 = vld [vmem:[%s8614_s10 + $0x2c] sm:$0x1] }
 0x1d0   : > { %v9224_v27 = vadd.f32 %v1359_v10, %v861_v16  ;;  %v9226_v53 = vadd.f32 %v1259_v25, %v862_v1  ;;  %v1293_v12 = vpop.f32.mrf.mxu1  ;;  %v6557_v16 = vld [vmem:[%s8622_s21 + $0x400] sm:$0xf]  ;;  %v7692_v1 = vld [vmem:[%s8622_s21 + $0x40c] sm:$0xf0]  ;;  %v7690_v40 = vld [vmem:[%s8622_s21 + $0x404] sm:$0xf]  ;;  %v2069_v25 = vsel %vm1556_vm1, %v2066_v30, %v2068_v28  ;;  %v2054_v29 = vunpack.c.l.b16 %v1959_v58 }
 0x1d1   : > { %v9228_v54 = vadd.f32 %v1293_v12, %v863_v45  ;;  %v6558_v21 = vor.u32 %v7692_v1, %v6557_v16  ;;  %v6559_v12 = vld [vmem:[%s8622_s21 + $0x410] sm:$0xf0]  ;;  %v6857_v30 = vld [vmem:[%s8622_s21 + $0x5e8] sm:$0xf]  ;;  %v6862_v58 = vor.u32 %v7756_v26, %v6859_v37  ;;  %v7752_v26 = vld [vmem:[%s8622_s21 + $0x5cc] sm:$0xf] }
 0x1d2   : > { %v6562_v32 = vor.u32 %v7690_v40, %v6559_v12  ;;  %v2060_v60 = vpack.c.b16 %v2054_v29, %v2054_v29  ;;  %v7755_v12 = vld [vmem:[%s8622_s21 + $0x5e4] sm:$0xf]  ;;  %v6851_v29 = vld [vmem:[%s8622_s21 + $0x5f0] sm:$0xf0] }
 0x1d3   : > { %2791 = vmatpush.bf16.msra.mxu0 %v6558_v21  ;;  %3391 = vmatpush.bf16.msrb.mxu3 %v6862_v58  ;;  %v7757_v21 = vld [vmem:[%s8622_s21 + $0x5ec] sm:$0xf0] }
 0x1d4   : > { %2825 = vmatpush.bf16.msra.mxu1 %v6562_v32  ;;  %v6841_v32 = vld [vmem:[%s8622_s21 + $0x5c8] sm:$0xf] }
 0x1d6   : > { %v1327_v19 = vpop.f32.mrf.mxu2 }
 0x1d7   : > { %v9241_v55 = vadd.f32 %v1327_v19, %v864_v48  ;;  %v1361_v45 = vpop.f32.mrf.mxu3  ;;  %v1742_v10 = vpop.f32.mrf.mxu0 }
 0x1d8   : > { %v9249_v31 = vadd.f32 %v1361_v45, %v865_v57  ;;  %v9252_v6 = vadd.f32 %v1742_v10, %v9028_v43  ;;  %v1776_v56 = vpop.f32.mrf.mxu1  ;;  %v6858_v43 = vor.u32 %v7758_v15, %v6857_v30  ;;  %v2070_v45 = vrot.slane %v2060_v60, 1  ;;  %v6537_v10 = vld [vmem:[%s8614_s10 + $0x4] sm:$0xe]  ;;  %v7685_v30 = vld [vmem:[%s8614_s10 + $0x4] sm:$0xf0] }
 0x1d9   : > { %v9255_v38 = vadd.f32 %v1776_v56, %v9031_v52  ;;  %v6538_v37 = vor.u32 %v7685_v30, %v6537_v10 }
 0x1da   : > { %2260 = vmatmul.bf16.gmra.mxu0 %v2069_v25  ;;  %3357 = vmatpush.bf16.msrb.mxu2 %v6858_v43  ;;  %v6843_v43 = vld [vmem:[%s8622_s21 + $0x5d8] sm:$0xf0] }
 0x1db   : > { %2294 = vmatmul.bf16.gmra.mxu1 %v2069_v25  ;;  %2328 = vmatmul.bf16.gmra.mxu2 %v2069_v25  ;;  %v6846_v60 = vor.u32 %v7752_v26, %v6843_v43  ;;  %v2570_v51 = vshll.u32 %v6538_v37, 16 }
 0x1dc   : > { %2362 = vmatmul.bf16.gmra.mxu3 %v2069_v25  ;;  %v6849_v25 = vld [vmem:[%s8622_s21 + $0x5e0] sm:$0xf] }
 0x1dd   : > { %v6850_v56 = vor.u32 %v7757_v21, %v6849_v25  ;;  %3392 = vmatpush.bf16.msrb.mxu3 %v6846_v60  ;;  %v2572_v43 = vrot.slane %v2570_v51, 2  ;;  %v6827_v51 = vld [vmem:[%s8622_s21 + $0x5b8] sm:$0xf0] }
 0x1de   : > { %v1810_v48 = vpop.f32.mrf.mxu2 }
 0x1df   : > { %v9262_v52 = vadd.f32 %v1810_v48, %v9041_v39  ;;  %v1844_v57 = vpop.f32.mrf.mxu3  ;;  %v1744_v19 = vpop.f32.mrf.mxu0  ;;  %3289 = vmatpush.bf16.msrb.mxu0 %v6850_v56 }
 0x1e0   : > { %v9265_v16 = vadd.f32 %v1844_v57, %v9043_v13  ;;  %v9268_v1 = vadd.f32 %v1744_v19, %v9045_v14  ;;  %v1778_v40 = vpop.f32.mrf.mxu1  ;;  %v7754_v13 = vld [vmem:[%s8622_s21 + $0x5d4] sm:$0xf0]  ;;  %v6854_v14 = vor.u32 %v7755_v12, %v6851_v29  ;;  %v2071_v19 = vsel %vm1556_vm1, %v2068_v28, %v2070_v45  ;;  %v6833_v45 = vld [vmem:[%s8622_s21 + $0x5c0] sm:$0xf]  ;;  %v7753_v29 = vld [vmem:[%s8622_s21 + $0x5cc] sm:$0xf0] }
 0x1e1   : > { %v9271_v39 = vadd.f32 %v1778_v40, %v9047_v17  ;;  %v6842_v15 = vor.u32 %v7754_v13, %v6841_v32  ;;  %v7686_v40 = vld [vmem:[%s8614_s10 + $0xc] sm:$0xff]  ;;  %v2567_v12 = vshrl.u32 %v6538_v37, 16  ;;  %v6834_v32 = vor.u32 %v7753_v29, %v6833_v45  ;;  %v6835_v13 = vld [vmem:[%s8622_s21 + $0x5d0] sm:$0xf0] }
 0x1e2   : > { %3323 = vmatpush.bf16.msrb.mxu1 %v6854_v14  ;;  %v2575_v56 = vshrl.u32 %v7686_v40, 16  ;;  %v2578_v28 = vshll.u32 %v7686_v40, 16  ;;  %v7748_v40 = vld [vmem:[%s8622_s21 + $0x5ac] sm:$0xf] }
 0x1e3   : > { %3358 = vmatpush.bf16.msrb.mxu2 %v6842_v15  ;;  %v2569_v30 = vrot.slane %v2567_v12, 1  ;;  %3290 = vmatpush.bf16.msrb.mxu0 %v6834_v32  ;;  %v6830_v45 = vor.u32 %v7748_v40, %v6827_v51 }
 0x1e4   : > { %v2577_v60 = vrot.slane %v2575_v56, 1  ;;  %v6817_v56 = vld [vmem:[%s8622_s21 + $0x5a0] sm:$0xf] }
 0x1e5   : > { %v2573_v32 = vor.u32 %v2572_v43, %v2569_v30  ;;  %3393 = vmatpush.bf16.msrb.mxu3 %v6830_v45 }
 0x1e6   : > { %v1812_v17 = vpop.f32.mrf.mxu2 }
 0x1e7   : > { %v9284_v48 = vadd.f32 %v1812_v17, %v9061_v11  ;;  %v1846_v58 = vpop.f32.mrf.mxu3  ;;  %v1747_v57 = vpop.f32.mrf.mxu0  ;;  %v2580_v17 = vrot.slane %v2578_v28, 2  ;;  %v7749_v28 = vld [vmem:[%s8622_s21 + $0x5ac] sm:$0xf0] }
 0x1e8   : > { %v9291_v25 = vadd.f32 %v1846_v58, %v9066_v62  ;;  %v9294_v10 = vadd.f32 %v1747_v57, %v9068_v33  ;;  %v1781_v21 = vpop.f32.mrf.mxu1  ;;  %v7751_v62 = vld [vmem:[%s8622_s21 + $0x5c4] sm:$0xf]  ;;  %v6818_v29 = vor.u32 %v7749_v28, %v6817_v56 }
 0x1e9   : > { %v9297_v11 = vadd.f32 %v1781_v21, %v9070_v49  ;;  %v6838_v49 = vor.u32 %v7751_v62, %v6835_v13  ;;  %v6819_v62 = vld [vmem:[%s8622_s21 + $0x5b0] sm:$0xf0] }
 0x1ea   : > { %2265 = vmatmul.bf16.gmra.mxu0 %v2071_v19 }
 0x1eb   : > { %2299 = vmatmul.bf16.gmra.mxu1 %v2071_v19  ;;  %2333 = vmatmul.bf16.gmra.mxu2 %v2071_v19 }
 0x1ec   : > { %2367 = vmatmul.bf16.gmra.mxu3 %v2071_v19  ;;  %3324 = vmatpush.bf16.msrb.mxu1 %v6838_v49  ;;  %v7750_v19 = vld [vmem:[%s8622_s21 + $0x5b4] sm:$0xf0] }
 0x1ed   : > { %3291 = vmatpush.bf16.msrb.mxu0 %v6818_v29 }
 0x1ee   : > { %v1815_v33 = vpop.f32.mrf.mxu2 }
 0x1ef   : > { %v9304_v14 = vadd.f32 %v1815_v33, %v9082_v35  ;;  %v1849_v15 = vpop.f32.mrf.mxu3  ;;  %v1749_v26 = vpop.f32.mrf.mxu0  ;;  %v6825_v35 = vld [vmem:[%s8622_s21 + $0x5a8] sm:$0xf] }
 0x1f0   : > { %v9307_v37 = vadd.f32 %v1849_v15, %v9087_v46  ;;  %v9310_v58 = vadd.f32 %v1749_v26, %v9089_v47  ;;  %v1783_v57 = vpop.f32.mrf.mxu1  ;;  %v6826_v12 = vor.u32 %v7750_v19, %v6825_v35  ;;  %v7747_v46 = vld [vmem:[%s8622_s21 + $0x5a4] sm:$0xf]  ;;  %v9323_v47 = vor.u32 %v2580_v17, %v2577_v60  ;;  %v6809_v35 = vld [vmem:[%s8622_s21 + $0x588] sm:$0xf]  ;;  %v7746_v19 = vld [vmem:[%s8622_s21 + $0x594] sm:$0xf0] }
 0x1f1   : > { %v9316_v21 = vadd.f32 %v1783_v57, %v9094_v36  ;;  %v6822_v13 = vor.u32 %v7747_v46, %v6819_v62  ;;  %v7687_v26 = vld [vmem:[%s8614_s10 + $0x14] sm:$0xff]  ;;  %v6810_v40 = vor.u32 %v7746_v19, %v6809_v35  ;;  %v7742_v35 = vld [vmem:[%s8622_s21 + $0x574] sm:$0xf0] }
 0x1f2   : > { %3359 = vmatpush.bf16.msrb.mxu2 %v6826_v12  ;;  %v2582_v30 = vsel %vm2565_vm2, %v2573_v32, %v9323_v47  ;;  %v6811_v12 = vld [vmem:[%s8622_s21 + $0x598] sm:$0xf0]  ;;  %v2584_v51 = vshrl.u32 %v7687_v26, 16 }
 0x1f3   : > { %3325 = vmatpush.bf16.msrb.mxu1 %v6822_v13 }
 0x1f4   : > { %v2586_v29 = vrot.slane %v2584_v51, 1 }
 0x1f6   : > { %v1817_v36 = vpop.f32.mrf.mxu2  ;;  %3360 = vmatpush.bf16.msrb.mxu2 %v6810_v40  ;;  %v7740_v40 = vld [vmem:[%s8622_s21 + $0x56c] sm:$0xf] }
 0x1f7   : > { %v9326_v33 = vadd.f32 %v1817_v36, %v9106_v50  ;;  %v1851_v49 = vpop.f32.mrf.mxu3  ;;  %v1752_v15 = vpop.f32.mrf.mxu0  ;;  %v7744_v50 = vld [vmem:[%s8622_s21 + $0x58c] sm:$0xf]  ;;  %v6801_v36 = vld [vmem:[%s8622_s21 + $0x580] sm:$0xf] }
 0x1f8   : > { %v9332_v43 = vadd.f32 %v1851_v49, %v9111_v61  ;;  %v9335_v60 = vadd.f32 %v1752_v15, %v9113_v2  ;;  %v1786_v17 = vpop.f32.mrf.mxu1  ;;  %v2587_v61 = vshll.u32 %v7687_v26, 16  ;;  %v6814_v56 = vor.u32 %v7744_v50, %v6811_v12  ;;  %v7745_v49 = vld [vmem:[%s8622_s21 + $0x58c] sm:$0xf0]  ;;  %v7743_v15 = vld [vmem:[%s8622_s21 + $0x584] sm:$0xf] }
 0x1f9   : > { %v9338_v57 = vadd.f32 %v1786_v17, %v9115_v4  ;;  %v6803_v26 = vld [vmem:[%s8622_s21 + $0x590] sm:$0xf0]  ;;  %v6793_v17 = vld [vmem:[%s8622_s21 + $0x568] sm:$0xf] }
 0x1fa   : > { %2792 = vmatmul.bf16.vlgmr.msra.gmra.mxu0 %v2582_v30  ;;  %3394 = vmatpush.bf16.msrb.mxu3 %v6814_v56  ;;  %v2589_v46 = vrot.slane %v2587_v61, 2  ;;  %v6806_v19 = vor.u32 %v7743_v15, %v6803_v26  ;;  %v6794_v50 = vor.u32 %v7742_v35, %v6793_v17  ;;  %v6787_v15 = vld [vmem:[%s8622_s21 + $0x570] sm:$0xf0]  ;;  %v6777_v26 = vld [vmem:[%s8622_s21 + $0x548] sm:$0xf] }
 0x1fb   : > { %2826 = vmatmul.bf16.vlgmr.msra.gmra.mxu1 %v2582_v30  ;;  %2860 = vmatmul.bf16.vlgmr.msra.gmra.mxu2 %v2582_v30  ;;  %v7738_v17 = vld [vmem:[%s8622_s21 + $0x554] sm:$0xf0]  ;;  %v7736_v35 = vld [vmem:[%s8622_s21 + $0x54c] sm:$0xf] }
 0x1fc   : > { %2894 = vmatmul.bf16.vlgmr.msra.gmra.mxu3 %v2582_v30  ;;  %v2590_v12 = vor.u32 %v2589_v46, %v2586_v29  ;;  %3326 = vmatpush.bf16.msrb.mxu1 %v6806_v19  ;;  %v6779_v19 = vld [vmem:[%s8622_s21 + $0x558] sm:$0xf0] }
 0x1fd   : > { %3361 = vmatpush.bf16.msrb.mxu2 %v6794_v50 }
 0x1fe   : > { %v1820_v2 = vpop.f32.mrf.mxu2 }
 0x1ff   : > { %v9345_v4 = vadd.f32 %v1820_v2, %v9125_v44  ;;  %v1854_v28 = vpop.f32.mrf.mxu3  ;;  %v1754_v45 = vpop.f32.mrf.mxu0  ;;  %v6802_v44 = vor.u32 %v7745_v49, %v6801_v36  ;;  %v2591_v2 = vsel %vm2565_vm2, %v9323_v47, %v2590_v12  ;;  %v7741_v36 = vld [vmem:[%s8622_s21 + $0x56c] sm:$0xf0]  ;;  %v7739_v49 = vld [vmem:[%s8622_s21 + $0x564] sm:$0xf] }
 0x200   : > { %v9348_v62 = vadd.f32 %v1854_v28, %v9130_v18  ;;  %v9351_v32 = vadd.f32 %v1754_v45, %v9132_v34  ;;  %v1788_v13 = vpop.f32.mrf.mxu1  ;;  %v6795_v18 = vld [vmem:[%s8622_s21 + $0x578] sm:$0xf0]  ;;  %v7688_v28 = vld [vmem:[%s8614_s10 + $0x1c] sm:$0xff] }
 0x201   : > { %v9357_v30 = vadd.f32 %v1788_v13, %v9137_v5  ;;  %3292 = vmatpush.bf16.msrb.mxu0 %v6802_v44  ;;  %v6798_v34 = vor.u32 %v7740_v40, %v6795_v18  ;;  %v2596_v44 = vshll.u32 %v7688_v28, 16  ;;  %v6782_v40 = vor.u32 %v7736_v35, %v6779_v19 }
 0x203   : > { %3395 = vmatpush.bf16.msrb.mxu3 %v6798_v34 }
 0x206   : > { %v1822_v5 = vpop.f32.mrf.mxu2 }
 0x207   : > { %v9365_v51 = vadd.f32 %v1822_v5, %v9149_v20  ;;  %v1856_v61 = vpop.f32.mrf.mxu3  ;;  %v1757_v56 = vpop.f32.mrf.mxu0  ;;  %v6785_v20 = vld [vmem:[%s8622_s21 + $0x560] sm:$0xf]  ;;  %3396 = vmatpush.bf16.msrb.mxu3 %v6782_v40  ;;  %v7734_v40 = vld [vmem:[%s8622_s21 + $0x534] sm:$0xf0] }
 0x208   : > { %v9371_v45 = vadd.f32 %v1856_v61, %v9156_v22  ;;  %v9374_v29 = vadd.f32 %v1757_v56, %v9158_v8  ;;  %v1791_v46 = vpop.f32.mrf.mxu1  ;;  %v6786_v47 = vor.u32 %v7741_v36, %v6785_v20  ;;  %v2593_v22 = vshrl.u32 %v7688_v28, 16  ;;  %v6769_v36 = vld [vmem:[%s8622_s21 + $0x540] sm:$0xf] }
 0x209   : > { %v9377_v13 = vadd.f32 %v1791_v46, %v9160_v42  ;;  %v6790_v8 = vor.u32 %v7739_v49, %v6787_v15  ;;  %v6778_v42 = vor.u32 %v7738_v17, %v6777_v26  ;;  %v2598_v56 = vrot.slane %v2596_v44, 2  ;;  %v7735_v49 = vld [vmem:[%s8622_s21 + $0x544] sm:$0xf]  ;;  %v6771_v15 = vld [vmem:[%s8622_s21 + $0x550] sm:$0xf0] }
 0x20a   : > { %2797 = vmatmul.bf16.gmra.mxu0 %v2591_v2  ;;  %v2595_v61 = vrot.slane %v2593_v22, 1  ;;  %v7689_v17 = vld [vmem:[%s8614_s10 + $0x24] sm:$0xff] }
 0x20b   : > { %2831 = vmatmul.bf16.gmra.mxu1 %v2591_v2  ;;  %2865 = vmatmul.bf16.gmra.mxu2 %v2591_v2 }
 0x20c   : > { %2899 = vmatmul.bf16.gmra.mxu3 %v2591_v2  ;;  %3293 = vmatpush.bf16.msrb.mxu0 %v6786_v47  ;;  %v9403_v22 = vor.u32 %v2598_v56, %v2595_v61  ;;  %v6753_v56 = vld [vmem:[%s8622_s21 + $0x520] sm:$0xf] }
 0x20d   : > { %3327 = vmatpush.bf16.msrb.mxu1 %v6790_v8  ;;  %3362 = vmatpush.bf16.msrb.mxu2 %v6778_v42 }
 0x20e   : > { %v1825_v50 = vpop.f32.mrf.mxu2  ;;  %v2600_v26 = vsel %vm2565_vm2, %v2590_v12, %v9403_v22  ;;  %v6763_v12 = vld [vmem:[%s8622_s21 + $0x538] sm:$0xf0] }
 0x20f   : > { %v9388_v18 = vadd.f32 %v1825_v50, %v9174_v41  ;;  %v1859_v34 = vpop.f32.mrf.mxu3  ;;  %v1759_v5 = vpop.f32.mrf.mxu0  ;;  %v7737_v41 = vld [vmem:[%s8622_s21 + $0x54c] sm:$0xf0]  ;;  %v6761_v50 = vld [vmem:[%s8622_s21 + $0x528] sm:$0xf] }
 0x210   : > { %v9391_v2 = vadd.f32 %v1859_v34, %v9179_v7  ;;  %v9394_v28 = vadd.f32 %v1759_v5, %v9181_v59  ;;  %v1793_v46 = vpop.f32.mrf.mxu1  ;;  %v6770_v47 = vor.u32 %v7737_v41, %v6769_v36  ;;  %v6774_v7 = vor.u32 %v7735_v49, %v6771_v15  ;;  %v7731_v36 = vld [vmem:[%s8622_s21 + $0x524] sm:$0xf] }
 0x211   : > { %v9397_v20 = vadd.f32 %v1793_v46, %v9183_v0  ;;  %v6762_v5 = vor.u32 %v7734_v40, %v6761_v50  ;;  %v7733_v46 = vld [vmem:[%s8622_s21 + $0x52c] sm:$0xf0]  ;;  %v2463_v50 = vld [vmem:[%s8614_s10 + $0x2c] sm:$0x3]  ;;  %v6745_v40 = vld [vmem:[%s8622_s21 + $0x508] sm:$0xf] }
 0x212   : > { %3294 = vmatpush.bf16.msrb.mxu0 %v6770_v47  ;;  %3328 = vmatpush.bf16.msrb.mxu1 %v6774_v7  ;;  %v6754_v41 = vor.u32 %v7733_v46, %v6753_v56  ;;  %v6737_v56 = vld [vmem:[%s8622_s21 + $0x500] sm:$0xf]  ;;  %v7729_v46 = vld [vmem:[%s8622_s21 + $0x50c] sm:$0xf0] }
 0x213   : > { %3363 = vmatpush.bf16.msrb.mxu2 %v6762_v5  ;;  %v7728_v5 = vld [vmem:[%s8622_s21 + $0x50c] sm:$0xf] }
 0x216   : > { %v1827_v59 = vpop.f32.mrf.mxu2  ;;  %3295 = vmatpush.bf16.msrb.mxu0 %v6754_v41 }
 0x217   : > { %v9406_v44 = vadd.f32 %v1827_v59, %v9194_v9  ;;  %v1861_v0 = vpop.f32.mrf.mxu3  ;;  %v1762_v8 = vpop.f32.mrf.mxu0  ;;  %v7732_v9 = vld [vmem:[%s8622_s21 + $0x52c] sm:$0xf] }
 0x218   : > { %v9412_v35 = vadd.f32 %v1861_v0, %v9201_v23  ;;  %v9415_v42 = vadd.f32 %v1762_v8, %v9203_v63  ;;  %v1796_v19 = vpop.f32.mrf.mxu1  ;;  %v6766_v61 = vor.u32 %v7732_v9, %v6763_v12  ;;  %v2602_v23 = vshrl.u32 %v7689_v17, 16  ;;  %v7730_v9 = vld [vmem:[%s8622_s21 + $0x514] sm:$0xf0] }
 0x219   : > { %v9421_v34 = vadd.f32 %v1796_v19, %v9208_v3  ;;  %v2605_v63 = vshll.u32 %v7689_v17, 16  ;;  %v6755_v3 = vld [vmem:[%s8622_s21 + $0x530] sm:$0xf0]  ;;  %v6746_v12 = vor.u32 %v7730_v9, %v6745_v40  ;;  %v7037_v9 = vld [vmem:[%s8622_s21 + $0x6e8] sm:$0xf] }
 0x21a   : > { %2802 = vmatmul.bf16.gmra.mxu0 %v2600_v26  ;;  %3397 = vmatpush.bf16.msrb.mxu3 %v6766_v61  ;;  %v6758_v47 = vor.u32 %v7731_v36, %v6755_v3  ;;  %v2604_v0 = vrot.slane %v2602_v23, 1  ;;  %v6747_v61 = vld [vmem:[%s8622_s21 + $0x518] sm:$0xf0]  ;;  %v2558_v23 = vunpack.c.l.b16 %v2463_v50  ;;  %v7727_v36 = vld [vmem:[%s8622_s21 + $0x504] sm:$0xf] }
 0x21b   : > { %2836 = vmatmul.bf16.gmra.mxu1 %v2600_v26  ;;  %2870 = vmatmul.bf16.gmra.mxu2 %v2600_v26  ;;  %v2607_v8 = vrot.slane %v2605_v63, 2 }
 0x21c   : > { %2904 = vmatmul.bf16.gmra.mxu3 %v2600_v26  ;;  %3329 = vmatpush.bf16.msrb.mxu1 %v6758_v47  ;;  %v2564_v47 = vpack.c.b16 %v2558_v23, %v2558_v23 }
 0x21d   : > { %3364 = vmatpush.bf16.msrb.mxu2 %v6746_v12  ;;  %v7039_v12 = vld [vmem:[%s8622_s21 + $0x6f8] sm:$0xf0] }
 0x21e   : > { %v1830_v49 = vpop.f32.mrf.mxu2  ;;  %v2614_v40 = vshll.u32 %v2564_v47, 16 }
 0x21f   : > { %v9429_v15 = vadd.f32 %v1830_v49, %v9219_v24  ;;  %v1864_v7 = vpop.f32.mrf.mxu3  ;;  %v1764_v59 = vpop.f32.mrf.mxu0 }
 0x220   : > { %v9432_v26 = vadd.f32 %v1864_v7, %v9224_v27  ;;  %v9435_v17 = vadd.f32 %v1764_v59, %v9226_v53  ;;  %v1798_v19 = vpop.f32.mrf.mxu1  ;;  %v9445_v27 = vor.u32 %v2607_v8, %v2604_v0  ;;  %v6750_v53 = vor.u32 %v7728_v5, %v6747_v61  ;;  %v6739_v59 = vld [vmem:[%s8622_s21 + $0x510] sm:$0xf0]  ;;  %v7793_v5 = vld [vmem:[%s8622_s21 + $0x6ec] sm:$0xf] }
 0x221   : > { %v9439_v24 = vadd.f32 %v1798_v19, %v9228_v54  ;;  %v6738_v7 = vor.u32 %v7729_v46, %v6737_v56  ;;  %v6742_v19 = vor.u32 %v7727_v36, %v6739_v59  ;;  %v7042_v23 = vor.u32 %v7793_v5, %v7039_v12  ;;  %v7023_v5 = vld [vmem:[%s8622_s21 + $0x6d8] sm:$0xf0] }
 0x222   : > { %3398 = vmatpush.bf16.msrb.mxu3 %v6750_v53  ;;  %v2609_v49 = vsel %vm2565_vm2, %v9403_v22, %v9445_v27  ;;  %v2611_v22 = vshrl.u32 %v2564_v47, 16  ;;  %v2616_v46 = vrot.slane %v2614_v40, 2  ;;  %v7794_v47 = vld [vmem:[%s8622_s21 + $0x6ec] sm:$0xf0] }
 0x223   : > { %3296 = vmatpush.bf16.msrb.mxu0 %v6738_v7  ;;  %3330 = vmatpush.bf16.msrb.mxu1 %v6742_v19  ;;  %v7792_v7 = vld [vmem:[%s8622_s21 + $0x6e4] sm:$0xf]  ;;  %v7021_v19 = vld [vmem:[%s8622_s21 + $0x6c8] sm:$0xf] }
 0x224   : > { %v2613_v56 = vrot.slane %v2611_v22, 1  ;;  %v7791_v22 = vld [vmem:[%s8622_s21 + $0x6d4] sm:$0xf0] }
 0x226   : > { %v1832_v63 = vpop.f32.mrf.mxu2  ;;  %3895 = vmatpush.bf16.msra.mxu3 %v7042_v23  ;;  %v2617_v40 = vor.u32 %v2616_v46, %v2613_v56 }
 0x227   : > { %v9451_v41 = vadd.f32 %v1832_v63, %v9241_v55  ;;  %v1866_v54 = vpop.f32.mrf.mxu3  ;;  %v2246_v3 = vpop.f32.mrf.mxu0 }
 0x228   : > { %v9458_v0 = vadd.f32 %v1866_v54, %v9249_v31  ;;  %v9461_v8 = vadd.f32 %v2246_v3, %v9252_v6  ;;  %v2280_v55 = vpop.f32.mrf.mxu1  ;;  %v7795_v31 = vld [vmem:[%s8622_s21 + $0x6f4] sm:$0xf0]  ;;  %v2618_v23 = vsel %vm2565_vm2, %v9445_v27, %v2617_v40  ;;  %v7788_v27 = vld [vmem:[%s8622_s21 + $0x6c4] sm:$0xf] }
 0x229   : > { %v9464_v50 = vadd.f32 %v2280_v55, %v9255_v38  ;;  %v7038_v6 = vor.u32 %v7795_v31, %v7037_v9  ;;  %v7031_v55 = vld [vmem:[%s8622_s21 + $0x6f0] sm:$0xf0]  ;;  %v7789_v31 = vld [vmem:[%s8622_s21 + $0x6cc] sm:$0xf] }
 0x22a   : > { %2807 = vmatmul.bf16.gmra.mxu0 %v2609_v49  ;;  %v7034_v9 = vor.u32 %v7792_v7, %v7031_v55 }
 0x22b   : > { %2841 = vmatmul.bf16.gmra.mxu1 %v2609_v49  ;;  %2875 = vmatmul.bf16.gmra.mxu2 %v2609_v49 }
 0x22c   : > { %2909 = vmatmul.bf16.gmra.mxu3 %v2609_v49  ;;  %3861 = vmatpush.bf16.msra.mxu2 %v7038_v6  ;;  %v7029_v49 = vld [vmem:[%s8622_s21 + $0x6e0] sm:$0xf] }
 0x22d   : > { %v7030_v59 = vor.u32 %v7794_v47, %v7029_v49  ;;  %3827 = vmatpush.bf16.msra.mxu1 %v7034_v9  ;;  %v7013_v49 = vld [vmem:[%s8622_s21 + $0x6c0] sm:$0xf]  ;;  %v7790_v47 = vld [vmem:[%s8622_s21 + $0x6cc] sm:$0xf0] }
 0x22e   : > { %v2314_v61 = vpop.f32.mrf.mxu2 }
 0x22f   : > { %v9471_v38 = vadd.f32 %v2314_v61, %v9262_v52  ;;  %v2348_v53 = vpop.f32.mrf.mxu3  ;;  %v2248_v63 = vpop.f32.mrf.mxu0  ;;  %3793 = vmatpush.bf16.msra.mxu0 %v7030_v59 }
 0x230   : > { %v9474_v36 = vadd.f32 %v2348_v53, %v9265_v16  ;;  %v9477_v54 = vadd.f32 %v2248_v63, %v9268_v1  ;;  %v2282_v3 = vpop.f32.mrf.mxu1  ;;  %v7022_v16 = vor.u32 %v7791_v22, %v7021_v19  ;;  %v7026_v1 = vor.u32 %v7789_v31, %v7023_v5  ;;  %v9514_v22 = vld [vmem:[%s8614_s10 + $0xc] sm:$0xff] }
 0x231   : > { %v9480_v52 = vadd.f32 %v2282_v3, %v9271_v39  ;;  %v7722_v3 = vld [vmem:[%s8614_s10 + $0x4] sm:$0xf0]  ;;  %v7787_v5 = vld [vmem:[%s8622_s21 + $0x6b4] sm:$0xf0] }
 0x232   : > { %3862 = vmatpush.bf16.msra.mxu2 %v7022_v16  ;;  %3896 = vmatpush.bf16.msra.mxu3 %v7026_v1  ;;  %v7785_v1 = vld [vmem:[%s8622_s21 + $0x6ac] sm:$0xf] }
 0x236   : > { %v2316_v39 = vpop.f32.mrf.mxu2 }
 0x237   : > { %v9491_v6 = vadd.f32 %v2316_v39, %v9284_v48  ;;  %v2350_v12 = vpop.f32.mrf.mxu3  ;;  %v2251_v61 = vpop.f32.mrf.mxu0  ;;  %v6717_v48 = vld [vmem:[%s8614_s10 + $0x4] sm:$0xc] }
 0x238   : > { %v9496_v53 = vadd.f32 %v2350_v12, %v9291_v25  ;;  %v9499_v63 = vadd.f32 %v2251_v61, %v9294_v10  ;;  %v2285_v56 = vpop.f32.mrf.mxu1  ;;  %v7014_v25 = vor.u32 %v7790_v47, %v7013_v49  ;;  %v7015_v10 = vld [vmem:[%s8622_s21 + $0x6d0] sm:$0xf0]  ;;  %v6718_v40 = vor.u32 %v7722_v3, %v6717_v48  ;;  %v7007_v61 = vld [vmem:[%s8622_s21 + $0x6b8] sm:$0xf0]  ;;  %v7784_v49 = vld [vmem:[%s8622_s21 + $0x6a4] sm:$0xf] }
 0x239   : > { %v9502_v46 = vadd.f32 %v2285_v56, %v9297_v11  ;;  %v7018_v59 = vor.u32 %v7788_v27, %v7015_v10  ;;  %v7786_v56 = vld [vmem:[%s8622_s21 + $0x6ac] sm:$0xf0]  ;;  %v7010_v48 = vor.u32 %v7785_v1, %v7007_v61  ;;  %v6991_v1 = vld [vmem:[%s8622_s21 + $0x698] sm:$0xf0] }
 0x23a   : > { %2812 = vmatmul.bf16.gmra.mxu0 %v2618_v23  ;;  %v3113_v47 = vrot.slane %v6718_v40, 2 }
 0x23b   : > { %2846 = vmatmul.bf16.gmra.mxu1 %v2618_v23  ;;  %2880 = vmatmul.bf16.gmra.mxu2 %v2618_v23 }
 0x23c   : > { %2914 = vmatmul.bf16.gmra.mxu3 %v2618_v23  ;;  %3794 = vmatpush.bf16.msra.mxu0 %v7014_v25  ;;  %v6997_v23 = vld [vmem:[%s8622_s21 + $0x6a0] sm:$0xf] }
 0x23d   : > { %3828 = vmatpush.bf16.msra.mxu1 %v7018_v59  ;;  %v6998_v3 = vor.u32 %v7786_v56, %v6997_v23  ;;  %3897 = vmatpush.bf16.msra.mxu3 %v7010_v48  ;;  %v9555_v23 = vld [vmem:[%s8614_s10 + $0x14] sm:$0xff] }
 0x23e   : > { %v2319_v7 = vpop.f32.mrf.mxu2 }
 0x23f   : > { %v9511_v11 = vadd.f32 %v2319_v7, %v9304_v14  ;;  %v2353_v55 = vpop.f32.mrf.mxu3  ;;  %v2253_v19 = vpop.f32.mrf.mxu0  ;;  %v7005_v14 = vld [vmem:[%s8622_s21 + $0x6a8] sm:$0xf] }
 0x240   : > { %v9517_v9 = vadd.f32 %v2353_v55, %v9307_v37  ;;  %v9520_v16 = vadd.f32 %v2253_v19, %v9310_v58  ;;  %v2287_v31 = vpop.f32.mrf.mxu1  ;;  %v7006_v12 = vor.u32 %v7787_v5, %v7005_v14  ;;  %v6999_v37 = vld [vmem:[%s8622_s21 + $0x6b0] sm:$0xf0]  ;;  %v3114_v58 = vrot.slane %v9514_v22, 2  ;;  %3795 = vmatpush.bf16.msra.mxu0 %v6998_v3  ;;  %v7783_v14 = vld [vmem:[%s8622_s21 + $0x694] sm:$0xf0] }
 0x241   : > { %v9526_v39 = vadd.f32 %v2287_v31, %v9316_v21  ;;  %v7002_v27 = vor.u32 %v7784_v49, %v6999_v37  ;;  %v6989_v31 = vld [vmem:[%s8622_s21 + $0x688] sm:$0xf]  ;;  %v7781_v5 = vld [vmem:[%s8622_s21 + $0x68c] sm:$0xf]  ;;  %v6981_v49 = vld [vmem:[%s8622_s21 + $0x680] sm:$0xf] }
 0x242   : > { %3863 = vmatpush.bf16.msra.mxu2 %v7006_v12  ;;  %v3115_v59 = vsel %vm3112_vm3, %v3113_v47, %v3114_v58  ;;  %v7782_v37 = vld [vmem:[%s8622_s21 + $0x68c] sm:$0xf0]  ;;  %v7780_v47 = vld [vmem:[%s8622_s21 + $0x684] sm:$0xf] }
 0x243   : > { %3829 = vmatpush.bf16.msra.mxu1 %v7002_v27 }
 0x246   : > { %v2321_v21 = vpop.f32.mrf.mxu2 }
 0x247   : > { %v9535_v25 = vadd.f32 %v2321_v21, %v9326_v33  ;;  %v2355_v10 = vpop.f32.mrf.mxu3  ;;  %v2256_v7 = vpop.f32.mrf.mxu0  ;;  %v6990_v33 = vor.u32 %v7783_v14, %v6989_v31  ;;  %v6983_v21 = vld [vmem:[%s8622_s21 + $0x690] sm:$0xf0]  ;;  %v7777_v31 = vld [vmem:[%s8622_s21 + $0x66c] sm:$0xf]  ;;  %v6975_v14 = vld [vmem:[%s8622_s21 + $0x678] sm:$0xf0] }
 0x248   : > { %v9539_v55 = vadd.f32 %v2355_v10, %v9332_v43  ;;  %v9542_v19 = vadd.f32 %v2256_v7, %v9335_v60  ;;  %v2290_v22 = vpop.f32.mrf.mxu1  ;;  %v6994_v43 = vor.u32 %v7781_v5, %v6991_v1  ;;  %v6973_v10 = vld [vmem:[%s8622_s21 + $0x668] sm:$0xf]  ;;  %v7779_v7 = vld [vmem:[%s8622_s21 + $0x674] sm:$0xf0] }
 0x249   : > { %v9545_v40 = vadd.f32 %v2290_v22, %v9338_v57  ;;  %3864 = vmatpush.bf16.msra.mxu2 %v6990_v33  ;;  %v6974_v22 = vor.u32 %v7779_v7, %v6973_v10 }
 0x24a   : > { %3297 = vmatmul.bf16.vlgmr.msrb.gmra.mxu0 %v3115_v59  ;;  %3898 = vmatpush.bf16.msra.mxu3 %v6994_v43 }
 0x24b   : > { %3331 = vmatmul.bf16.vlgmr.msrb.gmra.mxu1 %v3115_v59  ;;  %3365 = vmatmul.bf16.vlgmr.msrb.gmra.mxu2 %v3115_v59 }
 0x24c   : > { %3399 = vmatmul.bf16.vlgmr.msrb.gmra.mxu3 %v3115_v59  ;;  %v6986_v59 = vor.u32 %v7780_v47, %v6983_v21  ;;  %v7775_v47 = vld [vmem:[%s8622_s21 + $0x654] sm:$0xf0]  ;;  %v6959_v21 = vld [vmem:[%s8622_s21 + $0x658] sm:$0xf0] }
 0x24d   : > { %3865 = vmatpush.bf16.msra.mxu2 %v6974_v22 }
 0x24e   : > { %v2324_v60 = vpop.f32.mrf.mxu2  ;;  %3830 = vmatpush.bf16.msra.mxu1 %v6986_v59 }
 0x24f   : > { %v9552_v57 = vadd.f32 %v2324_v60, %v9345_v4  ;;  %v2358_v12 = vpop.f32.mrf.mxu3  ;;  %v2258_v61 = vpop.f32.mrf.mxu0  ;;  %v6982_v4 = vor.u32 %v7782_v37, %v6981_v49  ;;  %v7776_v49 = vld [vmem:[%s8622_s21 + $0x664] sm:$0xf] }
 0x250   : > { %v9558_v56 = vadd.f32 %v2358_v12, %v9348_v62  ;;  %v9561_v48 = vadd.f32 %v2258_v61, %v9351_v32  ;;  %v2292_v3 = vpop.f32.mrf.mxu1  ;;  %v3116_v62 = vrot.slane %v9555_v23, 2  ;;  %v6978_v32 = vor.u32 %v7777_v31, %v6975_v14  ;;  %v9600_v14 = vld [vmem:[%s8614_s10 + $0x1c] sm:$0xff] }
 0x251   : > { %v9567_v27 = vadd.f32 %v2292_v3, %v9357_v30  ;;  %3796 = vmatpush.bf16.msra.mxu0 %v6982_v4  ;;  %v6965_v3 = vld [vmem:[%s8622_s21 + $0x660] sm:$0xf]  ;;  %v7773_v4 = vld [vmem:[%s8622_s21 + $0x64c] sm:$0xf] }
 0x252   : > { %3899 = vmatpush.bf16.msra.mxu3 %v6978_v32  ;;  %v3117_v43 = vsel %vm3112_vm3, %v3114_v58, %v3116_v62  ;;  %v6967_v58 = vld [vmem:[%s8622_s21 + $0x670] sm:$0xf0]  ;;  %v6962_v7 = vor.u32 %v7773_v4, %v6959_v21  ;;  %v7771_v21 = vld [vmem:[%s8622_s21 + $0x634] sm:$0xf0] }
 0x256   : > { %v2326_v30 = vpop.f32.mrf.mxu2  ;;  %3900 = vmatpush.bf16.msra.mxu3 %v6962_v7 }
 0x257   : > { %v9576_v5 = vadd.f32 %v2326_v30, %v9365_v51  ;;  %v2360_v33 = vpop.f32.mrf.mxu3  ;;  %v2261_v1 = vpop.f32.mrf.mxu0  ;;  %v7778_v51 = vld [vmem:[%s8622_s21 + $0x66c] sm:$0xf0] }
 0x258   : > { %v9580_v60 = vadd.f32 %v2360_v33, %v9371_v45  ;;  %v9583_v12 = vadd.f32 %v2261_v1, %v9374_v29  ;;  %v2295_v61 = vpop.f32.mrf.mxu1  ;;  %v6966_v37 = vor.u32 %v7778_v51, %v6965_v3  ;;  %v6970_v45 = vor.u32 %v7776_v49, %v6967_v58  ;;  %v6957_v29 = vld [vmem:[%s8622_s21 + $0x648] sm:$0xf]  ;;  %v6951_v51 = vld [vmem:[%s8622_s21 + $0x650] sm:$0xf0] }
 0x259   : > { %v9586_v23 = vadd.f32 %v2295_v61, %v9377_v13  ;;  %v6958_v13 = vor.u32 %v7775_v47, %v6957_v29  ;;  %v7774_v61 = vld [vmem:[%s8622_s21 + $0x64c] sm:$0xf0]  ;;  %v3118_v49 = vrot.slane %v9600_v14, 2 }
 0x25a   : > { %3302 = vmatmul.bf16.gmra.mxu0 %v3117_v43  ;;  %3831 = vmatpush.bf16.msra.mxu1 %v6970_v45 }
 0x25b   : > { %3336 = vmatmul.bf16.gmra.mxu1 %v3117_v43  ;;  %3370 = vmatmul.bf16.gmra.mxu2 %v3117_v43  ;;  %v3119_v45 = vsel %vm3112_vm3, %v3116_v62, %v3118_v49 }
 0x25c   : > { %3404 = vmatmul.bf16.gmra.mxu3 %v3117_v43  ;;  %3797 = vmatpush.bf16.msra.mxu0 %v6966_v37  ;;  %v6949_v43 = vld [vmem:[%s8622_s21 + $0x640] sm:$0xf] }
 0x25d   : > { %3866 = vmatpush.bf16.msra.mxu2 %v6958_v13  ;;  %v6950_v3 = vor.u32 %v7774_v61, %v6949_v43  ;;  %v6941_v13 = vld [vmem:[%s8622_s21 + $0x628] sm:$0xf] }
 0x25e   : > { %v2329_v10 = vpop.f32.mrf.mxu2  ;;  %v6942_v7 = vor.u32 %v7771_v21, %v6941_v13  ;;  %v6927_v21 = vld [vmem:[%s8622_s21 + $0x618] sm:$0xf0] }
 0x25f   : > { %v9597_v59 = vadd.f32 %v2329_v10, %v9388_v18  ;;  %v2363_v22 = vpop.f32.mrf.mxu3  ;;  %v2263_v31 = vpop.f32.mrf.mxu0  ;;  %v7772_v18 = vld [vmem:[%s8622_s21 + $0x644] sm:$0xf]  ;;  %v7769_v10 = vld [vmem:[%s8622_s21 + $0x62c] sm:$0xf] }
 0x260   : > { %v9603_v32 = vadd.f32 %v2363_v22, %v9391_v2  ;;  %v9606_v30 = vadd.f32 %v2263_v31, %v9394_v28  ;;  %v2297_v33 = vpop.f32.mrf.mxu1  ;;  %v6954_v2 = vor.u32 %v7772_v18, %v6951_v51  ;;  %3798 = vmatpush.bf16.msra.mxu0 %v6950_v3  ;;  %v6943_v22 = vld [vmem:[%s8622_s21 + $0x638] sm:$0xf0]  ;;  %v7768_v31 = vld [vmem:[%s8622_s21 + $0x624] sm:$0xf] }
 0x261   : > { %v9609_v1 = vadd.f32 %v2297_v33, %v9397_v20  ;;  %v6946_v62 = vor.u32 %v7769_v10, %v6943_v22  ;;  %3867 = vmatpush.bf16.msra.mxu2 %v6942_v7  ;;  %v6935_v33 = vld [vmem:[%s8622_s21 + $0x630] sm:$0xf0]  ;;  %v6917_v7 = vld [vmem:[%s8622_s21 + $0x600] sm:$0xf]  ;;  %v7766_v22 = vld [vmem:[%s8622_s21 + $0x60c] sm:$0xf0] }
 0x262   : > { %3832 = vmatpush.bf16.msra.mxu1 %v6954_v2  ;;  %v6938_v43 = vor.u32 %v7768_v31, %v6935_v33  ;;  %v9641_v51 = vld [vmem:[%s8614_s10 + $0x24] sm:$0xff] }
 0x263   : > { %3901 = vmatpush.bf16.msra.mxu3 %v6946_v62  ;;  %v3120_v10 = vrot.slane %v9641_v51, 2  ;;  %v7764_v62 = vld [vmem:[%s8622_s21 + $0x604] sm:$0xf]  ;;  %v6919_v33 = vld [vmem:[%s8622_s21 + $0x610] sm:$0xf0] }
 0x264   : > { %v7193_v51 = vld [vmem:[%s8622_s21 + $0x7c0] sm:$0xf] }
 0x265   : > { %v3121_v31 = vsel %vm3112_vm3, %v3118_v49, %v3120_v10 }
 0x266   : > { %v2331_v28 = vpop.f32.mrf.mxu2  ;;  %3833 = vmatpush.bf16.msra.mxu1 %v6938_v43 }
 0x267   : > { %v9617_v37 = vadd.f32 %v2331_v28, %v9406_v44  ;;  %v2365_v20 = vpop.f32.mrf.mxu3  ;;  %v2266_v58 = vpop.f32.mrf.mxu0 }
 0x268   : > { %v9621_v29 = vadd.f32 %v2365_v20, %v9412_v35  ;;  %v9624_v47 = vadd.f32 %v2266_v58, %v9415_v42  ;;  %v2300_v4 = vpop.f32.mrf.mxu1  ;;  %v6933_v35 = vld [vmem:[%s8622_s21 + $0x620] sm:$0xf]  ;;  %v7770_v42 = vld [vmem:[%s8622_s21 + $0x62c] sm:$0xf0] }
 0x269   : > { %v9630_v44 = vadd.f32 %v2300_v4, %v9421_v34  ;;  %v6934_v14 = vor.u32 %v7770_v42, %v6933_v35  ;;  %v7765_v4 = vld [vmem:[%s8622_s21 + $0x60c] sm:$0xf] }
 0x26a   : > { %3307 = vmatmul.bf16.gmra.mxu0 %v3119_v45 }
 0x26b   : > { %3341 = vmatmul.bf16.gmra.mxu1 %v3119_v45  ;;  %3375 = vmatmul.bf16.gmra.mxu2 %v3119_v45 }
 0x26c   : > { %3409 = vmatmul.bf16.gmra.mxu3 %v3119_v45  ;;  %3799 = vmatpush.bf16.msra.mxu0 %v6934_v14  ;;  %v7767_v45 = vld [vmem:[%s8622_s21 + $0x614] sm:$0xf0]  ;;  %v6918_v14 = vor.u32 %v7766_v22, %v6917_v7 }
 0x26e   : > { %v2334_v34 = vpop.f32.mrf.mxu2 }
 0x26f   : > { %v9638_v61 = vadd.f32 %v2334_v34, %v9429_v15  ;;  %v2368_v18 = vpop.f32.mrf.mxu3  ;;  %v2268_v3 = vpop.f32.mrf.mxu0  ;;  %v6925_v15 = vld [vmem:[%s8622_s21 + $0x608] sm:$0xf] }
 0x270   : > { %v9644_v2 = vadd.f32 %v2368_v18, %v9432_v26  ;;  %v9647_v28 = vadd.f32 %v2268_v3, %v9435_v17  ;;  %v2302_v20 = vpop.f32.mrf.mxu1  ;;  %v6926_v13 = vor.u32 %v7767_v45, %v6925_v15  ;;  %v6930_v26 = vor.u32 %v7765_v4, %v6927_v21  ;;  %v3010_v18 = vld [vmem:[%s8614_s10 + $0x2c] sm:$0x3]  ;;  %3800 = vmatpush.bf16.msra.mxu0 %v6918_v14  ;;  %v7217_v15 = vld [vmem:[%s8622_s21 + $0x7e8] sm:$0xf]  ;;  %v7830_v45 = vld [vmem:[%s8622_s21 + $0x7ec] sm:$0xf] }
 0x271   : > { %v9650_v58 = vadd.f32 %v2302_v20, %v9439_v24  ;;  %v6922_v3 = vor.u32 %v7764_v62, %v6919_v33  ;;  %v3105_v49 = vunpack.c.l.b16 %v3010_v18  ;;  %v7219_v4 = vld [vmem:[%s8622_s21 + $0x7f8] sm:$0xf0]  ;;  %v7829_v14 = vld [vmem:[%s8622_s21 + $0x7e4] sm:$0xf]  ;;  %v7201_v18 = vld [vmem:[%s8622_s21 + $0x7c8] sm:$0xf] }
 0x272   : > { %3868 = vmatpush.bf16.msra.mxu2 %v6926_v13  ;;  %3902 = vmatpush.bf16.msra.mxu3 %v6930_v26  ;;  %v7222_v21 = vor.u32 %v7830_v45, %v7219_v4  ;;  %v7203_v45 = vld [vmem:[%s8622_s21 + $0x7d8] sm:$0xf0] }
 0x273   : > { %3834 = vmatpush.bf16.msra.mxu1 %v6922_v3  ;;  %v3111_v7 = vpack.c.b16 %v3105_v49, %v3105_v49  ;;  %v7828_v3 = vld [vmem:[%s8622_s21 + $0x7d4] sm:$0xf0] }
 0x275   : > { %v3122_v49 = vrot.slane %v3111_v7, 2 }
 0x276   : > { %v2336_v17 = vpop.f32.mrf.mxu2  ;;  %4442 = vmatpush.bf16.msrb.mxu3 %v7222_v21 }
 0x277   : > { %v9661_v35 = vadd.f32 %v2336_v17, %v9451_v41  ;;  %v2370_v24 = vpop.f32.mrf.mxu3  ;;  %v2793_v42 = vpop.f32.mrf.mxu0  ;;  %v3123_v21 = vsel %vm3112_vm3, %v3120_v10, %v3122_v49  ;;  %v7825_v10 = vld [vmem:[%s8622_s21 + $0x7c4] sm:$0xf] }
 0x278   : > { %v9668_v34 = vadd.f32 %v2370_v24, %v9458_v0  ;;  %v9671_v43 = vadd.f32 %v2793_v42, %v9461_v8  ;;  %v2827_v41 = vpop.f32.mrf.mxu1  ;;  %v7832_v0 = vld [vmem:[%s8622_s21 + $0x7f4] sm:$0xf0] }
 0x279   : > { %v9675_v20 = vadd.f32 %v2827_v41, %v9464_v50  ;;  %v7218_v8 = vor.u32 %v7832_v0, %v7217_v15  ;;  %v7211_v41 = vld [vmem:[%s8622_s21 + $0x7f0] sm:$0xf0]  ;;  %v7826_v0 = vld [vmem:[%s8622_s21 + $0x7cc] sm:$0xf] }
 0x27a   : > { %3312 = vmatmul.bf16.gmra.mxu0 %v3121_v31  ;;  %v7214_v15 = vor.u32 %v7829_v14, %v7211_v41 }
 0x27b   : > { %3346 = vmatmul.bf16.gmra.mxu1 %v3121_v31  ;;  %3380 = vmatmul.bf16.gmra.mxu2 %v3121_v31 }
 0x27c   : > { %3414 = vmatmul.bf16.gmra.mxu3 %v3121_v31  ;;  %4408 = vmatpush.bf16.msrb.mxu2 %v7218_v8  ;;  %v7831_v31 = vld [vmem:[%s8622_s21 + $0x7ec] sm:$0xf0] }
 0x27d   : > { %4374 = vmatpush.bf16.msrb.mxu1 %v7214_v15 }
 0x27e   : > { %v2861_v13 = vpop.f32.mrf.mxu2 }
 0x27f   : > { %v9682_v50 = vadd.f32 %v2861_v13, %v9471_v38  ;;  %v2895_v26 = vpop.f32.mrf.mxu3  ;;  %v2795_v17 = vpop.f32.mrf.mxu0  ;;  %v7209_v38 = vld [vmem:[%s8622_s21 + $0x7e0] sm:$0xf] }
 0x280   : > { %v9685_v22 = vadd.f32 %v2895_v26, %v9474_v36  ;;  %v9688_v62 = vadd.f32 %v2795_v17, %v9477_v54  ;;  %v2829_v24 = vpop.f32.mrf.mxu1  ;;  %v7210_v33 = vor.u32 %v7831_v31, %v7209_v38  ;;  %v7202_v36 = vor.u32 %v7828_v3, %v7201_v18  ;;  %v7759_v38 = vld [vmem:[%s8614_s10 + $0x8] sm:$0xf0]  ;;  %v7827_v31 = vld [vmem:[%s8622_s21 + $0x7cc] sm:$0xf0]  ;;  %v9726_v3 = vld [vmem:[%s8614_s10 + $0x10] sm:$0xff] }
 0x281   : > { %v9691_v42 = vadd.f32 %v2829_v24, %v9480_v52  ;;  %v7206_v54 = vor.u32 %v7826_v0, %v7203_v45  ;;  %v7824_v45 = vld [vmem:[%s8622_s21 + $0x7b4] sm:$0xf0] }
 0x282   : > { %4340 = vmatpush.bf16.msrb.mxu0 %v7210_v33  ;;  %4409 = vmatpush.bf16.msrb.mxu2 %v7202_v36 }
 0x283   : > { %4443 = vmatpush.bf16.msrb.mxu3 %v7206_v54  ;;  %v7822_v54 = vld [vmem:[%s8622_s21 + $0x7ac] sm:$0xf] }
 0x286   : > { %v2863_v52 = vpop.f32.mrf.mxu2 }
 0x287   : > { %v9702_v8 = vadd.f32 %v2863_v52, %v9491_v6  ;;  %v2897_v4 = vpop.f32.mrf.mxu3  ;;  %v2798_v13 = vpop.f32.mrf.mxu0  ;;  %v6897_v6 = vld [vmem:[%s8614_s10 + $0x8] sm:$0xc] }
 0x288   : > { %v9708_v26 = vadd.f32 %v2897_v4, %v9496_v53  ;;  %v9711_v17 = vadd.f32 %v2798_v13, %v9499_v63  ;;  %v2832_v7 = vpop.f32.mrf.mxu1  ;;  %v7194_v53 = vor.u32 %v7827_v31, %v7193_v51  ;;  %v7195_v63 = vld [vmem:[%s8622_s21 + $0x7d0] sm:$0xf0]  ;;  %v6898_v49 = vor.u32 %v7759_v38, %v6897_v6  ;;  %v7187_v13 = vld [vmem:[%s8622_s21 + $0x7b8] sm:$0xf0]  ;;  %v7821_v51 = vld [vmem:[%s8622_s21 + $0x7a4] sm:$0xf] }
 0x289   : > { %v9714_v24 = vadd.f32 %v2832_v7, %v9502_v46  ;;  %v7198_v33 = vor.u32 %v7825_v10, %v7195_v63  ;;  %v7823_v7 = vld [vmem:[%s8622_s21 + $0x7ac] sm:$0xf0]  ;;  %v7190_v6 = vor.u32 %v7822_v54, %v7187_v13  ;;  %v7171_v54 = vld [vmem:[%s8622_s21 + $0x798] sm:$0xf0] }
 0x28a   : > { %3317 = vmatmul.bf16.gmra.mxu0 %v3123_v21  ;;  %v3617_v31 = vrot.slane %v6898_v49, 2 }
 0x28b   : > { %3351 = vmatmul.bf16.gmra.mxu1 %v3123_v21  ;;  %3385 = vmatmul.bf16.gmra.mxu2 %v3123_v21 }
 0x28c   : > { %3419 = vmatmul.bf16.gmra.mxu3 %v3123_v21  ;;  %4341 = vmatpush.bf16.msrb.mxu0 %v7194_v53  ;;  %v7177_v21 = vld [vmem:[%s8622_s21 + $0x7a0] sm:$0xf] }
 0x28d   : > { %4375 = vmatpush.bf16.msrb.mxu1 %v7198_v33  ;;  %v7178_v38 = vor.u32 %v7823_v7, %v7177_v21  ;;  %4444 = vmatpush.bf16.msrb.mxu3 %v7190_v6  ;;  %v9767_v21 = vld [vmem:[%s8614_s10 + $0x18] sm:$0xff] }
 0x28e   : > { %v2866_v14 = vpop.f32.mrf.mxu2 }
 0x28f   : > { %v9723_v46 = vadd.f32 %v2866_v14, %v9511_v11  ;;  %v2900_v41 = vpop.f32.mrf.mxu3  ;;  %v2800_v18 = vpop.f32.mrf.mxu0  ;;  %v7185_v11 = vld [vmem:[%s8622_s21 + $0x7a8] sm:$0xf] }
 0x290   : > { %v9729_v15 = vadd.f32 %v2900_v41, %v9517_v9  ;;  %v9732_v36 = vadd.f32 %v2800_v18, %v9520_v16  ;;  %v2834_v0 = vpop.f32.mrf.mxu1  ;;  %v7186_v4 = vor.u32 %v7824_v45, %v7185_v11  ;;  %v7179_v9 = vld [vmem:[%s8622_s21 + $0x7b0] sm:$0xf0]  ;;  %v3618_v16 = vrot.slane %v9726_v3, 2  ;;  %4342 = vmatpush.bf16.msrb.mxu0 %v7178_v38  ;;  %v7820_v11 = vld [vmem:[%s8622_s21 + $0x794] sm:$0xf0] }
 0x291   : > { %v9738_v52 = vadd.f32 %v2834_v0, %v9526_v39  ;;  %v7182_v10 = vor.u32 %v7821_v51, %v7179_v9  ;;  %v7169_v0 = vld [vmem:[%s8622_s21 + $0x788] sm:$0xf]  ;;  %v7818_v45 = vld [vmem:[%s8622_s21 + $0x78c] sm:$0xf]  ;;  %v7161_v51 = vld [vmem:[%s8622_s21 + $0x780] sm:$0xf] }
 0x292   : > { %4410 = vmatpush.bf16.msrb.mxu2 %v7186_v4  ;;  %v3619_v33 = vsel %vm3112_vm3, %v3617_v31, %v3618_v16  ;;  %v7819_v9 = vld [vmem:[%s8622_s21 + $0x78c] sm:$0xf0]  ;;  %v7817_v31 = vld [vmem:[%s8622_s21 + $0x784] sm:$0xf] }
 0x293   : > { %4376 = vmatpush.bf16.msrb.mxu1 %v7182_v10 }
 0x296   : > { %v2868_v39 = vpop.f32.mrf.mxu2 }
 0x297   : > { %v9747_v53 = vadd.f32 %v2868_v39, %v9535_v25  ;;  %v2902_v63 = vpop.f32.mrf.mxu3  ;;  %v2803_v14 = vpop.f32.mrf.mxu0  ;;  %v7170_v25 = vor.u32 %v7820_v11, %v7169_v0  ;;  %v7163_v39 = vld [vmem:[%s8622_s21 + $0x790] sm:$0xf0]  ;;  %v7814_v0 = vld [vmem:[%s8622_s21 + $0x76c] sm:$0xf]  ;;  %v7155_v11 = vld [vmem:[%s8622_s21 + $0x778] sm:$0xf0] }
 0x298   : > { %v9751_v41 = vadd.f32 %v2902_v63, %v9539_v55  ;;  %v9754_v18 = vadd.f32 %v2803_v14, %v9542_v19  ;;  %v2837_v3 = vpop.f32.mrf.mxu1  ;;  %v7174_v55 = vor.u32 %v7818_v45, %v7171_v54  ;;  %v7153_v63 = vld [vmem:[%s8622_s21 + $0x768] sm:$0xf]  ;;  %v7816_v14 = vld [vmem:[%s8622_s21 + $0x774] sm:$0xf0] }
 0x299   : > { %v9757_v49 = vadd.f32 %v2837_v3, %v9545_v40  ;;  %4411 = vmatpush.bf16.msrb.mxu2 %v7170_v25  ;;  %v7154_v3 = vor.u32 %v7816_v14, %v7153_v63 }
 0x29a   : > { %3801 = vmatmul.bf16.vlgmr.msra.gmra.mxu0 %v3619_v33  ;;  %4445 = vmatpush.bf16.msrb.mxu3 %v7174_v55 }
 0x29b   : > { %3835 = vmatmul.bf16.vlgmr.msra.gmra.mxu1 %v3619_v33  ;;  %3869 = vmatmul.bf16.vlgmr.msra.gmra.mxu2 %v3619_v33 }
 0x29c   : > { %3903 = vmatmul.bf16.vlgmr.msra.gmra.mxu3 %v3619_v33  ;;  %v7166_v33 = vor.u32 %v7817_v31, %v7163_v39  ;;  %v7812_v31 = vld [vmem:[%s8622_s21 + $0x754] sm:$0xf0]  ;;  %v7139_v39 = vld [vmem:[%s8622_s21 + $0x758] sm:$0xf0] }
 0x29d   : > { %4412 = vmatpush.bf16.msrb.mxu2 %v7154_v3 }
 0x29e   : > { %v2871_v19 = vpop.f32.mrf.mxu2  ;;  %4377 = vmatpush.bf16.msrb.mxu1 %v7166_v33 }
 0x29f   : > { %v9764_v40 = vadd.f32 %v2871_v19, %v9552_v57  ;;  %v2905_v4 = vpop.f32.mrf.mxu3  ;;  %v2805_v13 = vpop.f32.mrf.mxu0  ;;  %v7162_v57 = vor.u32 %v7819_v9, %v7161_v51  ;;  %v7813_v51 = vld [vmem:[%s8622_s21 + $0x764] sm:$0xf] }
 0x2a0   : > { %v9770_v7 = vadd.f32 %v2905_v4, %v9558_v56  ;;  %v9773_v6 = vadd.f32 %v2805_v13, %v9561_v48  ;;  %v2839_v38 = vpop.f32.mrf.mxu1  ;;  %v3620_v56 = vrot.slane %v9767_v21, 2  ;;  %v7158_v48 = vor.u32 %v7814_v0, %v7155_v11  ;;  %v9812_v11 = vld [vmem:[%s8614_s10 + $0x20] sm:$0xff] }
 0x2a1   : > { %v9779_v10 = vadd.f32 %v2839_v38, %v9567_v27  ;;  %4343 = vmatpush.bf16.msrb.mxu0 %v7162_v57  ;;  %v7145_v38 = vld [vmem:[%s8622_s21 + $0x760] sm:$0xf]  ;;  %v7810_v57 = vld [vmem:[%s8622_s21 + $0x74c] sm:$0xf] }
 0x2a2   : > { %4446 = vmatpush.bf16.msrb.mxu3 %v7158_v48  ;;  %v3621_v55 = vsel %vm3112_vm3, %v3618_v16, %v3620_v56  ;;  %v7147_v16 = vld [vmem:[%s8622_s21 + $0x770] sm:$0xf0]  ;;  %v7142_v14 = vor.u32 %v7810_v57, %v7139_v39  ;;  %v7808_v39 = vld [vmem:[%s8622_s21 + $0x734] sm:$0xf0] }
 0x2a6   : > { %v2873_v27 = vpop.f32.mrf.mxu2  ;;  %4447 = vmatpush.bf16.msrb.mxu3 %v7142_v14 }
 0x2a7   : > { %v9788_v45 = vadd.f32 %v2873_v27, %v9576_v5  ;;  %v2907_v25 = vpop.f32.mrf.mxu3  ;;  %v2808_v54 = vpop.f32.mrf.mxu0  ;;  %v7815_v5 = vld [vmem:[%s8622_s21 + $0x76c] sm:$0xf0] }
 0x2a8   : > { %v9792_v19 = vadd.f32 %v2907_v25, %v9580_v60  ;;  %v9795_v4 = vadd.f32 %v2808_v54, %v9583_v12  ;;  %v2842_v13 = vpop.f32.mrf.mxu1  ;;  %v7146_v9 = vor.u32 %v7815_v5, %v7145_v38  ;;  %v7150_v60 = vor.u32 %v7813_v51, %v7147_v16  ;;  %v7137_v12 = vld [vmem:[%s8622_s21 + $0x748] sm:$0xf]  ;;  %v7131_v5 = vld [vmem:[%s8622_s21 + $0x750] sm:$0xf0] }
 0x2a9   : > { %v9798_v21 = vadd.f32 %v2842_v13, %v9586_v23  ;;  %v7138_v23 = vor.u32 %v7812_v31, %v7137_v12  ;;  %v7811_v13 = vld [vmem:[%s8622_s21 + $0x74c] sm:$0xf0]  ;;  %v3622_v51 = vrot.slane %v9812_v11, 2 }
 0x2aa   : > { %3806 = vmatmul.bf16.gmra.mxu0 %v3621_v55  ;;  %4378 = vmatpush.bf16.msrb.mxu1 %v7150_v60 }
 0x2ab   : > { %3840 = vmatmul.bf16.gmra.mxu1 %v3621_v55  ;;  %3874 = vmatmul.bf16.gmra.mxu2 %v3621_v55  ;;  %v3623_v60 = vsel %vm3112_vm3, %v3620_v56, %v3622_v51 }
 0x2ac   : > { %3908 = vmatmul.bf16.gmra.mxu3 %v3621_v55  ;;  %4344 = vmatpush.bf16.msrb.mxu0 %v7146_v9  ;;  %v7129_v55 = vld [vmem:[%s8622_s21 + $0x740] sm:$0xf] }
 0x2ad   : > { %4413 = vmatpush.bf16.msrb.mxu2 %v7138_v23  ;;  %v7130_v38 = vor.u32 %v7811_v13, %v7129_v55  ;;  %v7121_v23 = vld [vmem:[%s8622_s21 + $0x728] sm:$0xf] }
 0x2ae   : > { %v2876_v63 = vpop.f32.mrf.mxu2  ;;  %v7122_v14 = vor.u32 %v7808_v39, %v7121_v23  ;;  %v7107_v39 = vld [vmem:[%s8622_s21 + $0x718] sm:$0xf0] }
 0x2af   : > { %v9809_v33 = vadd.f32 %v2876_v63, %v9597_v59  ;;  %v2910_v3 = vpop.f32.mrf.mxu3  ;;  %v2810_v0 = vpop.f32.mrf.mxu0  ;;  %v7809_v59 = vld [vmem:[%s8622_s21 + $0x744] sm:$0xf]  ;;  %v7806_v63 = vld [vmem:[%s8622_s21 + $0x72c] sm:$0xf] }
 0x2b0   : > { %v9815_v48 = vadd.f32 %v2910_v3, %v9603_v32  ;;  %v9818_v27 = vadd.f32 %v2810_v0, %v9606_v30  ;;  %v2844_v25 = vpop.f32.mrf.mxu1  ;;  %v7134_v32 = vor.u32 %v7809_v59, %v7131_v5  ;;  %4345 = vmatpush.bf16.msrb.mxu0 %v7130_v38  ;;  %v7123_v3 = vld [vmem:[%s8622_s21 + $0x738] sm:$0xf0]  ;;  %v7805_v0 = vld [vmem:[%s8622_s21 + $0x724] sm:$0xf] }
 0x2b1   : > { %v9821_v54 = vadd.f32 %v2844_v25, %v9609_v1  ;;  %v7126_v56 = vor.u32 %v7806_v63, %v7123_v3  ;;  %4414 = vmatpush.bf16.msrb.mxu2 %v7122_v14  ;;  %v7115_v25 = vld [vmem:[%s8622_s21 + $0x730] sm:$0xf0]  ;;  %v3515_v14 = vld [vmem:[%s8614_s10 + $0x30] sm:$0x3]  ;;  %v7097_v3 = vld [vmem:[%s8622_s21 + $0x700] sm:$0xf] }
 0x2b2   : > { %4379 = vmatpush.bf16.msrb.mxu1 %v7134_v32  ;;  %v7118_v55 = vor.u32 %v7805_v0, %v7115_v25  ;;  %v9853_v5 = vld [vmem:[%s8614_s10 + $0x28] sm:$0xff] }
 0x2b3   : > { %4448 = vmatpush.bf16.msrb.mxu3 %v7126_v56  ;;  %v7803_v56 = vld [vmem:[%s8622_s21 + $0x70c] sm:$0xf0] }
 0x2b4   : > { %v7098_v25 = vor.u32 %v7803_v56, %v7097_v3 }
 0x2b6   : > { %v2878_v30 = vpop.f32.mrf.mxu2  ;;  %4380 = vmatpush.bf16.msrb.mxu1 %v7118_v55 }
 0x2b7   : > { %v9829_v9 = vadd.f32 %v2878_v30, %v9617_v37  ;;  %v2912_v1 = vpop.f32.mrf.mxu3  ;;  %v2813_v16 = vpop.f32.mrf.mxu0 }
 0x2b8   : > { %v9833_v12 = vadd.f32 %v2912_v1, %v9621_v29  ;;  %v9836_v31 = vadd.f32 %v2813_v16, %v9624_v47  ;;  %v2847_v57 = vpop.f32.mrf.mxu1  ;;  %v7113_v29 = vld [vmem:[%s8622_s21 + $0x720] sm:$0xf]  ;;  %v7807_v47 = vld [vmem:[%s8622_s21 + $0x72c] sm:$0xf0]  ;;  %v7105_v16 = vld [vmem:[%s8622_s21 + $0x708] sm:$0xf] }
 0x2b9   : > { %v9842_v37 = vadd.f32 %v2847_v57, %v9630_v44  ;;  %v7114_v11 = vor.u32 %v7807_v47, %v7113_v29  ;;  %v7802_v57 = vld [vmem:[%s8622_s21 + $0x70c] sm:$0xf]  ;;  %v7801_v29 = vld [vmem:[%s8622_s21 + $0x704] sm:$0xf] }
 0x2ba   : > { %3811 = vmatmul.bf16.gmra.mxu0 %v3623_v60  ;;  %v7110_v63 = vor.u32 %v7802_v57, %v7107_v39  ;;  %v7867_v57 = vld [vmem:[%s8622_s21 + $0x8ec] sm:$0xf] }
 0x2bb   : > { %3845 = vmatmul.bf16.gmra.mxu1 %v3623_v60  ;;  %3879 = vmatmul.bf16.gmra.mxu2 %v3623_v60 }
 0x2bc   : > { %3913 = vmatmul.bf16.gmra.mxu3 %v3623_v60  ;;  %4346 = vmatpush.bf16.msrb.mxu0 %v7114_v11  ;;  %v7804_v60 = vld [vmem:[%s8622_s21 + $0x714] sm:$0xf0] }
 0x2bd   : > { %v7106_v23 = vor.u32 %v7804_v60, %v7105_v16  ;;  %4449 = vmatpush.bf16.msrb.mxu3 %v7110_v63  ;;  %v7397_v60 = vld [vmem:[%s8622_s21 + $0x8e8] sm:$0xf] }
 0x2be   : > { %v2881_v44 = vpop.f32.mrf.mxu2 }
 0x2bf   : > { %v9850_v13 = vadd.f32 %v2881_v44, %v9638_v61  ;;  %v2915_v59 = vpop.f32.mrf.mxu3  ;;  %v2815_v38 = vpop.f32.mrf.mxu0  ;;  %4415 = vmatpush.bf16.msrb.mxu2 %v7106_v23  ;;  %v7099_v44 = vld [vmem:[%s8622_s21 + $0x710] sm:$0xf0]  ;;  %v7399_v23 = vld [vmem:[%s8622_s21 + $0x8f8] sm:$0xf0] }
 0x2c0   : > { %v9856_v32 = vadd.f32 %v2915_v59, %v9644_v2  ;;  %v9859_v30 = vadd.f32 %v2815_v38, %v9647_v28  ;;  %v2849_v1 = vpop.f32.mrf.mxu1  ;;  %v3624_v2 = vrot.slane %v9853_v5, 2  ;;  %v3610_v38 = vunpack.c.l.b16 %v3515_v14  ;;  %4347 = vmatpush.bf16.msrb.mxu0 %v7098_v25  ;;  %v7868_v25 = vld [vmem:[%s8622_s21 + $0x8ec] sm:$0xf0] }
 0x2c1   : > { %v9862_v61 = vadd.f32 %v2849_v1, %v9650_v58  ;;  %v7102_v1 = vor.u32 %v7801_v29, %v7099_v44  ;;  %v7402_v63 = vor.u32 %v7867_v57, %v7399_v23  ;;  %v7866_v44 = vld [vmem:[%s8622_s21 + $0x8e4] sm:$0xf]  ;;  %v7863_v57 = vld [vmem:[%s8622_s21 + $0x8cc] sm:$0xf] }
 0x2c2   : > { %v3625_v11 = vsel %vm3112_vm3, %v3622_v51, %v3624_v2  ;;  %v3616_v51 = vpack.c.b16 %v3610_v38, %v3610_v38  ;;  %v7391_v38 = vld [vmem:[%s8622_s21 + $0x8f0] sm:$0xf0] }
 0x2c3   : > { %4381 = vmatpush.bf16.msrb.mxu1 %v7102_v1  ;;  %4947 = vmatpush.bf16.msra.mxu3 %v7402_v63  ;;  %v7381_v1 = vld [vmem:[%s8622_s21 + $0x8c8] sm:$0xf] }
 0x2c6   : > { %v2883_v28 = vpop.f32.mrf.mxu2 }
 0x2c7   : > { %v9874_v47 = vadd.f32 %v2883_v28, %v9661_v35  ;;  %v2917_v58 = vpop.f32.mrf.mxu3  ;;  %v3298_v0 = vpop.f32.mrf.mxu0 }
 0x2c8   : > { %v9881_v55 = vadd.f32 %v2917_v58, %v9668_v34  ;;  %v9884_v59 = vadd.f32 %v3298_v0, %v9671_v43  ;;  %v3332_v35 = vpop.f32.mrf.mxu1  ;;  %v7869_v34 = vld [vmem:[%s8622_s21 + $0x8f4] sm:$0xf0]  ;;  %v3626_v58 = vrot.slane %v3616_v51, 2  ;;  %v7077_v0 = vld [vmem:[%s8614_s10 + $0x8] sm:$0xc] }
 0x2c9   : > { %v9887_v16 = vadd.f32 %v3332_v35, %v9675_v20  ;;  %v7398_v43 = vor.u32 %v7869_v34, %v7397_v60  ;;  %v7796_v60 = vld [vmem:[%s8614_s10 + $0x8] sm:$0xf0] }
 0x2ca   : > { %3816 = vmatmul.bf16.gmra.mxu0 %v3625_v11  ;;  %v7078_v23 = vor.u32 %v7796_v60, %v7077_v0 }
 0x2cb   : > { %3850 = vmatmul.bf16.gmra.mxu1 %v3625_v11  ;;  %3884 = vmatmul.bf16.gmra.mxu2 %v3625_v11 }
 0x2cc   : > { %3918 = vmatmul.bf16.gmra.mxu3 %v3625_v11  ;;  %4913 = vmatpush.bf16.msra.mxu2 %v7398_v43  ;;  %v7389_v11 = vld [vmem:[%s8622_s21 + $0x8e0] sm:$0xf]  ;;  %v7383_v43 = vld [vmem:[%s8622_s21 + $0x8d8] sm:$0xf0]  ;;  %v4126_v5 = vshll.u32 %v7078_v23, 16 }
 0x2cd   : > { %v7390_v35 = vor.u32 %v7868_v25, %v7389_v11  ;;  %v7386_v51 = vor.u32 %v7863_v57, %v7383_v43 }
 0x2ce   : > { %v3366_v39 = vpop.f32.mrf.mxu2  ;;  %v4128_v43 = vrot.slane %v4126_v5, 3  ;;  %v7367_v5 = vld [vmem:[%s8622_s21 + $0x8b8] sm:$0xf0] }
 0x2cf   : > { %v9894_v20 = vadd.f32 %v3366_v39, %v9682_v50  ;;  %v3400_v14 = vpop.f32.mrf.mxu3  ;;  %v3300_v28 = vpop.f32.mrf.mxu0  ;;  %4845 = vmatpush.bf16.msra.mxu0 %v7390_v35  ;;  %4948 = vmatpush.bf16.msra.mxu3 %v7386_v51 }
 0x2d0   : > { %v9897_v3 = vadd.f32 %v3400_v14, %v9685_v22  ;;  %v9900_v56 = vadd.f32 %v3300_v28, %v9688_v62  ;;  %v3334_v29 = vpop.f32.mrf.mxu1  ;;  %v7865_v22 = vld [vmem:[%s8622_s21 + $0x8d4] sm:$0xf0]  ;;  %v7394_v62 = vor.u32 %v7866_v44, %v7391_v38  ;;  %v3627_v28 = vsel %vm3112_vm3, %v3624_v2, %v3626_v58  ;;  %v7373_v58 = vld [vmem:[%s8622_s21 + $0x8c0] sm:$0xf]  ;;  %v7864_v38 = vld [vmem:[%s8622_s21 + $0x8cc] sm:$0xf0] }
 0x2d1   : > { %v9903_v50 = vadd.f32 %v3334_v29, %v9691_v42  ;;  %v7382_v34 = vor.u32 %v7865_v22, %v7381_v1  ;;  %v7797_v29 = vld [vmem:[%s8614_s10 + $0x10] sm:$0xff]  ;;  %v4123_v44 = vshrl.u32 %v7078_v23, 16  ;;  %v7374_v1 = vor.u32 %v7864_v38, %v7373_v58  ;;  %v7375_v22 = vld [vmem:[%s8622_s21 + $0x8d0] sm:$0xf0] }
 0x2d2   : > { %4879 = vmatpush.bf16.msra.mxu1 %v7394_v62  ;;  %v4131_v35 = vshrl.u32 %v7797_v29, 16  ;;  %v4134_v2 = vshll.u32 %v7797_v29, 16  ;;  %v7859_v29 = vld [vmem:[%s8622_s21 + $0x8ac] sm:$0xf] }
 0x2d3   : > { %4914 = vmatpush.bf16.msra.mxu2 %v7382_v34  ;;  %v4125_v60 = vrot.slane %v4123_v44, 2  ;;  %4846 = vmatpush.bf16.msra.mxu0 %v7374_v1  ;;  %v7370_v58 = vor.u32 %v7859_v29, %v7367_v5 }
 0x2d4   : > { %v4133_v51 = vrot.slane %v4131_v35, 2  ;;  %v7357_v35 = vld [vmem:[%s8622_s21 + $0x8a0] sm:$0xf] }
 0x2d5   : > { %v4129_v1 = vor.u32 %v4128_v43, %v4125_v60  ;;  %4949 = vmatpush.bf16.msra.mxu3 %v7370_v58 }
 0x2d6   : > { %v3368_v42 = vpop.f32.mrf.mxu2 }
 0x2d7   : > { %v9916_v39 = vadd.f32 %v3368_v42, %v9702_v8  ;;  %v3402_v63 = vpop.f32.mrf.mxu3  ;;  %v3303_v14 = vpop.f32.mrf.mxu0  ;;  %v4136_v42 = vrot.slane %v4134_v2, 3  ;;  %v7860_v2 = vld [vmem:[%s8622_s21 + $0x8ac] sm:$0xf0] }
 0x2d8   : > { %v9923_v11 = vadd.f32 %v3402_v63, %v9708_v26  ;;  %v9926_v0 = vadd.f32 %v3303_v14, %v9711_v17  ;;  %v3337_v25 = vpop.f32.mrf.mxu1  ;;  %v7862_v26 = vld [vmem:[%s8622_s21 + $0x8c4] sm:$0xf]  ;;  %v7358_v38 = vor.u32 %v7860_v2, %v7357_v35 }
 0x2d9   : > { %v9929_v8 = vadd.f32 %v3337_v25, %v9714_v24  ;;  %v7378_v24 = vor.u32 %v7862_v26, %v7375_v22  ;;  %v7359_v26 = vld [vmem:[%s8622_s21 + $0x8b0] sm:$0xf0] }
 0x2da   : > { %3821 = vmatmul.bf16.gmra.mxu0 %v3627_v28 }
 0x2db   : > { %3855 = vmatmul.bf16.gmra.mxu1 %v3627_v28  ;;  %3889 = vmatmul.bf16.gmra.mxu2 %v3627_v28 }
 0x2dc   : > { %3923 = vmatmul.bf16.gmra.mxu3 %v3627_v28  ;;  %4880 = vmatpush.bf16.msra.mxu1 %v7378_v24  ;;  %v7861_v28 = vld [vmem:[%s8622_s21 + $0x8b4] sm:$0xf0] }
 0x2dd   : > { %4847 = vmatpush.bf16.msra.mxu0 %v7358_v38 }
 0x2de   : > { %v3371_v17 = vpop.f32.mrf.mxu2 }
 0x2df   : > { %v9936_v62 = vadd.f32 %v3371_v17, %v9723_v46  ;;  %v3405_v34 = vpop.f32.mrf.mxu3  ;;  %v3305_v57 = vpop.f32.mrf.mxu0  ;;  %v7365_v46 = vld [vmem:[%s8622_s21 + $0x8a8] sm:$0xf] }
 0x2e0   : > { %v9939_v23 = vadd.f32 %v3405_v34, %v9729_v15  ;;  %v9942_v63 = vadd.f32 %v3305_v57, %v9732_v36  ;;  %v3339_v14 = vpop.f32.mrf.mxu1  ;;  %v7366_v44 = vor.u32 %v7861_v28, %v7365_v46  ;;  %v7858_v15 = vld [vmem:[%s8622_s21 + $0x8a4] sm:$0xf]  ;;  %v9955_v36 = vor.u32 %v4136_v42, %v4133_v51  ;;  %v7349_v46 = vld [vmem:[%s8622_s21 + $0x888] sm:$0xf]  ;;  %v7857_v28 = vld [vmem:[%s8622_s21 + $0x894] sm:$0xf0] }
 0x2e1   : > { %v9948_v25 = vadd.f32 %v3339_v14, %v9738_v52  ;;  %v7362_v22 = vor.u32 %v7858_v15, %v7359_v26  ;;  %v7798_v57 = vld [vmem:[%s8614_s10 + $0x18] sm:$0xff]  ;;  %v7350_v29 = vor.u32 %v7857_v28, %v7349_v46  ;;  %v7853_v46 = vld [vmem:[%s8622_s21 + $0x874] sm:$0xf0] }
 0x2e2   : > { %4915 = vmatpush.bf16.msra.mxu2 %v7366_v44  ;;  %v4138_v60 = vsel %vm4121_vm4, %v4129_v1, %v9955_v36  ;;  %v7351_v44 = vld [vmem:[%s8622_s21 + $0x898] sm:$0xf0]  ;;  %v4140_v5 = vshrl.u32 %v7798_v57, 16 }
 0x2e3   : > { %4881 = vmatpush.bf16.msra.mxu1 %v7362_v22 }
 0x2e4   : > { %v4142_v38 = vrot.slane %v4140_v5, 2 }
 0x2e6   : > { %v3373_v52 = vpop.f32.mrf.mxu2  ;;  %4916 = vmatpush.bf16.msra.mxu2 %v7350_v29  ;;  %v7851_v29 = vld [vmem:[%s8622_s21 + $0x86c] sm:$0xf] }
 0x2e7   : > { %v9958_v17 = vadd.f32 %v3373_v52, %v9747_v53  ;;  %v3407_v24 = vpop.f32.mrf.mxu3  ;;  %v3308_v34 = vpop.f32.mrf.mxu0  ;;  %v7855_v53 = vld [vmem:[%s8622_s21 + $0x88c] sm:$0xf]  ;;  %v7341_v52 = vld [vmem:[%s8622_s21 + $0x880] sm:$0xf] }
 0x2e8   : > { %v9964_v43 = vadd.f32 %v3407_v24, %v9751_v41  ;;  %v9967_v51 = vadd.f32 %v3308_v34, %v9754_v18  ;;  %v3342_v42 = vpop.f32.mrf.mxu1  ;;  %v4143_v41 = vshll.u32 %v7798_v57, 16  ;;  %v7354_v35 = vor.u32 %v7855_v53, %v7351_v44  ;;  %v7856_v24 = vld [vmem:[%s8622_s21 + $0x88c] sm:$0xf0]  ;;  %v7854_v34 = vld [vmem:[%s8622_s21 + $0x884] sm:$0xf] }
 0x2e9   : > { %v9970_v14 = vadd.f32 %v3342_v42, %v9757_v49  ;;  %v7343_v57 = vld [vmem:[%s8622_s21 + $0x890] sm:$0xf0]  ;;  %v7333_v42 = vld [vmem:[%s8622_s21 + $0x868] sm:$0xf] }
 0x2ea   : > { %4348 = vmatmul.bf16.vlgmr.msrb.gmra.mxu0 %v4138_v60  ;;  %4950 = vmatpush.bf16.msra.mxu3 %v7354_v35  ;;  %v4145_v15 = vrot.slane %v4143_v41, 3  ;;  %v7346_v28 = vor.u32 %v7854_v34, %v7343_v57  ;;  %v7334_v53 = vor.u32 %v7853_v46, %v7333_v42  ;;  %v7327_v34 = vld [vmem:[%s8622_s21 + $0x870] sm:$0xf0]  ;;  %v7317_v57 = vld [vmem:[%s8622_s21 + $0x848] sm:$0xf] }
 0x2eb   : > { %4382 = vmatmul.bf16.vlgmr.msrb.gmra.mxu1 %v4138_v60  ;;  %4416 = vmatmul.bf16.vlgmr.msrb.gmra.mxu2 %v4138_v60  ;;  %v7849_v42 = vld [vmem:[%s8622_s21 + $0x854] sm:$0xf0]  ;;  %v7847_v46 = vld [vmem:[%s8622_s21 + $0x84c] sm:$0xf] }
 0x2ec   : > { %4450 = vmatmul.bf16.vlgmr.msrb.gmra.mxu3 %v4138_v60  ;;  %v4146_v44 = vor.u32 %v4145_v15, %v4142_v38  ;;  %4882 = vmatpush.bf16.msra.mxu1 %v7346_v28  ;;  %v7319_v28 = vld [vmem:[%s8622_s21 + $0x858] sm:$0xf0] }
 0x2ed   : > { %4917 = vmatpush.bf16.msra.mxu2 %v7334_v53 }
 0x2ee   : > { %v3376_v18 = vpop.f32.mrf.mxu2 }
 0x2ef   : > { %v9977_v49 = vadd.f32 %v3376_v18, %v9764_v40  ;;  %v3410_v2 = vpop.f32.mrf.mxu3  ;;  %v3310_v58 = vpop.f32.mrf.mxu0  ;;  %v7342_v40 = vor.u32 %v7856_v24, %v7341_v52  ;;  %v4147_v18 = vsel %vm4121_vm4, %v9955_v36, %v4146_v44  ;;  %v7852_v52 = vld [vmem:[%s8622_s21 + $0x86c] sm:$0xf0]  ;;  %v7850_v24 = vld [vmem:[%s8622_s21 + $0x864] sm:$0xf] }
 0x2f0   : > { %v9980_v26 = vadd.f32 %v3410_v2, %v9770_v7  ;;  %v9983_v1 = vadd.f32 %v3310_v58, %v9773_v6  ;;  %v3344_v22 = vpop.f32.mrf.mxu1  ;;  %v7335_v7 = vld [vmem:[%s8622_s21 + $0x878] sm:$0xf0] }
 0x2f1   : > { %v9989_v60 = vadd.f32 %v3344_v22, %v9779_v10  ;;  %4848 = vmatpush.bf16.msra.mxu0 %v7342_v40  ;;  %v7338_v6 = vor.u32 %v7851_v29, %v7335_v7  ;;  %v7799_v2 = vld [vmem:[%s8614_s10 + $0x20] sm:$0xff]  ;;  %v7322_v29 = vor.u32 %v7847_v46, %v7319_v28 }
 0x2f2   : > { %v4152_v40 = vshll.u32 %v7799_v2, 16 }
 0x2f3   : > { %4951 = vmatpush.bf16.msra.mxu3 %v7338_v6 }
 0x2f6   : > { %v3378_v10 = vpop.f32.mrf.mxu2 }
 0x2f7   : > { %v9997_v5 = vadd.f32 %v3378_v10, %v9788_v45  ;;  %v3412_v41 = vpop.f32.mrf.mxu3  ;;  %v3313_v35 = vpop.f32.mrf.mxu0  ;;  %v7325_v45 = vld [vmem:[%s8622_s21 + $0x860] sm:$0xf]  ;;  %4952 = vmatpush.bf16.msra.mxu3 %v7322_v29  ;;  %v7845_v29 = vld [vmem:[%s8622_s21 + $0x834] sm:$0xf0] }
 0x2f8   : > { %v10003_v58 = vadd.f32 %v3412_v41, %v9792_v19  ;;  %v10006_v38 = vadd.f32 %v3313_v35, %v9795_v4  ;;  %v3347_v15 = vpop.f32.mrf.mxu1  ;;  %v7326_v36 = vor.u32 %v7852_v52, %v7325_v45  ;;  %v4149_v19 = vshrl.u32 %v7799_v2, 16  ;;  %v7309_v52 = vld [vmem:[%s8622_s21 + $0x840] sm:$0xf] }
 0x2f9   : > { %v10009_v22 = vadd.f32 %v3347_v15, %v9798_v21  ;;  %v7330_v4 = vor.u32 %v7850_v24, %v7327_v34  ;;  %v7318_v21 = vor.u32 %v7849_v42, %v7317_v57  ;;  %v4154_v35 = vrot.slane %v4152_v40, 3  ;;  %v7846_v24 = vld [vmem:[%s8622_s21 + $0x844] sm:$0xf]  ;;  %v7311_v34 = vld [vmem:[%s8622_s21 + $0x850] sm:$0xf0] }
 0x2fa   : > { %4353 = vmatmul.bf16.gmra.mxu0 %v4147_v18  ;;  %v4151_v41 = vrot.slane %v4149_v19, 2  ;;  %v7800_v42 = vld [vmem:[%s8614_s10 + $0x28] sm:$0xff] }
 0x2fb   : > { %4387 = vmatmul.bf16.gmra.mxu1 %v4147_v18  ;;  %4421 = vmatmul.bf16.gmra.mxu2 %v4147_v18 }
 0x2fc   : > { %4455 = vmatmul.bf16.gmra.mxu3 %v4147_v18  ;;  %4849 = vmatpush.bf16.msra.mxu0 %v7326_v36  ;;  %v10035_v19 = vor.u32 %v4154_v35, %v4151_v41  ;;  %v7293_v35 = vld [vmem:[%s8622_s21 + $0x820] sm:$0xf] }
 0x2fd   : > { %4883 = vmatpush.bf16.msra.mxu1 %v7330_v4  ;;  %4918 = vmatpush.bf16.msra.mxu2 %v7318_v21 }
 0x2fe   : > { %v3381_v53 = vpop.f32.mrf.mxu2  ;;  %v4156_v57 = vsel %vm4121_vm4, %v4146_v44, %v10035_v19  ;;  %v7303_v44 = vld [vmem:[%s8622_s21 + $0x838] sm:$0xf0] }
 0x2ff   : > { %v10020_v7 = vadd.f32 %v3381_v53, %v9809_v33  ;;  %v3415_v6 = vpop.f32.mrf.mxu3  ;;  %v3315_v10 = vpop.f32.mrf.mxu0  ;;  %v7848_v33 = vld [vmem:[%s8622_s21 + $0x84c] sm:$0xf0]  ;;  %v7301_v53 = vld [vmem:[%s8622_s21 + $0x828] sm:$0xf] }
 0x300   : > { %v10023_v18 = vadd.f32 %v3415_v6, %v9815_v48  ;;  %v10026_v2 = vadd.f32 %v3315_v10, %v9818_v27  ;;  %v3349_v15 = vpop.f32.mrf.mxu1  ;;  %v7310_v36 = vor.u32 %v7848_v33, %v7309_v52  ;;  %v7314_v48 = vor.u32 %v7846_v24, %v7311_v34  ;;  %v7842_v52 = vld [vmem:[%s8622_s21 + $0x824] sm:$0xf] }
 0x301   : > { %v10029_v45 = vadd.f32 %v3349_v15, %v9821_v54  ;;  %v7302_v10 = vor.u32 %v7845_v29, %v7301_v53  ;;  %v7844_v15 = vld [vmem:[%s8622_s21 + $0x82c] sm:$0xf0]  ;;  %v4019_v53 = vld [vmem:[%s8614_s10 + $0x30] sm:$0x7] }
 0x302   : > { %4850 = vmatpush.bf16.msra.mxu0 %v7310_v36  ;;  %4884 = vmatpush.bf16.msra.mxu1 %v7314_v48  ;;  %v7294_v33 = vor.u32 %v7844_v15, %v7293_v35  ;;  %v7285_v29 = vld [vmem:[%s8622_s21 + $0x808] sm:$0xf]  ;;  %v7277_v35 = vld [vmem:[%s8622_s21 + $0x800] sm:$0xf]  ;;  %v7840_v15 = vld [vmem:[%s8622_s21 + $0x80c] sm:$0xf0] }
 0x303   : > { %4919 = vmatpush.bf16.msra.mxu2 %v7302_v10  ;;  %v7839_v10 = vld [vmem:[%s8622_s21 + $0x80c] sm:$0xf] }
 0x306   : > { %v3383_v27 = vpop.f32.mrf.mxu2  ;;  %4851 = vmatpush.bf16.msra.mxu0 %v7294_v33 }
 0x307   : > { %v10038_v40 = vadd.f32 %v3383_v27, %v9829_v9  ;;  %v3417_v54 = vpop.f32.mrf.mxu3  ;;  %v3318_v4 = vpop.f32.mrf.mxu0  ;;  %v7843_v9 = vld [vmem:[%s8622_s21 + $0x82c] sm:$0xf] }
 0x308   : > { %v10044_v46 = vadd.f32 %v3417_v54, %v9833_v12  ;;  %v10047_v21 = vadd.f32 %v3318_v4, %v9836_v31  ;;  %v3352_v28 = vpop.f32.mrf.mxu1  ;;  %v7306_v41 = vor.u32 %v7843_v9, %v7303_v44  ;;  %v4158_v12 = vshrl.u32 %v7800_v42, 16  ;;  %v7841_v9 = vld [vmem:[%s8622_s21 + $0x814] sm:$0xf0] }
 0x309   : > { %v10053_v6 = vadd.f32 %v3352_v28, %v9842_v37  ;;  %v4161_v31 = vshll.u32 %v7800_v42, 16  ;;  %v7295_v37 = vld [vmem:[%s8622_s21 + $0x830] sm:$0xf0]  ;;  %v7286_v44 = vor.u32 %v7841_v9, %v7285_v29 }
 0x30a   : > { %4358 = vmatmul.bf16.gmra.mxu0 %v4156_v57  ;;  %4953 = vmatpush.bf16.msra.mxu3 %v7306_v41  ;;  %v7298_v36 = vor.u32 %v7842_v52, %v7295_v37  ;;  %v4160_v54 = vrot.slane %v4158_v12, 2  ;;  %v7287_v41 = vld [vmem:[%s8622_s21 + $0x818] sm:$0xf0]  ;;  %v4114_v12 = vunpack.c.l.b16 %v4019_v53  ;;  %v7838_v52 = vld [vmem:[%s8622_s21 + $0x804] sm:$0xf] }
 0x30b   : > { %4392 = vmatmul.bf16.gmra.mxu1 %v4156_v57  ;;  %4426 = vmatmul.bf16.gmra.mxu2 %v4156_v57  ;;  %v4163_v4 = vrot.slane %v4161_v31, 3  ;;  %v7290_v31 = vor.u32 %v7839_v10, %v7287_v41 }
 0x30c   : > { %4460 = vmatmul.bf16.gmra.mxu3 %v4156_v57  ;;  %4885 = vmatpush.bf16.msra.mxu1 %v7298_v36  ;;  %v4120_v36 = vpack.c.b16 %v4114_v12, %v4114_v12 }
 0x30d   : > { %4920 = vmatpush.bf16.msra.mxu2 %v7286_v44 }
 0x30e   : > { %v3386_v24 = vpop.f32.mrf.mxu2  ;;  %4954 = vmatpush.bf16.msra.mxu3 %v7290_v31 }
 0x30f   : > { %v10061_v34 = vadd.f32 %v3386_v24, %v9850_v13  ;;  %v3420_v48 = vpop.f32.mrf.mxu3  ;;  %v3320_v27 = vpop.f32.mrf.mxu0 }
 0x310   : > { %v10064_v57 = vadd.f32 %v3420_v48, %v9856_v32  ;;  %v10067_v42 = vadd.f32 %v3320_v27, %v9859_v30  ;;  %v3354_v28 = vpop.f32.mrf.mxu1  ;;  %v4164_v32 = vor.u32 %v4163_v4, %v4160_v54  ;;  %v7278_v48 = vor.u32 %v7840_v15, %v7277_v35  ;;  %v7279_v27 = vld [vmem:[%s8622_s21 + $0x810] sm:$0xf0] }
 0x311   : > { %v10071_v13 = vadd.f32 %v3354_v28, %v9862_v61  ;;  %v7282_v53 = vor.u32 %v7838_v52, %v7279_v27 }
 0x312   : > { %v4165_v24 = vsel %vm4121_vm4, %v10035_v19, %v4164_v32  ;;  %4852 = vmatpush.bf16.msra.mxu0 %v7278_v48  ;;  %v4170_v19 = vshll.u32 %v4120_v36, 16 }
 0x313   : > { %4886 = vmatpush.bf16.msra.mxu1 %v7282_v53 }
 0x314   : > { %v4172_v41 = vrot.slane %v4170_v19, 3 }
 0x316   : > { %v3388_v30 = vpop.f32.mrf.mxu2 }
 0x317   : > { %v10081_v33 = vadd.f32 %v3388_v30, %v9874_v47  ;;  %v3422_v61 = vpop.f32.mrf.mxu3  ;;  %v3802_v37 = vpop.f32.mrf.mxu0  ;;  %v4167_v47 = vshrl.u32 %v4120_v36, 16  ;;  %v7833_v36 = vld [vmem:[%s8614_s10 + $0x8] sm:$0xf0] }
 0x318   : > { %v10087_v54 = vadd.f32 %v3422_v61, %v9881_v55  ;;  %v10090_v4 = vadd.f32 %v3802_v37, %v9884_v59  ;;  %v3836_v28 = vpop.f32.mrf.mxu1 }
 0x319   : > { %v10093_v29 = vadd.f32 %v3836_v28, %v9887_v16  ;;  %v4169_v44 = vrot.slane %v4167_v47, 2  ;;  %v7834_v28 = vld [vmem:[%s8614_s10 + $0x10] sm:$0xff] }
 0x31a   : > { %4363 = vmatmul.bf16.gmra.mxu0 %v4165_v24 }
 0x31b   : > { %4397 = vmatmul.bf16.gmra.mxu1 %v4165_v24  ;;  %4431 = vmatmul.bf16.gmra.mxu2 %v4165_v24  ;;  %v4173_v35 = vor.u32 %v4172_v41, %v4169_v44 }
 0x31c   : > { %4465 = vmatmul.bf16.gmra.mxu3 %v4165_v24 }
 0x31e   : > { %v3870_v9 = vpop.f32.mrf.mxu2 }
 0x31f   : > { %v10096_v55 = vadd.f32 %v3870_v9, %v9894_v20  ;;  %v3904_v10 = vpop.f32.mrf.mxu3  ;;  %v3804_v59 = vpop.f32.mrf.mxu0 }
 0x320   : > { %v10099_v12 = vadd.f32 %v3904_v10, %v9897_v3  ;;  %v10102_v16 = vadd.f32 %v3804_v59, %v9900_v56  ;;  %v3838_v31 = vpop.f32.mrf.mxu1  ;;  %v4174_v3 = vsel %vm4121_vm4, %v4164_v32, %v4173_v35  ;;  %v4670_v10 = vrot.slane %v7834_v28, 3 }
 0x321   : > { %v10105_v30 = vadd.f32 %v3838_v31, %v9903_v50 }
 0x326   : > { %v3872_v15 = vpop.f32.mrf.mxu2 }
 0x327   : > { %v10108_v20 = vadd.f32 %v3872_v15, %v9916_v39  ;;  %v3906_v52 = vpop.f32.mrf.mxu3  ;;  %v3807_v61 = vpop.f32.mrf.mxu0  ;;  %v7257_v39 = vld [vmem:[%s8614_s10 + $0x8] sm:$0x8] }
 0x328   : > { %v10112_v37 = vadd.f32 %v3906_v52, %v9923_v11  ;;  %v10115_v56 = vadd.f32 %v3807_v61, %v9926_v0  ;;  %v3841_v24 = vpop.f32.mrf.mxu1  ;;  %v7258_v53 = vor.u32 %v7833_v36, %v7257_v39 }
 0x329   : > { %v10118_v50 = vadd.f32 %v3841_v24, %v9929_v8 }
 0x32a   : > { %4368 = vmatmul.bf16.gmra.mxu0 %v4174_v3  ;;  %v4669_v9 = vrot.slane %v7258_v53, 3 }
 0x32b   : > { %4402 = vmatmul.bf16.gmra.mxu1 %v4174_v3  ;;  %4436 = vmatmul.bf16.gmra.mxu2 %v4174_v3 }
 0x32c   : > { %4470 = vmatmul.bf16.gmra.mxu3 %v4174_v3  ;;  %v7835_v3 = vld [vmem:[%s8614_s10 + $0x18] sm:$0xff] }
 0x32d   : > { %v4672_v39 = vrot.slane %v7835_v3, 3 }
 0x32e   : > { %v3875_v48 = vpop.f32.mrf.mxu2 }
 0x32f   : > { %v10123_v27 = vadd.f32 %v3875_v48, %v9936_v62  ;;  %v3909_v32 = vpop.f32.mrf.mxu3  ;;  %v3809_v11 = vpop.f32.mrf.mxu0 }
 0x330   : > { %v10127_v0 = vadd.f32 %v3909_v32, %v9939_v23  ;;  %v10130_v8 = vadd.f32 %v3809_v11, %v9942_v63  ;;  %v3843_v47 = vpop.f32.mrf.mxu1  ;;  %v4671_v23 = vsel %vm4668_vm5, %v4669_v9, %v4670_v10  ;;  %v4673_v11 = vsel %vm4668_vm5, %v4670_v10, %v4672_v39  ;;  %v7836_v10 = vld [vmem:[%s8614_s10 + $0x20] sm:$0xff] }
 0x331   : > { %v10133_v19 = vadd.f32 %v3843_v47, %v9948_v25 }
 0x336   : > { %v3877_v59 = vpop.f32.mrf.mxu2 }
 0x337   : > { %v10136_v62 = vadd.f32 %v3877_v59, %v9958_v17  ;;  %v3911_v44 = vpop.f32.mrf.mxu3  ;;  %v3812_v41 = vpop.f32.mrf.mxu0 }
 0x338   : > { %v10140_v31 = vadd.f32 %v3911_v44, %v9964_v43  ;;  %v10143_v63 = vadd.f32 %v3812_v41, %v9967_v51  ;;  %v3846_v25 = vpop.f32.mrf.mxu1  ;;  %v4674_v44 = vrot.slane %v7836_v10, 3 }
 0x339   : > { %v10146_v35 = vadd.f32 %v3846_v25, %v9970_v14 }
 0x33a   : > { %4853 = vmatmul.bf16.vlgmr.msra.gmra.mxu0 %v4671_v23 }
 0x33b   : > { %4887 = vmatmul.bf16.vlgmr.msra.gmra.mxu1 %v4671_v23  ;;  %4921 = vmatmul.bf16.vlgmr.msra.gmra.mxu2 %v4671_v23 }
 0x33c   : > { %4955 = vmatmul.bf16.vlgmr.msra.gmra.mxu3 %v4671_v23 }
 0x33e   : > { %v3880_v17 = vpop.f32.mrf.mxu2 }
 0x33f   : > { %v10149_v15 = vadd.f32 %v3880_v17, %v9977_v49  ;;  %v3914_v52 = vpop.f32.mrf.mxu3  ;;  %v3814_v61 = vpop.f32.mrf.mxu0  ;;  %v4675_v17 = vsel %vm4668_vm5, %v4672_v39, %v4674_v44 }
 0x340   : > { %v10153_v43 = vadd.f32 %v3914_v52, %v9980_v26  ;;  %v10156_v51 = vadd.f32 %v3814_v61, %v9983_v1  ;;  %v3848_v24 = vpop.f32.mrf.mxu1 }
 0x341   : > { %v10159_v14 = vadd.f32 %v3848_v24, %v9989_v60 }
 0x346   : > { %v3882_v36 = vpop.f32.mrf.mxu2 }
 0x347   : > { %v10162_v48 = vadd.f32 %v3882_v36, %v9997_v5  ;;  %v3916_v49 = vpop.f32.mrf.mxu3  ;;  %v3817_v32 = vpop.f32.mrf.mxu0 }
 0x348   : > { %v10166_v26 = vadd.f32 %v3916_v49, %v10003_v58  ;;  %v10169_v1 = vadd.f32 %v3817_v32, %v10006_v38  ;;  %v3851_v28 = vpop.f32.mrf.mxu1 }
 0x349   : > { %v10172_v60 = vadd.f32 %v3851_v28, %v10009_v22 }
 0x34a   : > { %4858 = vmatmul.bf16.gmra.mxu0 %v4673_v11 }
 0x34b   : > { %4892 = vmatmul.bf16.gmra.mxu1 %v4673_v11  ;;  %4926 = vmatmul.bf16.gmra.mxu2 %v4673_v11 }
 0x34c   : > { %4960 = vmatmul.bf16.gmra.mxu3 %v4673_v11 }
 0x34e   : > { %v3885_v5 = vpop.f32.mrf.mxu2 }
 0x34f   : > { %v10175_v53 = vadd.f32 %v3885_v5, %v10020_v7  ;;  %v3919_v47 = vpop.f32.mrf.mxu3  ;;  %v3819_v9 = vpop.f32.mrf.mxu0 }
 0x350   : > { %v10179_v58 = vadd.f32 %v3919_v47, %v10023_v18  ;;  %v10182_v38 = vadd.f32 %v3819_v9, %v10026_v2  ;;  %v3853_v59 = vpop.f32.mrf.mxu1  ;;  %v4566_v9 = vld [vmem:[%s8614_s10 + $0x30] sm:$0x7] }
 0x351   : > { %v10185_v22 = vadd.f32 %v3853_v59, %v10029_v45 }
 0x356   : > { %v3887_v41 = vpop.f32.mrf.mxu2 }
 0x357   : > { %v10188_v23 = vadd.f32 %v3887_v41, %v10038_v40  ;;  %v3921_v7 = vpop.f32.mrf.mxu3  ;;  %v3822_v25 = vpop.f32.mrf.mxu0 }
 0x358   : > { %v10192_v18 = vadd.f32 %v3921_v7, %v10044_v46  ;;  %v10195_v2 = vadd.f32 %v3822_v25, %v10047_v21  ;;  %v3856_v52 = vpop.f32.mrf.mxu1  ;;  %v7837_v46 = vld [vmem:[%s8614_s10 + $0x28] sm:$0xff] }
 0x359   : > { %v10198_v45 = vadd.f32 %v3856_v52, %v10053_v6  ;;  %v4676_v49 = vrot.slane %v7837_v46, 3 }
 0x35a   : > { %4863 = vmatmul.bf16.gmra.mxu0 %v4675_v17 }
 0x35b   : > { %4897 = vmatmul.bf16.gmra.mxu1 %v4675_v17  ;;  %4931 = vmatmul.bf16.gmra.mxu2 %v4675_v17  ;;  %v4677_v5 = vsel %vm4668_vm5, %v4674_v44, %v4676_v49 }
 0x35c   : > { %4965 = vmatmul.bf16.gmra.mxu3 %v4675_v17 }
 0x35e   : > { %v3890_v40 = vpop.f32.mrf.mxu2 }
 0x35f   : > { %v10201_v61 = vadd.f32 %v3890_v40, %v10061_v34  ;;  %v3924_v3 = vpop.f32.mrf.mxu3  ;;  %v3824_v24 = vpop.f32.mrf.mxu0 }
 0x360   : > { %v10205_v39 = vadd.f32 %v3924_v3, %v10064_v57  ;;  %v10208_v21 = vadd.f32 %v3824_v24, %v10067_v42  ;;  %v3858_v6 = vpop.f32.mrf.mxu1 }
 0x361   : > { %v10211_v36 = vadd.f32 %v3858_v6, %v10071_v13 }
 0x366   : > { %v3892_v32 = vpop.f32.mrf.mxu2 }
 0x367   : > { %v10214_v11 = vadd.f32 %v3892_v32, %v10081_v33  ;;  %v3926_v34 = vpop.f32.mrf.mxu3  ;;  %v4349_v28 = vpop.f32.mrf.mxu0  ;;  %v4661_v33 = vunpack.c.l.b16 %v4566_v9 }
 0x368   : > { %v10218_v47 = vadd.f32 %v3926_v34, %v10087_v54  ;;  %v10221_v57 = vadd.f32 %v4349_v28, %v10090_v4  ;;  %v4383_v42 = vpop.f32.mrf.mxu1 }
 0x369   : > { %v10225_v13 = vadd.f32 %v4383_v42, %v10093_v29  ;;  %v4667_v41 = vpack.c.b16 %v4661_v33, %v4661_v33 }
 0x36a   : > { %4868 = vmatmul.bf16.gmra.mxu0 %v4677_v5 }
 0x36b   : > { %4902 = vmatmul.bf16.gmra.mxu1 %v4677_v5  ;;  %4936 = vmatmul.bf16.gmra.mxu2 %v4677_v5  ;;  %v4678_v17 = vrot.slane %v4667_v41, 3 }
 0x36c   : > { %4970 = vmatmul.bf16.gmra.mxu3 %v4677_v5 }
 0x36d   : > { %v4679_v24 = vsel %vm4668_vm5, %v4676_v49, %v4678_v17 }
 0x36e   : > { %v4417_v10 = vpop.f32.mrf.mxu2 }
 0x36f   : > { %v10228_v59 = vadd.f32 %v4417_v10, %v10096_v55  ;;  %v4451_v44 = vpop.f32.mrf.mxu3  ;;  %v4351_v54 = vpop.f32.mrf.mxu0 }
 0x370   : > { %v10231_v4 = vadd.f32 %v4451_v44, %v10099_v12  ;;  %v10234_v7 = vadd.f32 %v4351_v54, %v10102_v16  ;;  %v4385_v29 = vpop.f32.mrf.mxu1 }
 0x371   : > { %v10237_v25 = vadd.f32 %v4385_v29, %v10105_v30 }
 0x376   : > { %v4419_v52 = vpop.f32.mrf.mxu2 }
 0x377   : > { %v10240_v40 = vadd.f32 %v4419_v52, %v10108_v20  ;;  %v4453_v55 = vpop.f32.mrf.mxu3  ;;  %v4354_v3 = vpop.f32.mrf.mxu0 }
 0x378   : > { %v10244_v46 = vadd.f32 %v4453_v55, %v10112_v37  ;;  %v10247_v12 = vadd.f32 %v4354_v3, %v10115_v56  ;;  %v4388_v16 = vpop.f32.mrf.mxu1 }
 0x379   : > { %v10250_v6 = vadd.f32 %v4388_v16, %v10118_v50 }
 0x37a   : > { %4873 = vmatmul.bf16.gmra.mxu0 %v4679_v24 }
 0x37b   : > { %4907 = vmatmul.bf16.gmra.mxu1 %v4679_v24  ;;  %4941 = vmatmul.bf16.gmra.mxu2 %v4679_v24 }
 0x37c   : > { %4975 = vmatmul.bf16.gmra.mxu3 %v4679_v24 }
 0x37e   : > { %v4422_v30 = vpop.f32.mrf.mxu2 }
 0x37f   : > { %v10253_v20 = vadd.f32 %v4422_v30, %v10123_v27  ;;  %v4456_v32 = vpop.f32.mrf.mxu3  ;;  %v4356_v49 = vpop.f32.mrf.mxu0 }
 0x380   : > { %v10256_v37 = vadd.f32 %v4456_v32, %v10127_v0  ;;  %v10259_v56 = vadd.f32 %v4356_v49, %v10130_v8  ;;  %v4390_v34 = vpop.f32.mrf.mxu1 }
 0x381   : > { %v10262_v50 = vadd.f32 %v4390_v34, %v10133_v19 }
 0x386   : > { %v4424_v28 = vpop.f32.mrf.mxu2 }
 0x387   : > { %v10265_v5 = vadd.f32 %v4424_v28, %v10136_v62  ;;  %v4458_v42 = vpop.f32.mrf.mxu3  ;;  %v4359_v9 = vpop.f32.mrf.mxu0 }
 0x388   : > { %v10268_v27 = vadd.f32 %v4458_v42, %v10140_v31  ;;  %v10271_v33 = vadd.f32 %v4359_v9, %v10143_v63  ;;  %v4393_v0 = vpop.f32.mrf.mxu1 }
 0x389   : > { %v10274_v8 = vadd.f32 %v4393_v0, %v10146_v35 }
 0x38e   : > { %v4427_v10 = vpop.f32.mrf.mxu2 }
 0x38f   : > { %v10277_v19 = vadd.f32 %v4427_v10, %v10149_v15  ;;  %v4461_v44 = vpop.f32.mrf.mxu3  ;;  %v4361_v54 = vpop.f32.mrf.mxu0 }
 0x390   : > { %v10280_v62 = vadd.f32 %v4461_v44, %v10153_v43  ;;  %v10283_v41 = vadd.f32 %v4361_v54, %v10156_v51  ;;  %v4395_v31 = vpop.f32.mrf.mxu1 }
 0x391   : > { %v10286_v63 = vadd.f32 %v4395_v31, %v10159_v14 }
 0x396   : > { %v4429_v29 = vpop.f32.mrf.mxu2 }
 0x397   : > { %v10289_v35 = vadd.f32 %v4429_v29, %v10162_v48  ;;  %v4463_v17 = vpop.f32.mrf.mxu3  ;;  %v4364_v52 = vpop.f32.mrf.mxu0 }
 0x398   : > { %v10292_v15 = vadd.f32 %v4463_v17, %v10166_v26  ;;  %v10295_v55 = vadd.f32 %v4364_v52, %v10169_v1  ;;  %v4398_v43 = vpop.f32.mrf.mxu1 }
 0x399   : > { %v10298_v51 = vadd.f32 %v4398_v43, %v10172_v60 }
 0x39e   : > { %v4432_v3 = vpop.f32.mrf.mxu2 }
 0x39f   : > { %v10301_v14 = vadd.f32 %v4432_v3, %v10175_v53  ;;  %v4466_v24 = vpop.f32.mrf.mxu3  ;;  %v4366_v16 = vpop.f32.mrf.mxu0 }
 0x3a0   : > { %v10304_v48 = vadd.f32 %v4466_v24, %v10179_v58  ;;  %v10307_v30 = vadd.f32 %v4366_v16, %v10182_v38  ;;  %v4400_v26 = vpop.f32.mrf.mxu1 }
 0x3a1   : > { %v10310_v1 = vadd.f32 %v4400_v26, %v10185_v22 }
 0x3a6   : > { %v4434_v32 = vpop.f32.mrf.mxu2 }
 0x3a7   : > { %v10313_v60 = vadd.f32 %v4434_v32, %v10188_v23  ;;  %v4468_v49 = vpop.f32.mrf.mxu3  ;;  %v4369_v34 = vpop.f32.mrf.mxu0 }
 0x3a8   : > { %v10316_v53 = vadd.f32 %v4468_v49, %v10192_v18  ;;  %v10319_v28 = vadd.f32 %v4369_v34, %v10195_v2  ;;  %v4403_v58 = vpop.f32.mrf.mxu1 }
 0x3a9   : > { %v10322_v38 = vadd.f32 %v4403_v58, %v10198_v45 }
 0x3ae   : > { %v4437_v42 = vpop.f32.mrf.mxu2 }
 0x3af   : > { %v10325_v22 = vadd.f32 %v4437_v42, %v10201_v61  ;;  %v4471_v9 = vpop.f32.mrf.mxu3  ;;  %v4371_v0 = vpop.f32.mrf.mxu0 }
 0x3b0   : > { %v10328_v23 = vadd.f32 %v4471_v9, %v10205_v39  ;;  %v10331_v10 = vadd.f32 %v4371_v0, %v10208_v21  ;;  %v4405_v18 = vpop.f32.mrf.mxu1 }
 0x3b1   : > { %v10334_v2 = vadd.f32 %v4405_v18, %v10211_v36 }
 0x3b6   : > { %v4439_v44 = vpop.f32.mrf.mxu2 }
 0x3b7   : > { %v10337_v45 = vadd.f32 %v4439_v44, %v10214_v11  ;;  %v4473_v54 = vpop.f32.mrf.mxu3  ;;  %v4854_v31 = vpop.f32.mrf.mxu0 }
 0x3b8   : > { %v10340_v61 = vadd.f32 %v4473_v54, %v10218_v47  ;;  %v4981_v29 = vadd.f32 %v4854_v31, %v10221_v57  ;;  %v4888_v39 = vpop.f32.mrf.mxu1 }
 0x3b9   : > { %v4982_v17 = vadd.f32 %v4888_v39, %v10225_v13 }
 0x3ba   : > { %5021 = vst [vmem:[#allocation2 + $0xb0] sm:$0xff] %v4981_v29 }
 0x3bb   : > { %5022 = vst [vmem:[#allocation2 + $0xd0] sm:$0xff] %v4982_v17 }
 0x3be   : > { %v4922_v21 = vpop.f32.mrf.mxu2 }
 0x3bf   : > { %v4983_v36 = vadd.f32 %v4922_v21, %v10228_v59  ;;  %v4956_v52 = vpop.f32.mrf.mxu3  ;;  %v4856_v43 = vpop.f32.mrf.mxu0 }
 0x3c0   : > { %v4984_v11 = vadd.f32 %v4956_v52, %v10231_v4  ;;  %v4985_v3 = vadd.f32 %v4856_v43, %v10234_v7  ;;  %v4890_v24 = vpop.f32.mrf.mxu1 }
 0x3c1   : > { %5023 = vst [vmem:[#allocation2 + $0x10] sm:$0xff] %v4983_v36  ;;  %v4986_v47 = vadd.f32 %v4890_v24, %v10237_v25 }
 0x3c2   : > { %5024 = vst [vmem:[#allocation2 + $0x48] sm:$0xff] %v4984_v11 }
 0x3c3   : > { %5025 = vst [vmem:[#allocation2 + $0x120] sm:$0xff] %v4985_v3 }
 0x3c4   : > { %5026 = vst [vmem:[#allocation2 + $0x38] sm:$0xff] %v4986_v47 }
 0x3c6   : > { %v4924_v57 = vpop.f32.mrf.mxu2 }
 0x3c7   : > { %v4987_v13 = vadd.f32 %v4924_v57, %v10240_v40  ;;  %v4958_v16 = vpop.f32.mrf.mxu3  ;;  %v4859_v26 = vpop.f32.mrf.mxu0 }
 0x3c8   : > { %v4988_v59 = vadd.f32 %v4958_v16, %v10244_v46  ;;  %v4989_v32 = vadd.f32 %v4859_v26, %v10247_v12  ;;  %v4893_v49 = vpop.f32.mrf.mxu1 }
 0x3c9   : > { %5027 = vst [vmem:[#allocation2 + $0xf8] sm:$0xff] %v4987_v13  ;;  %v4990_v4 = vadd.f32 %v4893_v49, %v10250_v6 }
 0x3ca   : > { %5028 = vst [vmem:[#allocation2 + $0x100] sm:$0xff] %v4988_v59 }
 0x3cb   : > { %5029 = vst [vmem:[#allocation2 + $0x80] sm:$0xff] %v4989_v32 }
 0x3cc   : > { %5030 = vst [vmem:[#allocation2 + $0x108] sm:$0xff] %v4990_v4 }
 0x3ce   : > { %v4927_v7 = vpop.f32.mrf.mxu2 }
 0x3cf   : > { %v4991_v25 = vadd.f32 %v4927_v7, %v10253_v20  ;;  %v4961_v34 = vpop.f32.mrf.mxu3  ;;  %v4861_v58 = vpop.f32.mrf.mxu0 }
 0x3d0   : > { %v4992_v40 = vadd.f32 %v4961_v34, %v10256_v37  ;;  %v4993_v42 = vadd.f32 %v4861_v58, %v10259_v56  ;;  %v4895_v9 = vpop.f32.mrf.mxu1 }
 0x3d1   : > { %5031 = vst [vmem:[#allocation2 + $0x138] sm:$0xff] %v4991_v25  ;;  %v4994_v46 = vadd.f32 %v4895_v9, %v10262_v50 }
 0x3d2   : > { %5032 = vst [vmem:[#allocation2 + $0xf0] sm:$0xff] %v4992_v40 }
 0x3d3   : > { %5033 = vst [vmem:[#allocation2 + $0x18] sm:$0xff] %v4993_v42 }
 0x3d4   : > { %5034 = vst [vmem:[#allocation2 + $0xc8] sm:$0xff] %v4994_v46 }
 0x3d6   : > { %v4929_v12 = vpop.f32.mrf.mxu2 }
 0x3d7   : > { %v4995_v6 = vadd.f32 %v4929_v12, %v10265_v5  ;;  %v4963_v0 = vpop.f32.mrf.mxu3  ;;  %v4864_v18 = vpop.f32.mrf.mxu0 }
 0x3d8   : > { %v4996_v20 = vadd.f32 %v4963_v0, %v10268_v27  ;;  %v4997_v44 = vadd.f32 %v4864_v18, %v10271_v33  ;;  %v4898_v54 = vpop.f32.mrf.mxu1 }
 0x3d9   : > { %5035 = vst [vmem:[#allocation2 + $0x70] sm:$0xff] %v4995_v6  ;;  %v4998_v37 = vadd.f32 %v4898_v54, %v10274_v8 }
 0x3da   : > { %5036 = vst [vmem:[#allocation2 + $0x20] sm:$0xff] %v4996_v20 }
 0x3db   : > { %5037 = vst [vmem:[#allocation2 + $0x128] sm:$0xff] %v4997_v44 }
 0x3dc   : > { %5038 = vst [vmem:[#allocation2 + $0x110] sm:$0xff] %v4998_v37 }
 0x3de   : > { %v4932_v56 = vpop.f32.mrf.mxu2 }
 0x3df   : > { %v4999_v50 = vadd.f32 %v4932_v56, %v10277_v19  ;;  %v4966_v31 = vpop.f32.mrf.mxu3  ;;  %v4866_v29 = vpop.f32.mrf.mxu0 }
 0x3e0   : > { %v5000_v5 = vadd.f32 %v4966_v31, %v10280_v62  ;;  %v5001_v39 = vadd.f32 %v4866_v29, %v10283_v41  ;;  %v4900_v17 = vpop.f32.mrf.mxu1 }
 0x3e1   : > { %5039 = vst [vmem:[#allocation2 + $0x8] sm:$0xff] %v4999_v50  ;;  %v5002_v27 = vadd.f32 %v4900_v17, %v10286_v63 }
 0x3e2   : > { %5040 = vst [vmem:[#allocation2 + $0x98] sm:$0xff] %v5000_v5 }
 0x3e3   : > { %5041 = vst [vmem:[#allocation2 + $0xa8] sm:$0xff] %v5001_v39 }
 0x3e4   : > { %5042 = vst [vmem:[#allocation2 + $0x90] sm:$0xff] %v5002_v27 }
 0x3e6   : > { %v4934_v33 = vpop.f32.mrf.mxu2 }
 0x3e7   : > { %v5003_v8 = vadd.f32 %v4934_v33, %v10289_v35  ;;  %v4968_v21 = vpop.f32.mrf.mxu3  ;;  %v4869_v36 = vpop.f32.mrf.mxu0 }
 0x3e8   : > { %v5004_v19 = vadd.f32 %v4968_v21, %v10292_v15  ;;  %v5005_v52 = vadd.f32 %v4869_v36, %v10295_v55  ;;  %v4903_v43 = vpop.f32.mrf.mxu1 }
 0x3e9   : > { %5043 = vst [vmem:[#allocation2 + $0xe0] sm:$0xff] %v5003_v8  ;;  %v5006_v62 = vadd.f32 %v4903_v43, %v10298_v51 }
 0x3ea   : > { %5044 = vst [vmem:[#allocation2 + $0x88] sm:$0xff] %v5004_v19 }
 0x3eb   : > { %5045 = vst [vmem:[#allocation2 + $0xc0] sm:$0xff] %v5005_v52 }
 0x3ec   : > { %5046 = vst [vmem:[#allocation2 + $0x118] sm:$0xff] %v5006_v62 }
 0x3ee   : > { %v4937_v41 = vpop.f32.mrf.mxu2 }
 0x3ef   : > { %v5007_v63 = vadd.f32 %v4937_v41, %v10301_v14  ;;  %v4971_v11 = vpop.f32.mrf.mxu3  ;;  %v4871_v3 = vpop.f32.mrf.mxu0 }
 0x3f0   : > { %v5008_v35 = vadd.f32 %v4971_v11, %v10304_v48  ;;  %v5009_v24 = vadd.f32 %v4871_v3, %v10307_v30  ;;  %v4905_v47 = vpop.f32.mrf.mxu1 }
 0x3f1   : > { %5047 = vst [vmem:[#allocation2 + $0xd8] sm:$0xff] %v5007_v63  ;;  %v5010_v15 = vadd.f32 %v4905_v47, %v10310_v1 }
 0x3f2   : > { %5048 = vst [vmem:[#allocation2 + $0xa0] sm:$0xff] %v5008_v35 }
 0x3f3   : > { %5049 = vst [vmem:[#allocation2 + $0x68] sm:$0xff] %v5009_v24 }
 0x3f4   : > { %5050 = vst [vmem:[#allocation2 + $0x130] sm:$0xff] %v5010_v15 }
 0x3f6   : > { %v4939_v55 = vpop.f32.mrf.mxu2 }
 0x3f7   : > { %v5011_v51 = vadd.f32 %v4939_v55, %v10313_v60  ;;  %v4973_v57 = vpop.f32.mrf.mxu3  ;;  %v4874_v13 = vpop.f32.mrf.mxu0 }
 0x3f8   : > { %v5012_v14 = vadd.f32 %v4973_v57, %v10316_v53  ;;  %v5013_v16 = vadd.f32 %v4874_v13, %v10319_v28  ;;  %v4908_v26 = vpop.f32.mrf.mxu1 }
 0x3f9   : > { %5051 = vst [vmem:[#allocation2 + $0x50] sm:$0xff] %v5011_v51  ;;  %v5014_v48 = vadd.f32 %v4908_v26, %v10322_v38 }
 0x3fa   : > { %5052 = vst [vmem:[#allocation2 + $0xe8] sm:$0xff] %v5012_v14 }
 0x3fb   : > { %5053 = vst [vmem:[#allocation2 + $0x58] sm:$0xff] %v5013_v16 }
 0x3fc   : > { %5054 = vst [vmem:[#allocation2 + $0x78] sm:$0xff] %v5014_v48 }
 0x3fe   : > { %v4942_v30 = vpop.f32.mrf.mxu2 }
 0x3ff   : > { %v5015_v1 = vadd.f32 %v4942_v30, %v10325_v22  ;;  %v4976_v59 = vpop.f32.mrf.mxu3  ;;  %v4876_v32 = vpop.f32.mrf.mxu0 }
 0x400   : > { %v5016_v60 = vadd.f32 %v4976_v59, %v10328_v23  ;;  %v5017_v49 = vadd.f32 %v4876_v32, %v10331_v10  ;;  %v4910_v4 = vpop.f32.mrf.mxu1 }
 0x401   : > { %5055 = vst [vmem:[#allocation2 + $0x30] sm:$0xff] %v5015_v1  ;;  %v5018_v53 = vadd.f32 %v4910_v4, %v10334_v2 }
 0x402   : > { %5056 = vst [vmem:[#allocation2 + $0x40] sm:$0xff] %v5016_v60 }
 0x403   : > { %5057 = vst [vmem:[#allocation2 + $0x28] sm:$0xff] %v5017_v49 }
 0x404   : > { %5058 = vst [vmem:[#allocation2] sm:$0xff] %v5018_v53 }
 0x406   : > { %v4944_v28 = vpop.f32.mrf.mxu2  ;;  %5064 = sbr.rel (%p7403_p5) target bundleno = 1281 (0x501), region = 68 }
 0x407   : > { %v5019_v38 = vadd.f32 %v4944_v28, %v10337_v45  ;;  %v4978_v7 = vpop.f32.mrf.mxu3 }
 0x408   : > { %v5020_v25 = vadd.f32 %v4978_v7, %v10340_v61 }
 0x409   : > { %5059 = vst [vmem:[#allocation2 + $0xb8] sm:$0xff] %v5019_v38 }
 0x40a   : > { %5060 = vst [vmem:[#allocation2 + $0x60] sm:$0xff] %v5020_v25 }
 0x40b   : > { %v7877_v22 = vld [vmem:[#allocation9 + $0x38] sm:$0xff]  ;;  %v7876_v2 = vld [vmem:[#allocation9 + $0x30] sm:$0xff]  ;;  %v7875_v61 = vld [vmem:[#allocation9 + $0x28] sm:$0xff] }
 0x40c   : > { %v7885_v23 = vld [vmem:[#allocation9 + $0x78] sm:$0xff]  ;;  %5475 = vmatpush.bf16.msra.mxu0 %v7877_v22  ;;  %v7884_v58 = vld [vmem:[#allocation9 + $0x70] sm:$0xff]  ;;  %v7883_v42 = vld [vmem:[#allocation9 + $0x68] sm:$0xff] }
 0x40d   : > { %v7893_v10 = vld [vmem:[#allocation9 + $0xb8] sm:$0xff]  ;;  %5509 = vmatpush.bf16.msra.mxu1 %v7885_v23  ;;  %v7892_v40 = vld [vmem:[#allocation9 + $0xb0] sm:$0xff]  ;;  %v7891_v9 = vld [vmem:[#allocation9 + $0xa8] sm:$0xff] }
 0x40e   : > { %v7901_v34 = vld [vmem:[#allocation9 + $0xf8] sm:$0xff]  ;;  %5543 = vmatpush.bf16.msra.mxu2 %v7893_v10  ;;  %v7900_v45 = vld [vmem:[#allocation9 + $0xf0] sm:$0xff]  ;;  %v7899_v46 = vld [vmem:[#allocation9 + $0xe8] sm:$0xff] }
 0x40f   : > { %5577 = vmatpush.bf16.msra.mxu3 %v7901_v34  ;;  %v7874_v12 = vld [vmem:[#allocation9 + $0x20] sm:$0xff]  ;;  %v5105_v20 = vld [vmem:[#allocation8] sm:$0xf]  ;;  %v7872_v50 = vld [vmem:[#allocation9 + $0x10] sm:$0xff] }
 0x410   : > { %5476 = vmatpush.bf16.msra.mxu0 %v7876_v2  ;;  %v7882_v6 = vld [vmem:[#allocation9 + $0x60] sm:$0xff]  ;;  %v7873_v44 = vld [vmem:[#allocation9 + $0x18] sm:$0xff]  ;;  %v7880_v31 = vld [vmem:[#allocation9 + $0x50] sm:$0xff]  ;;  %v10383_v29 = vperm.slane %v5105_v20, 0  ;;  %v10385_v33 = vperm.slane %v5105_v20, 1  ;;  %v10387_v8 = vperm.slane %v5105_v20, 2 }
 0x411   : > { %5510 = vmatpush.bf16.msra.mxu1 %v7884_v58  ;;  %v7890_v0 = vld [vmem:[#allocation9 + $0xa0] sm:$0xff]  ;;  %v7881_v54 = vld [vmem:[#allocation9 + $0x58] sm:$0xff]  ;;  %v7888_v5 = vld [vmem:[#allocation9 + $0x90] sm:$0xff]  ;;  %v10389_v52 = vperm.slane %v5105_v20, 3 }
 0x412   : > { %5544 = vmatpush.bf16.msra.mxu2 %v7892_v40  ;;  %v7898_v18 = vld [vmem:[#allocation9 + $0xe0] sm:$0xff]  ;;  %v7889_v37 = vld [vmem:[#allocation9 + $0x98] sm:$0xff]  ;;  %v7896_v39 = vld [vmem:[#allocation9 + $0xd0] sm:$0xff] }
 0x413   : > { %5578 = vmatpush.bf16.msra.mxu3 %v7900_v45  ;;  %v7897_v56 = vld [vmem:[#allocation9 + $0xd8] sm:$0xff]  ;;  %v5065_v17 = vld [vmem:[#allocation2 + $0xb0] sm:$0xff]  ;;  %v5070_v36 = vld [vmem:[#allocation2 + $0x38] sm:$0xff] }
 0x414   : > { %5477 = vmatpush.bf16.msra.mxu0 %v7875_v61  ;;  %v5069_v27 = vld [vmem:[#allocation2 + $0x120] sm:$0xff]  ;;  %v5066_v21 = vld [vmem:[#allocation2 + $0xd0] sm:$0xff]  ;;  %v5071_v43 = vld [vmem:[#allocation2 + $0xf8] sm:$0xff]  ;;  %v5115_v63 = vadd.f32 %v10383_v29, %v5065_v17  ;;  %v5120_v35 = vadd.f32 %v10385_v33, %v5070_v36 }
 0x415   : > { %5511 = vmatpush.bf16.msra.mxu1 %v7883_v42  ;;  %v5067_v19 = vld [vmem:[#allocation2 + $0x10] sm:$0xff]  ;;  %v5068_v62 = vld [vmem:[#allocation2 + $0x48] sm:$0xff]  ;;  %v5072_v41 = vld [vmem:[#allocation2 + $0x100] sm:$0xff]  ;;  %v5119_v11 = vadd.f32 %v10383_v29, %v5069_v27  ;;  %v5116_v3 = vadd.f32 %v10385_v33, %v5066_v21  ;;  %v5121_v55 = vadd.f32 %v10387_v8, %v5071_v43 }
 0x416   : > { %5545 = vmatpush.bf16.msra.mxu2 %v7891_v9  ;;  %v5117_v24 = vadd.f32 %v10387_v8, %v5067_v19  ;;  %v7871_v47 = vld [vmem:[#allocation9 + $0x8] sm:$0xff]  ;;  %v5118_v51 = vadd.f32 %v10389_v52, %v5068_v62  ;;  %v5122_v57 = vadd.f32 %v10389_v52, %v5072_v41  ;;  %v5155_v16 = vmax.f32 %v5115_v63, 0.0  ;;  %v7870_v1 = vld [vmem:[#allocation9] sm:$0xff]  ;;  %v5073_v23 = vld [vmem:[#allocation2 + $0x80] sm:$0xff] }
 0x417   : > { %5579 = vmatpush.bf16.msra.mxu3 %v7899_v46  ;;  %v7879_v15 = vld [vmem:[#allocation9 + $0x48] sm:$0xff]  ;;  %v5159_v26 = vmax.f32 %v5119_v11, 0.0  ;;  %v5156_v48 = vmax.f32 %v5116_v3, 0.0  ;;  %v5160_v30 = vmax.f32 %v5120_v35, 0.0  ;;  %v7878_v59 = vld [vmem:[#allocation9 + $0x40] sm:$0xff]  ;;  %v5161_v60 = vmax.f32 %v5121_v55, 0.0 }
 0x418   : > { %5478 = vmatpush.bf16.msra.mxu0 %v7874_v12  ;;  %v7887_v13 = vld [vmem:[#allocation9 + $0x88] sm:$0xff]  ;;  %v5157_v32 = vmax.f32 %v5117_v24, 0.0  ;;  %v5158_v49 = vmax.f32 %v5118_v51, 0.0  ;;  %v5162_v4 = vmax.f32 %v5122_v57, 0.0  ;;  %v7886_v53 = vld [vmem:[#allocation9 + $0x80] sm:$0xff]  ;;  %v5080_v61 = vld [vmem:[#allocation2 + $0x20] sm:$0xff]  ;;  %v5123_v42 = vadd.f32 %v10383_v29, %v5073_v23 }
 0x419   : > { %5512 = vmatpush.bf16.msra.mxu1 %v7882_v6  ;;  %v7895_v14 = vld [vmem:[#allocation9 + $0xc8] sm:$0xff]  ;;  %v7894_v28 = vld [vmem:[#allocation9 + $0xc0] sm:$0xff]  ;;  %v5195_v38 = vpack.c.bf16 %v5159_v26, %v5155_v16  ;;  %v5196_v7 = vpack.c.bf16 %v5160_v30, %v5156_v48  ;;  %v5130_v20 = vadd.f32 %v10389_v52, %v5080_v61  ;;  %v5087_v11 = vld [vmem:[#allocation2 + $0xe0] sm:$0xff] }
 0x41a   : > { %5546 = vmatpush.bf16.msra.mxu2 %v7890_v0  ;;  %v5197_v25 = vpack.c.bf16 %v5161_v60, %v5157_v32  ;;  %v5198_v22 = vpack.c.bf16 %v5162_v4, %v5158_v49  ;;  %v5077_v10 = vld [vmem:[#allocation2 + $0x18] sm:$0xff]  ;;  %v5074_v34 = vld [vmem:[#allocation2 + $0x108] sm:$0xff]  ;;  %v5079_v40 = vld [vmem:[#allocation2 + $0x70] sm:$0xff]  ;;  %v5137_v57 = vadd.f32 %v10387_v8, %v5087_v11 }
 0x41b   : > { %5580 = vmatpush.bf16.msra.mxu3 %v7898_v18  ;;  %v5078_v2 = vld [vmem:[#allocation2 + $0xc8] sm:$0xff]  ;;  %v5075_v58 = vld [vmem:[#allocation2 + $0x138] sm:$0xff]  ;;  %v5076_v45 = vld [vmem:[#allocation2 + $0xf0] sm:$0xff]  ;;  %v5127_v9 = vadd.f32 %v10383_v29, %v5077_v10  ;;  %v5124_v46 = vadd.f32 %v10385_v33, %v5074_v34  ;;  %v5129_v0 = vadd.f32 %v10387_v8, %v5079_v40 }
 0x41c   : > { %5479 = vmatpush.bf16.msra.mxu0 %v7873_v44  ;;  %v5128_v12 = vadd.f32 %v10385_v33, %v5078_v2  ;;  %v5125_v6 = vadd.f32 %v10387_v8, %v5075_v58  ;;  %v5126_v18 = vadd.f32 %v10389_v52, %v5076_v45  ;;  %v5163_v44 = vmax.f32 %v5123_v42, 0.0  ;;  %v5081_v19 = vld [vmem:[#allocation2 + $0x128] sm:$0xff]  ;;  %v5082_v62 = vld [vmem:[#allocation2 + $0x110] sm:$0xff]  ;;  %v5084_v3 = vld [vmem:[#allocation2 + $0x98] sm:$0xff] }
 0x41d   : > { %5513 = vmatpush.bf16.msra.mxu1 %v7881_v54  ;;  %v5167_v54 = vmax.f32 %v5127_v9, 0.0  ;;  %v5085_v43 = vld [vmem:[#allocation2 + $0xa8] sm:$0xff]  ;;  %v5086_v41 = vld [vmem:[#allocation2 + $0x90] sm:$0xff]  ;;  %v5131_v24 = vadd.f32 %v10383_v29, %v5081_v19  ;;  %v5091_v23 = vld [vmem:[#allocation2 + $0xd8] sm:$0xff] }
 0x41e   : > { %5547 = vmatpush.bf16.msra.mxu2 %v7889_v37  ;;  %v5164_v37 = vmax.f32 %v5124_v46, 0.0  ;;  %v5083_v63 = vld [vmem:[#allocation2 + $0x8] sm:$0xff]  ;;  %v5136_v55 = vadd.f32 %v10385_v33, %v5086_v41  ;;  %v5095_v10 = vld [vmem:[#allocation2 + $0x50] sm:$0xff]  ;;  %v5092_v34 = vld [vmem:[#allocation2 + $0xa0] sm:$0xff]  ;;  %v5141_v42 = vadd.f32 %v10387_v8, %v5091_v23 }
 0x41f   : > { %5581 = vmatpush.bf16.msra.mxu3 %v7897_v56  ;;  %v5168_v56 = vmax.f32 %v5128_v12, 0.0  ;;  %v5199_v17 = vpack.c.bf16 %v5167_v54, %v5163_v44  ;;  %v5088_v35 = vld [vmem:[#allocation2 + $0x88] sm:$0xff]  ;;  %v5133_v51 = vadd.f32 %v10387_v8, %v5083_v63  ;;  %v5171_v16 = vmax.f32 %v5131_v24, 0.0  ;;  %v5099_v19 = vld [vmem:[#allocation2 + $0x30] sm:$0xff]  ;;  %v5104_v41 = vld [vmem:[#allocation2 + $0x60] sm:$0xff] }
 0x420   : > { %5480 = vmatpush.bf16.msra.mxu0 %v7872_v50  ;;  %v5165_v50 = vmax.f32 %v5125_v6, 0.0  ;;  %v5176_v30 = vmax.f32 %v5136_v55, 0.0  ;;  %v5096_v2 = vld [vmem:[#allocation2 + $0xe8] sm:$0xff]  ;;  %v5145_v9 = vadd.f32 %v10387_v8, %v5095_v10  ;;  %v5142_v46 = vadd.f32 %v10389_v52, %v5092_v34 }
 0x421   : > { %5514 = vmatpush.bf16.msra.mxu1 %v7880_v31  ;;  %v5169_v31 = vmax.f32 %v5129_v0, 0.0  ;;  %v5200_v27 = vpack.c.bf16 %v5168_v56, %v5164_v37  ;;  %v5146_v12 = vadd.f32 %v10389_v52, %v5096_v2  ;;  %v5181_v44 = vmax.f32 %v5141_v42, 0.0 }
 0x422   : > { %5548 = vmatpush.bf16.msra.mxu2 %v7888_v5  ;;  %v5166_v5 = vmax.f32 %v5126_v18, 0.0  ;;  %v5185_v54 = vmax.f32 %v5145_v9, 0.0  ;;  %v5182_v37 = vmax.f32 %v5142_v46, 0.0  ;;  %v5149_v24 = vadd.f32 %v10387_v8, %v5099_v19 }
 0x423   : > { %5582 = vmatpush.bf16.msra.mxu3 %v7896_v39  ;;  %v5170_v39 = vmax.f32 %v5130_v20, 0.0  ;;  %v5201_v21 = vpack.c.bf16 %v5169_v31, %v5165_v50  ;;  %v5186_v56 = vmax.f32 %v5146_v12, 0.0  ;;  %v5154_v55 = vadd.f32 %v10389_v52, %v5104_v41 }
 0x424   : > { %5481 = vmatpush.bf16.msra.mxu0 %v7871_v47  ;;  %v5135_v47 = vadd.f32 %v10383_v29, %v5085_v43  ;;  %v5103_v43 = vld [vmem:[#allocation2 + $0xb8] sm:$0xff] }
 0x425   : > { %5515 = vmatpush.bf16.msra.mxu1 %v7879_v15  ;;  %v5202_v36 = vpack.c.bf16 %v5170_v39, %v5166_v5  ;;  %v5132_v15 = vadd.f32 %v10385_v33, %v5082_v62  ;;  %v5209_v5 = vpack.c.bf16 %v5185_v54, %v5181_v44  ;;  %v5210_v39 = vpack.c.bf16 %v5186_v56, %v5182_v37  ;;  %v5100_v62 = vld [vmem:[#allocation2 + $0x40] sm:$0xff] }
 0x426   : > { %5549 = vmatpush.bf16.msra.mxu2 %v7887_v13  ;;  %v5134_v13 = vadd.f32 %v10389_v52, %v5084_v3  ;;  %v5175_v26 = vmax.f32 %v5135_v47, 0.0  ;;  %v5153_v47 = vadd.f32 %v10387_v8, %v5103_v43  ;;  %v10431_v8 = vld [vmem:[#allocation11] ss:$0 sm:$0xff] }
 0x427   : > { %5583 = vmatpush.bf16.msra.mxu3 %v7895_v14  ;;  %v5138_v14 = vadd.f32 %v10389_v52, %v5088_v35  ;;  %v5172_v48 = vmax.f32 %v5132_v15, 0.0  ;;  %v5150_v15 = vadd.f32 %v10389_v52, %v5100_v62 }
 0x428   : > { %5482 = vmatpush.bf16.msra.mxu0 %v7870_v1  ;;  %v5173_v1 = vmax.f32 %v5133_v51, 0.0  ;;  %v5174_v32 = vmax.f32 %v5134_v13, 0.0  ;;  %v5203_v49 = vpack.c.bf16 %v5175_v26, %v5171_v16  ;;  %v5189_v16 = vmax.f32 %v5149_v24, 0.0 }
 0x429   : > { %5516 = vmatpush.bf16.msra.mxu1 %v7878_v59  ;;  %v5177_v59 = vmax.f32 %v5137_v57, 0.0  ;;  %v5178_v60 = vmax.f32 %v5138_v14, 0.0  ;;  %v5204_v4 = vpack.c.bf16 %v5176_v30, %v5172_v48  ;;  %v5193_v26 = vmax.f32 %v5153_v47, 0.0 }
 0x42a   : > { %5550 = vmatpush.bf16.msra.mxu2 %v7886_v53  ;;  %v5190_v48 = vmax.f32 %v5150_v15, 0.0 }
 0x42b   : > { %5584 = vmatpush.bf16.msra.mxu3 %v7894_v28  ;;  %5483 = vmatmul.bf16.vlgmr.msra.gmra.mxu0 %v5195_v38  ;;  %v5205_v53 = vpack.c.bf16 %v5177_v59, %v5173_v1  ;;  %v5206_v28 = vpack.c.bf16 %v5178_v60, %v5174_v32  ;;  %v5089_v38 = vld [vmem:[#allocation2 + $0xc0] sm:$0xff]  ;;  %v5213_v59 = vpack.c.bf16 %v5193_v26, %v5189_v16 }
 0x42c   : > { %5517 = vmatmul.bf16.vlgmr.msra.gmra.mxu1 %v5196_v7  ;;  %v5093_v7 = vld [vmem:[#allocation2 + $0x68] sm:$0xff]  ;;  %v5139_v58 = vadd.f32 %v10383_v29, %v5089_v38 }
 0x42d   : > { %5551 = vmatmul.bf16.vlgmr.msra.gmra.mxu2 %v5197_v25  ;;  %v5090_v25 = vld [vmem:[#allocation2 + $0x118] sm:$0xff]  ;;  %v5143_v40 = vadd.f32 %v10383_v29, %v5093_v7 }
 0x42e   : > { %5585 = vmatmul.bf16.vlgmr.msra.gmra.mxu3 %v5198_v22  ;;  %v5094_v22 = vld [vmem:[#allocation2 + $0x130] sm:$0xff]  ;;  %v5140_v45 = vadd.f32 %v10385_v33, %v5090_v25  ;;  %v5179_v6 = vmax.f32 %v5139_v58, 0.0 }
 0x42f   : > { %v5144_v61 = vadd.f32 %v10385_v33, %v5094_v22  ;;  %v5183_v0 = vmax.f32 %v5143_v40, 0.0 }
 0x430   : > { %v5180_v18 = vmax.f32 %v5140_v45, 0.0 }
 0x431   : > { %v5184_v20 = vmax.f32 %v5144_v61, 0.0  ;;  %v5207_v50 = vpack.c.bf16 %v5183_v0, %v5179_v6 }
 0x433   : > { %v5208_v31 = vpack.c.bf16 %v5184_v20, %v5180_v18 }
 0x43b   : > { %5488 = vmatmul.bf16.gmra.mxu0 %v5199_v17  ;;  %v5097_v17 = vld [vmem:[#allocation2 + $0x58] sm:$0xff] }
 0x43c   : > { %5522 = vmatmul.bf16.gmra.mxu1 %v5200_v27  ;;  %v5101_v27 = vld [vmem:[#allocation2 + $0x28] sm:$0xff]  ;;  %v5147_v63 = vadd.f32 %v10383_v29, %v5097_v17 }
 0x43d   : > { %5556 = vmatmul.bf16.gmra.mxu2 %v5201_v21  ;;  %v5098_v21 = vld [vmem:[#allocation2 + $0x78] sm:$0xff]  ;;  %v5151_v11 = vadd.f32 %v10383_v29, %v5101_v27  ;;  %v5194_v29 = vmax.f32 %v5154_v55, 0.0 }
 0x43e   : > { %5590 = vmatmul.bf16.gmra.mxu3 %v5202_v36  ;;  %v5102_v36 = vld [vmem:[#allocation2] sm:$0xff]  ;;  %v5148_v3 = vadd.f32 %v10385_v33, %v5098_v21  ;;  %v5187_v51 = vmax.f32 %v5147_v63, 0.0 }
 0x43f   : > { %v5152_v35 = vadd.f32 %v10385_v33, %v5102_v36  ;;  %v5191_v57 = vmax.f32 %v5151_v11, 0.0  ;;  %v5214_v33 = vpack.c.bf16 %v5194_v29, %v5190_v48 }
 0x440   : > { %v5188_v13 = vmax.f32 %v5148_v3, 0.0 }
 0x441   : > { %v5192_v14 = vmax.f32 %v5152_v35, 0.0  ;;  %v5211_v30 = vpack.c.bf16 %v5191_v57, %v5187_v51 }
 0x443   : > { %v5212_v1 = vpack.c.bf16 %v5192_v14, %v5188_v13 }
 0x44b   : > { %5493 = vmatmul.bf16.gmra.mxu0 %v5203_v49  ;;  %v5611_v49 = vlaneseq }
 0x44c   : > { %5527 = vmatmul.bf16.gmra.mxu1 %v5204_v4 }
 0x44d   : > { %5561 = vmatmul.bf16.gmra.mxu2 %v5205_v53  ;;  %v10434_v38 = vand.u32 127, %v5611_v49 }
 0x44e   : > { %5595 = vmatmul.bf16.gmra.mxu3 %v5206_v28 }
 0x44f   : > { %vm5613_vm6 = vcmp.ge.s32.totalorder %v10434_v38, 32 }
 0x45b   : > { %5498 = vmatmul.bf16.gmra.mxu0 %v5207_v50 }
 0x45c   : > { %5532 = vmatmul.bf16.gmra.mxu1 %v5208_v31 }
 0x45d   : > { %5566 = vmatmul.bf16.gmra.mxu2 %v5209_v5 }
 0x45e   : > { %5600 = vmatmul.bf16.gmra.mxu3 %v5210_v39 }
 0x46b   : > { %5503 = vmatmul.bf16.gmra.mxu0 %v5211_v30 }
 0x46c   : > { %5537 = vmatmul.bf16.gmra.mxu1 %v5212_v1 }
 0x46d   : > { %5571 = vmatmul.bf16.gmra.mxu2 %v5213_v59 }
 0x46e   : > { %5605 = vmatmul.bf16.gmra.mxu3 %v5214_v33 }
 0x4a8   : > { %v5484_v32 = vpop.f32.mrf.mxu0 }
 0x4a9   : > { %v5518_v52 = vpop.f32.mrf.mxu1  ;;  %v5485_v60 = vadd.f32 %v10431_v8, %v5484_v32 }
 0x4ab   : > { %v5519_v4 = vadd.f32 %v5518_v52, %v5485_v60 }
 0x4b0   : > { %v5552_v53 = vpop.f32.mrf.mxu2  ;;  %v5486_v25 = vpop.f32.mrf.mxu0 }
 0x4b1   : > { %v5586_v28 = vpop.f32.mrf.mxu3  ;;  %v5553_v7 = vadd.f32 %v5552_v53, %v5519_v4  ;;  %v5520_v22 = vpop.f32.mrf.mxu1  ;;  %v5487_v10 = vadd.f32 %v10431_v8, %v5486_v25 }
 0x4b3   : > { %v5587_v23 = vadd.f32 %v5586_v28, %v5553_v7  ;;  %v5521_v58 = vadd.f32 %v5520_v22, %v5487_v10 }
 0x4b5   : > { %v5614_v34 = vmax.f32 %v5587_v23, 0.0 }
 0x4b7   : > { %v5624_v2 = vsel %vm5613_vm6, %v5614_v34, %v5587_v23 }
 0x4b8   : > { %5634 = vst [vmem:[%s8639_s17] sm:$0xff] %v5624_v2  ;;  %v5554_v40 = vpop.f32.mrf.mxu2  ;;  %v5489_v42 = vpop.f32.mrf.mxu0 }
 0x4b9   : > { %v5588_v45 = vpop.f32.mrf.mxu3  ;;  %v5555_v61 = vadd.f32 %v5554_v40, %v5521_v58  ;;  %v5523_v9 = vpop.f32.mrf.mxu1  ;;  %v5490_v46 = vadd.f32 %v10431_v8, %v5489_v42 }
 0x4bb   : > { %v5589_v12 = vadd.f32 %v5588_v45, %v5555_v61  ;;  %v5524_v0 = vadd.f32 %v5523_v9, %v5490_v46 }
 0x4bd   : > { %v5615_v6 = vmax.f32 %v5589_v12, 0.0 }
 0x4bf   : > { %v5625_v18 = vsel %vm5613_vm6, %v5615_v6, %v5589_v12 }
 0x4c0   : > { %5635 = vst [vmem:[%s8639_s17 + $0x8] sm:$0xff] %v5625_v18  ;;  %v5557_v20 = vpop.f32.mrf.mxu2  ;;  %v5491_v37 = vpop.f32.mrf.mxu0 }
 0x4c1   : > { %v5591_v44 = vpop.f32.mrf.mxu3  ;;  %v5558_v54 = vadd.f32 %v5557_v20, %v5524_v0  ;;  %v5525_v56 = vpop.f32.mrf.mxu1  ;;  %v5492_v31 = vadd.f32 %v10431_v8, %v5491_v37 }
 0x4c3   : > { %v5592_v50 = vadd.f32 %v5591_v44, %v5558_v54  ;;  %v5526_v17 = vadd.f32 %v5525_v56, %v5492_v31 }
 0x4c5   : > { %v5616_v5 = vmax.f32 %v5592_v50, 0.0 }
 0x4c7   : > { %v5626_v39 = vsel %vm5613_vm6, %v5616_v5, %v5592_v50 }
 0x4c8   : > { %5636 = vst [vmem:[%s8639_s17 + $0x10] sm:$0xff] %v5626_v39  ;;  %v5559_v27 = vpop.f32.mrf.mxu2  ;;  %v5494_v19 = vpop.f32.mrf.mxu0 }
 0x4c9   : > { %v5593_v21 = vpop.f32.mrf.mxu3  ;;  %v5560_v36 = vadd.f32 %v5559_v27, %v5526_v17  ;;  %v5528_v43 = vpop.f32.mrf.mxu1  ;;  %v5495_v62 = vadd.f32 %v10431_v8, %v5494_v19 }
 0x4cb   : > { %v5594_v41 = vadd.f32 %v5593_v21, %v5560_v36  ;;  %v5529_v11 = vadd.f32 %v5528_v43, %v5495_v62 }
 0x4cd   : > { %v5617_v63 = vmax.f32 %v5594_v41, 0.0 }
 0x4cf   : > { %v5627_v3 = vsel %vm5613_vm6, %v5617_v63, %v5594_v41 }
 0x4d0   : > { %5637 = vst [vmem:[%s8639_s17 + $0x18] sm:$0xff] %v5627_v3  ;;  %v5562_v35 = vpop.f32.mrf.mxu2  ;;  %v5496_v15 = vpop.f32.mrf.mxu0 }
 0x4d1   : > { %v5596_v24 = vpop.f32.mrf.mxu3  ;;  %v5563_v47 = vadd.f32 %v5562_v35, %v5529_v11  ;;  %v5530_v55 = vpop.f32.mrf.mxu1  ;;  %v5497_v57 = vadd.f32 %v10431_v8, %v5496_v15 }
 0x4d3   : > { %v5597_v51 = vadd.f32 %v5596_v24, %v5563_v47  ;;  %v5531_v16 = vadd.f32 %v5530_v55, %v5497_v57 }
 0x4d5   : > { %v5618_v13 = vmax.f32 %v5597_v51, 0.0 }
 0x4d7   : > { %v5628_v14 = vsel %vm5613_vm6, %v5618_v13, %v5597_v51 }
 0x4d8   : > { %5638 = vst [vmem:[%s8639_s17 + $0x20] sm:$0xff] %v5628_v14  ;;  %v5564_v26 = vpop.f32.mrf.mxu2  ;;  %v5499_v30 = vpop.f32.mrf.mxu0 }
 0x4d9   : > { %v5598_v48 = vpop.f32.mrf.mxu3  ;;  %v5565_v29 = vadd.f32 %v5564_v26, %v5531_v16  ;;  %v5533_v1 = vpop.f32.mrf.mxu1  ;;  %v5500_v59 = vadd.f32 %v10431_v8, %v5499_v30 }
 0x4db   : > { %v5599_v33 = vadd.f32 %v5598_v48, %v5565_v29  ;;  %v5534_v52 = vadd.f32 %v5533_v1, %v5500_v59 }
 0x4dd   : > { %v5619_v32 = vmax.f32 %v5599_v33, 0.0 }
 0x4df   : > { %v5629_v60 = vsel %vm5613_vm6, %v5619_v32, %v5599_v33 }
 0x4e0   : > { %5639 = vst [vmem:[%s8639_s17 + $0x28] sm:$0xff] %v5629_v60  ;;  %v5567_v49 = vpop.f32.mrf.mxu2  ;;  %v5501_v28 = vpop.f32.mrf.mxu0 }
 0x4e1   : > { %v5601_v4 = vpop.f32.mrf.mxu3  ;;  %v5568_v53 = vadd.f32 %v5567_v49, %v5534_v52  ;;  %v5535_v7 = vpop.f32.mrf.mxu1  ;;  %v5502_v22 = vadd.f32 %v10431_v8, %v5501_v28 }
 0x4e3   : > { %v5602_v25 = vadd.f32 %v5601_v4, %v5568_v53  ;;  %v5536_v34 = vadd.f32 %v5535_v7, %v5502_v22 }
 0x4e5   : > { %v5620_v23 = vmax.f32 %v5602_v25, 0.0 }
 0x4e7   : > { %v5630_v10 = vsel %vm5613_vm6, %v5620_v23, %v5602_v25 }
 0x4e8   : > { %5640 = vst [vmem:[%s8639_s17 + $0x30] sm:$0xff] %v5630_v10  ;;  %v5569_v2 = vpop.f32.mrf.mxu2  ;;  %v5504_v45 = vpop.f32.mrf.mxu0 }
 0x4e9   : > { %v5603_v58 = vpop.f32.mrf.mxu3  ;;  %v5570_v40 = vadd.f32 %v5569_v2, %v5536_v34  ;;  %v5505_v61 = vadd.f32 %v10431_v8, %v5504_v45  ;;  %v5538_v9 = vpop.f32.mrf.mxu1 }
 0x4eb   : > { %v5604_v42 = vadd.f32 %v5603_v58, %v5570_v40  ;;  %v5539_v12 = vadd.f32 %v5538_v9, %v5505_v61 }
 0x4ed   : > { %v5621_v46 = vmax.f32 %v5604_v42, 0.0 }
 0x4ef   : > { %v5631_v6 = vsel %vm5613_vm6, %v5621_v46, %v5604_v42 }
 0x4f0   : > { %5641 = vst [vmem:[%s8639_s17 + $0x38] sm:$0xff] %v5631_v6  ;;  %v5572_v0 = vpop.f32.mrf.mxu2  ;;  %v5506_v44 = vpop.f32.mrf.mxu0 }
 0x4f1   : > { %v5606_v18 = vpop.f32.mrf.mxu3  ;;  %v5573_v20 = vadd.f32 %v5572_v0, %v5539_v12  ;;  %v5507_v37 = vadd.f32 %v10431_v8, %v5506_v44  ;;  %v5540_v50 = vpop.f32.mrf.mxu1 }
 0x4f3   : > { %v5607_v54 = vadd.f32 %v5606_v18, %v5573_v20  ;;  %v5541_v5 = vadd.f32 %v5540_v50, %v5507_v37 }
 0x4f5   : > { %v5622_v56 = vmax.f32 %v5607_v54, 0.0 }
 0x4f7   : > { %v5632_v31 = vsel %vm5613_vm6, %v5622_v56, %v5607_v54 }
 0x4f8   : > { %5642 = vst [vmem:[%s8639_s17 + $0x40] sm:$0xff] %v5632_v31  ;;  %v5574_v39 = vpop.f32.mrf.mxu2 }
 0x4f9   : > { %v5575_v17 = vadd.f32 %v5574_v39, %v5541_v5  ;;  %v5608_v27 = vpop.f32.mrf.mxu3 }
 0x4fb   : > { %v5609_v21 = vadd.f32 %v5608_v27, %v5575_v17 }
 0x4fd   : > { %v5623_v36 = vmax.f32 %v5609_v21, 0.0 }
 0x4ff   : > { %v5633_v19 = vsel %vm5613_vm6, %v5623_v36, %v5609_v21 }
 0x500   : > { %5643 = vst [vmem:[%s8639_s17 + $0x48] sm:$0xff] %v5633_v19 }
 0x501 PF: > { %s10598_s20 = sld [smem:[#allocation25_spill]]  ;;  %s5657_s3 = sshll.u32 %s8639_s17, 4  ;;  %s5658_s3 = int_to_ptr.vmem [resolvable:$true] %s5657_s3 }
 0x502   : > { %s10601_s10 = sld [smem:[#allocation35_spill]]  ;;  %s5645_s13 = scalar_lea.sflag [#allocation5], %s370_s5 }
 0x507   : > { %s7908_s15 = smul.u32 80, %s10598_s20 }
 0x508   : > { %s8222_s27 = scalar_lea.hbm %s10601_s10, 160 }
 0x509   : > { %s5656_s24 = scalar_lea.hbm %s10601_s10, %s7908_s15 }
 0x50a   : > { %s5659_s8 = sshll.u32 %s5656_s24, 4  ;;  %s5660_s8 = int_to_ptr.hbm [resolvable:$true] %s5659_s8 }
 0x50b   : > { %s8216_s19 = sshra.s32 %s5660_s8, 4  ;;  %s8217_s19 = int_to_ptr.hbm [resolvable:$true] %s8216_s19 }
 0x50c   : > { %s8218_s16 = scalar_lea.hbm %s8217_s19, 80  ;;  %p8223_p1 = scmp.lt.s32.totalorder %s8217_s19, %s10601_s10 }
 0x50d   : > { %p8219_p9 = scmp.ne.s32.totalorder %s8217_s19, %s8218_s16  ;;  %p8224_p4 = scmp.lt.s32.totalorder %s8222_s27, %s8218_s16 }
 0x50f   : > { %p8220_p11 = pnand %p8219_p9, %p8544_p7  ;;  %p8225_p2 = por %p8224_p4, %p8223_p1 }
 0x511   : > { %p8221_p0 = pneg %p8220_p11 }
 0x513   : > { %p8226_p3 = pnand %p8225_p2, %p8221_p0 }
 0x515   : > { %8229 = shalt.err (!%p8226_p3)
}
 0x516   : > { %s8376_s5 = smov 128   ;;  %s8377_s7 = smov 8  }
 0x517   : > { %7932 = dma.vmem_to_hbm [thread:$0]  (%p8544_p7), %s5658_s3, 1280, %s5660_s8, %s5645_s13, %s8376_s5, %s8376_s5, %s8377_s7  }
 0x518 PF: > { %s10602_s20 = sld [smem:[#allocation21_spill]]  ;;  %p7954_p6 = scmp.ge.s32.totalorder %s8360_s6, 2 }
 0x51a   : > { %p7945_p8 = pnand %p7954_p6, %p8549_p10 }
 0x51c   : > { %p7946_p12 = pneg %p7945_p8 }
 0x51e   : > { %s5674_s15 = sand.u32 1, %s10602_s20  }
 0x51f   : > { %s5675_s18 = scalar_lea.sflag [#allocation5], %s5674_s15 }
 0x520   : > { %8303 = dma.done.wait (%p7946_p12), %s5675_s18, 1280  }
 0x521   : > { %8305 = vsyncadd (%p7946_p12), %s5675_s18, 4294966016  ;;  %s25_s6 = sadd.s32 1, %s8360_s6   ;;  %s10605_s18 = sld [smem:[#allocation22_spill]] }
 0x522   : > { %p10498_p13 = scmp.ge.s32.totalorder %s25_s6, 6   ;;  %s10606_s19 = sld [smem:[#allocation23_spill]] }
 0x523   : > { %s10607_s20 = sld [smem:[#allocation31_spill]]  ;;  %s10612_s21 = smov %s8324_s22 }
 0x524   : > { %s10608_s9 = sld [smem:[#allocation28_spill]]  ;;  %s10613_s22 = smov %s8328_s23 }
 0x525   : > { %s10609_s3 = sld [smem:[#allocation29_spill]]  ;;  %s10615_s24 = smov %s8336_s25 }
 0x526   : > { %s10610_s8 = sld [smem:[#allocation26_spill]]  ;;  %s10616_s25 = smov %s8340_s26 }
 0x527   : > { %s10611_s13 = sld [smem:[#allocation27_spill]]  ;;  %s10618_s27 = smov %s8352_s29 }
 0x528   : > { %s10619_s28 = smov %s8356_s30 }
 0x529   :  { %24 = sbr.rel (!%p10498_p13) target bundleno = 16 (0x10), region = 131 }
 0x52a   : > { %s10614_s23 = smov %s10608_s9 }
 0x52b   : > { %s10617_s26 = smov %s10609_s3 }
 0x52c   : > { %s10620_s29 = smov %s10610_s8 }
 0x52d   : > { %s10621_s30 = smov %s10611_s13 }
 0x52e   :  { %5681 = vsyncpa [#allocation4], 1 }
 0x52f   :  { %5683 = vsyncpa [#allocation4 + $0x1], 1 }
 0x530   :  { %5684 = vsyncpa [#allocation7], 1 }
 0x531   :  { %5686 = vsyncpa [#allocation7 + $0x1], 1 }
 0x532   :  { %5687 = vsyncpa [#allocation10], 1 }
 0x533   :  { %5688 = vsyncpa [#allocation5], 1 }
 0x534   :  { %5690 = vsyncpa [#allocation5 + $0x1], 1 }

</bundles_post_ra>
